<compile_context>
chip_gen: v5e
topology: v5e:2x2
jax: 0.10.0
libtpu: 0.0.40
codegen_flags: <defaults>
</compile_context>

<pallas_src>
import functools
import numpy as np
import jax
import jax.numpy as jnp
from jax.experimental import pallas as pl
from jax.experimental.pallas import tpu as pltpu


# ------------------------------ fused Pallas kernel --------------------------

def _fused_kernel(x_ref,
                  wb1_ref, wb2_ref, wa1_ref, wa2_ref,
                  pool1_ref, pool2_ref, aff1_ref, aff2_ref,
                  out_ref,
                  *, H, W, cpg1, cpg2, btile):
    HW = H * W

    # Lane-index helpers for the conv boundary masks (computed once, reused by
    # 3 convs x 9 taps x btile images). Row tests reduce to plain lane
    # comparisons; only the column test needs `lane mod W` (bit-and for pow2 W).
    lane = jax.lax.broadcasted_iota(jnp.int32, (1, HW), 1)
    if W & (W - 1) == 0:
        w_idx = jnp.bitwise_and(lane, W - 1)
    else:
        w_idx = lane % W

    def conv3x3(x, w_ref):
        """x: (Cin, HW) f32, w_ref: (9, Cout, Cin) bf16 -> (Cout, HW) f32.

        Nine accumulated K=Cin MXU dots. Taps are generated with XLU lane rolls
        + VPU boundary masks (no halo scratch, no im2col staging); results form
        one f32 accumulation chain (MRB-friendly on v7x).
        """
        acc = None
        for ky in range(3):
            dy = ky - 1
            for kx in range(3):
                dx = kx - 1
                t = ky * 3 + kx
                shift = dy * W + dx                       # want tap[l] = x[l + shift]
                tap = x if shift == 0 else pltpu.roll(x, (-shift) % HW, axis=1)
                conds = []
                if dy == -1:
                    conds.append(lane >= W)               # h - 1 >= 0
                elif dy == 1:
                    conds.append(lane < (H - 1) * W)      # h + 1 <= H - 1
                if dx == -1:
                    conds.append(w_idx >= 1)              # w - 1 >= 0
                elif dx == 1:
                    conds.append(w_idx < W - 1)           # w + 1 <= W - 1
                if conds:
                    m = conds[0]
                    for extra in conds[1:]:
                        m = jnp.logical_and(m, extra)
                    tap = jnp.where(m, tap, 0.0)
                contrib = jnp.dot(w_ref[t], tap.astype(jnp.bfloat16),
                                  preferred_element_type=jnp.float32)
                acc = contrib if acc is None else acc + contrib
        return acc

    def gn_relu(y, pool_ref, gamma, beta, cpg, eps=1e-5):
        """GroupNorm(16) + ReLU with folded affine; channels on sublanes."""
        L = y.shape[-1]
        s = jnp.sum(y, axis=-1, keepdims=True)            # (c, 1) lane reduction (XLU)
        ss = jnp.sum(y * y, axis=-1, keepdims=True)       # (c, 1)
        if cpg > 1:
            # One tiny f32 dot pools BOTH stats within each group and
            # broadcasts them back to channels (replaces 4 tiny M=1 matmuls).
            stats = jnp.dot(pool_ref[...], jnp.concatenate([s, ss], axis=-1),
                            preferred_element_type=jnp.float32)
            s, ss = stats[:, 0:1], stats[:, 1:2]
        inv_n = 1.0 / float(cpg * L)
        mean = s * inv_n
        # NOTE: biased one-pass variance (matches nn.GroupNorm); fine at these
        # scales, a two-pass form would be safer for extreme activations.
        var = ss * inv_n - mean * mean
        scale = gamma * jax.lax.rsqrt(var + eps)
        shift = beta - mean * scale
        return jnp.maximum(y * scale + shift, 0.0)

    for b in range(btile):                                # unrolled: btile images / step
        x = x_ref[b]                                      # (C, HW) f32

        # residual block (BasicBlock-style, bias-free):
        #   conv3x3 -> relu -> conv3x3 -> +x -> relu
        y1 = jnp.maximum(conv3x3(x, wb1_ref), 0.0)
        res = jnp.maximum(conv3x3(y1, wb2_ref) + x, 0.0)

        # ConvAdapter: grouped conv3x3 -> GN(16) -> ReLU -> conv1x1 -> GN(16)
        #              -> ReLU -> * se
        a = conv3x3(res, wa1_ref)                         # (width, HW)
        a = gn_relu(a, pool1_ref, aff1_ref[:, 0:1], aff1_ref[:, 1:2], cpg1)
        a = jnp.dot(wa2_ref[...], a.astype(jnp.bfloat16),
                    preferred_element_type=jnp.float32)   # (C, HW)
        a = gn_relu(a, pool2_ref, aff2_ref[:, 0:1], aff2_ref[:, 1:2], cpg2)
        a = a * aff2_ref[:, 2:3]                          # se scaling

        out_ref[b] = (res + a).astype(out_ref.dtype)


def _full_spec(arr):
    nd = arr.ndim
    return pl.BlockSpec(arr.shape, lambda n, nd=nd: (0,) * nd)


def _pick_batch_tile(n):
    """Largest tile (<= 8 images) keeping grid length a multiple of 2 (v7x megacore)."""
    cands = [bt for bt in range(1, min(n, 8) + 1) if n % bt == 0]
    even = [bt for bt in cands if (n // bt) % 2 == 0]
    return max(even) if even else max(cands)


def sequential_block_adapter(x_nchw, p, *, batch_tile=None):
    """Pallas implementation of SequentialBlockAdapter.forward (one fused kernel)."""
    N, C, H, W = x_nchw.shape
    HW = H * W
    width = p["aff1"].shape[0]
    cpg1 = width // 16                       # GroupNorm(16, width)
    cpg2 = C // 16                           # GroupNorm(16, C)
    if batch_tile is None:
        batch_tile = _pick_batch_tile(N)
    assert N % batch_tile == 0

    x = x_nchw.reshape(N, C, HW)             # free reshape; NCHW-native, no transpose
    kernel = functools.partial(_fused_kernel, H=H, W=W,
                               cpg1=cpg1, cpg2=cpg2, btile=batch_tile)
    img_spec = pl.BlockSpec((batch_tile, C, HW), lambda n: (n, 0, 0))
    out = pl.pallas_call(
        kernel,
        out_shape=jax.ShapeDtypeStruct((N, C, HW), x.dtype),
        grid=(N // batch_tile,),
        in_specs=[img_spec,
                  _full_spec(p["wb1"]), _full_spec(p["wb2"]),
                  _full_spec(p["wa1"]), _full_spec(p["wa2"]),
                  _full_spec(p["pool1"]), _full_spec(p["pool2"]),
                  _full_spec(p["aff1"]), _full_spec(p["aff2"])],
        out_specs=img_spec,
        compiler_params=pltpu.CompilerParams(
            dimension_semantics=("parallel",)),
    )(x, p["wb1"], p["wb2"], p["wa1"], p["wa2"],
      p["pool1"], p["pool2"], p["aff1"], p["aff2"])
    return out.reshape(N, C, H, W)


# ------------------------- parameter plumbing (host glue) --------------------

def conv3x3_taps(w_oihw):
    """PyTorch OIHW (Cout, Cin, 3, 3) -> per-tap weights (9, Cout, Cin), bf16."""
    co, ci, kh, kw = w_oihw.shape
    w = jnp.transpose(w_oihw, (2, 3, 0, 1)).reshape(kh * kw, co, ci)
    return w.astype(jnp.bfloat16)


def grouped_conv3x3_taps(w_grouped, in_channels, groups):
    """Grouped (Cout, Cin//groups, 3, 3) -> dense block-diagonal (9, Cout, Cin), bf16."""
    w = np.asarray(w_grouped)
    cout, icpg, kh, kw = w.shape
    opg = cout // groups
    dense = np.zeros((kh * kw, cout, in_channels), np.float32)
    for o in range(cout):
        g = o // opg
        dense[:, o, g * icpg:(g + 1) * icpg] = (
            w[o].transpose(1, 2, 0).reshape(kh * kw, icpg))
    return jnp.asarray(dense, dtype=jnp.bfloat16)


def group_pool_matrix(channels, num_groups):
    """(channels, channels) f32 matrix that sums per-channel stats within each group."""
    gid = np.arange(channels) // (channels // num_groups)
    return jnp.asarray((gid[:, None] == gid[None, :]).astype(np.float32))


# ------------------------------ pure-JAX reference ---------------------------

def _ref_conv2d(x, w, padding=1, groups=1):
    return jax.lax.conv_general_dilated(
        x, w, window_strides=(1, 1), padding=[(padding, padding)] * 2,
        dimension_numbers=("NCHW", "OIHW", "NCHW"), feature_group_count=groups)


def _ref_group_norm(x, num_groups, gamma, beta, eps=1e-5):
    N, C, H, W = x.shape
    xg = x.reshape(N, num_groups, (C // num_groups) * H * W)
    mean = xg.mean(axis=-1, keepdims=True)
    var = ((xg - mean) ** 2).mean(axis=-1, keepdims=True)
    xg = (xg - mean) / jnp.sqrt(var + eps)
    x = xg.reshape(N, C, H, W)
    return x * gamma.reshape(1, C, 1, 1) + beta.reshape(1, C, 1, 1)


def reference_forward(x, p, groups):
    relu = lambda v: jnp.maximum(v, 0.0)
    # residual block assumed BasicBlock-style (conv3x3 -> relu -> conv3x3 -> +x -> relu)
    y = relu(_ref_conv2d(x, p["wb1"]))
    residual = relu(_ref_conv2d(y, p["wb2"]) + x)
    a = _ref_conv2d(residual, p["wa1"], padding=1, groups=groups)
    a = relu(_ref_group_norm(a, 16, p["gamma1"], p["beta1"]))
    a = _ref_conv2d(a, p["wa2"], padding=0)
    a = relu(_ref_group_norm(a, 16, p["gamma2"], p["beta2"]))
    a = a * p["se"].reshape(1, -1, 1, 1)
    return residual + a


# ----------------------------------- main ------------------------------------

if __name__ == "__main__":
    N, C, H, W = 2, 32, 16, 16
    bottleneck_ratio = 2
    width = C // bottleneck_ratio            # adapter width = 16 (GroupNorm(16) divides it)
    groups = width                           # adapter conv1 uses groups=width

    keys = jax.random.split(jax.random.PRNGKey(0), 12)
    x = jax.random.normal(keys[0], (N, C, H, W), jnp.float32)

    # deterministic synthetic parameters (shapes per the module __init__)
    wb1 = jax.random.normal(keys[1], (C, C, 3, 3), jnp.float32) * 0.1
    wb2 = jax.random.normal(keys[2], (C, C, 3, 3), jnp.float32) * 0.1
    wa1 = jax.random.normal(keys[3], (width, C // groups, 3, 3), jnp.float32) * 0.1
    wa2 = jax.random.normal(keys[4], (C, width, 1, 1), jnp.float32) * 0.1
    gamma1 = 1.0 + 0.1 * jax.random.normal(keys[5], (width,), jnp.float32)
    beta1 = 0.1 * jax.random.normal(keys[6], (width,), jnp.float32)
    gamma2 = 1.0 + 0.1 * jax.random.normal(keys[7], (C,), jnp.float32)
    beta2 = 0.1 * jax.random.normal(keys[8], (C,), jnp.float32)
    se = 0.5 * jax.random.normal(keys[9], (C,), jnp.float32)   # nn.Parameter (1,C,1,1)

    params = {
        "wb1": conv3x3_taps(wb1),
        "wb2": conv3x3_taps(wb2),
        "wa1": grouped_conv3x3_taps(wa1, C, groups),
        "wa2": wa2[:, :, 0, 0].astype(jnp.bfloat16),           # (C, width)
        "pool1": group_pool_matrix(width, 16),
        "pool2": group_pool_matrix(C, 16),
        "aff1": jnp.stack([gamma1, beta1], axis=1),            # (width, 2)
        "aff2": jnp.stack([gamma2, beta2, se], axis=1),        # (C, 3)
    }
    ref_params = {"wb1": wb1, "wb2": wb2, "wa1": wa1, "wa2": wa2,
                  "gamma1": gamma1, "beta1": beta1,
                  "gamma2": gamma2, "beta2": beta2, "se": se}

    out = jax.jit(sequential_block_adapter)(x, params)
    out = jax.block_until_ready(out)

    ref = jax.block_until_ready(reference_forward(x, ref_params, groups))
    # Tolerance sized for bf16 MXU operands with f32 accumulation vs. the f32 reference.
    np.testing.assert_allclose(np.asarray(out), np.asarray(ref),
                               rtol=2e-2, atol=5e-2)
    print("KERNEL_OK")
</pallas_src>

<mosaic_0001>
module attributes {stable_mosaic.version = 11 : i64} {
  func.func @_fused_kernel(%arg0: i32, %arg1: memref<1x32x256xf32, #tpu.memory_space<vmem>>, %arg2: memref<9x32x32xbf16, #tpu.memory_space<vmem>>, %arg3: memref<9x32x32xbf16, #tpu.memory_space<vmem>>, %arg4: memref<9x16x32xbf16, #tpu.memory_space<vmem>>, %arg5: memref<32x16xbf16, #tpu.memory_space<vmem>>, %arg6: memref<16x16xf32, #tpu.memory_space<vmem>>, %arg7: memref<32x32xf32, #tpu.memory_space<vmem>>, %arg8: memref<16x2xf32, #tpu.memory_space<vmem>>, %arg9: memref<32x3xf32, #tpu.memory_space<vmem>>, %arg10: memref<1x32x256xf32, #tpu.memory_space<vmem>>) attributes {dimension_semantics = [#tpu.dimension_semantics<parallel>], iteration_bounds = array<i64: 2>, scalar_prefetch = 0 : i64, scratch_operands = 0 : i64, tpu.core_type = #tpu.core_type<tc>, window_params = [{transform_indices = @transform_0, window_bounds = array<i64: 1, 32, 256>}, {pipeline_mode = #tpu.pipeline_mode<synchronous>, transform_indices = @transform_1, window_bounds = array<i64: 9, 32, 32>}, {pipeline_mode = #tpu.pipeline_mode<synchronous>, transform_indices = @transform_2, window_bounds = array<i64: 9, 32, 32>}, {pipeline_mode = #tpu.pipeline_mode<synchronous>, transform_indices = @transform_3, window_bounds = array<i64: 9, 16, 32>}, {pipeline_mode = #tpu.pipeline_mode<synchronous>, transform_indices = @transform_4, window_bounds = array<i64: 32, 16>}, {pipeline_mode = #tpu.pipeline_mode<synchronous>, transform_indices = @transform_5, window_bounds = array<i64: 16, 16>}, {pipeline_mode = #tpu.pipeline_mode<synchronous>, transform_indices = @transform_6, window_bounds = array<i64: 32, 32>}, {pipeline_mode = #tpu.pipeline_mode<synchronous>, transform_indices = @transform_7, window_bounds = array<i64: 16, 2>}, {pipeline_mode = #tpu.pipeline_mode<synchronous>, transform_indices = @transform_8, window_bounds = array<i64: 32, 3>}, {transform_indices = @transform_9, window_bounds = array<i64: 1, 32, 256>}]} {
    %0 = tpu.iota {dimensions = array<i32: 1>} : vector<1x256xi32>
    %c15_i32 = arith.constant 15 : i32
    %1 = vector.broadcast %c15_i32 : i32 to vector<1x256xi32>
    %2 = arith.andi %0, %1 : vector<1x256xi32>
    %c0 = arith.constant 0 : index
    %c0_0 = arith.constant 0 : index
    %c0_1 = arith.constant 0 : index
    %3 = vector.load %arg1[%c0, %c0_0, %c0_1] : memref<1x32x256xf32, #tpu.memory_space<vmem>>, vector<1x32x256xf32>
    %4 = vector.shape_cast %3 : vector<1x32x256xf32> to vector<32x256xf32>
    %c17_i32 = arith.constant 17 : i32
    %5 = tpu.dynamic_rotate %4 by %c17_i32 dim 1 : vector<32x256xf32>, i32 -> vector<32x256xf32>
    %c16_i32 = arith.constant 16 : i32
    %6 = vector.broadcast %c16_i32 : i32 to vector<1x256xi32>
    %7 = arith.cmpi sge, %0, %6 : vector<1x256xi32>
    %c1_i32 = arith.constant 1 : i32
    %8 = vector.broadcast %c1_i32 : i32 to vector<1x256xi32>
    %9 = arith.cmpi sge, %2, %8 : vector<1x256xi32>
    %10 = arith.andi %7, %9 : vector<1x256xi1>
    %cst = arith.constant 0.000000e+00 : f32
    %11 = vector.shape_cast %10 : vector<1x256xi1> to vector<1x256xi1>
    %12 = vector.broadcast %11 : vector<1x256xi1> to vector<32x256xi1>
    %13 = vector.broadcast %cst : f32 to vector<32x256xf32>
    %14 = arith.select %12, %5, %13 : vector<32x256xi1>, vector<32x256xf32>
    %c0_2 = arith.constant 0 : index
    %c0_3 = arith.constant 0 : index
    %c0_4 = arith.constant 0 : index
    %15 = vector.load %arg2[%c0_2, %c0_3, %c0_4] : memref<9x32x32xbf16, #tpu.memory_space<vmem>>, vector<1x32x32xbf16>
    %16 = vector.shape_cast %15 : vector<1x32x32xbf16> to vector<32x32xbf16>
    %17 = arith.truncf %14 : vector<32x256xf32> to vector<32x256xbf16>
    %cst_5 = arith.constant dense<0.000000e+00> : vector<32x256xf32>
    %18 = tpu.matmul %16, %17, %cst_5 {dimension_numbers = #tpu.dot_dimension_numbers<[1], [0], [0], [1], [0, 0, 1, 1], [], []>} : vector<32x32xbf16>, vector<32x256xbf16>, vector<32x256xf32> -> vector<32x256xf32>
    %c16_i32_6 = arith.constant 16 : i32
    %19 = tpu.dynamic_rotate %4 by %c16_i32_6 dim 1 : vector<32x256xf32>, i32 -> vector<32x256xf32>
    %c16_i32_7 = arith.constant 16 : i32
    %20 = vector.broadcast %c16_i32_7 : i32 to vector<1x256xi32>
    %21 = arith.cmpi sge, %0, %20 : vector<1x256xi32>
    %cst_8 = arith.constant 0.000000e+00 : f32
    %22 = vector.shape_cast %21 : vector<1x256xi1> to vector<1x256xi1>
    %23 = vector.broadcast %22 : vector<1x256xi1> to vector<32x256xi1>
    %24 = vector.broadcast %cst_8 : f32 to vector<32x256xf32>
    %25 = arith.select %23, %19, %24 : vector<32x256xi1>, vector<32x256xf32>
    %c1 = arith.constant 1 : index
    %c0_9 = arith.constant 0 : index
    %c0_10 = arith.constant 0 : index
    %26 = vector.load %arg2[%c1, %c0_9, %c0_10] : memref<9x32x32xbf16, #tpu.memory_space<vmem>>, vector<1x32x32xbf16>
    %27 = vector.shape_cast %26 : vector<1x32x32xbf16> to vector<32x32xbf16>
    %28 = arith.truncf %25 : vector<32x256xf32> to vector<32x256xbf16>
    %cst_11 = arith.constant dense<0.000000e+00> : vector<32x256xf32>
    %29 = tpu.matmul %27, %28, %cst_11 {dimension_numbers = #tpu.dot_dimension_numbers<[1], [0], [0], [1], [0, 0, 1, 1], [], []>} : vector<32x32xbf16>, vector<32x256xbf16>, vector<32x256xf32> -> vector<32x256xf32>
    %30 = arith.addf %18, %29 : vector<32x256xf32>
    %c15_i32_12 = arith.constant 15 : i32
    %31 = tpu.dynamic_rotate %4 by %c15_i32_12 dim 1 : vector<32x256xf32>, i32 -> vector<32x256xf32>
    %c16_i32_13 = arith.constant 16 : i32
    %32 = vector.broadcast %c16_i32_13 : i32 to vector<1x256xi32>
    %33 = arith.cmpi sge, %0, %32 : vector<1x256xi32>
    %c15_i32_14 = arith.constant 15 : i32
    %34 = vector.broadcast %c15_i32_14 : i32 to vector<1x256xi32>
    %35 = arith.cmpi slt, %2, %34 : vector<1x256xi32>
    %36 = arith.andi %33, %35 : vector<1x256xi1>
    %cst_15 = arith.constant 0.000000e+00 : f32
    %37 = vector.shape_cast %36 : vector<1x256xi1> to vector<1x256xi1>
    %38 = vector.broadcast %37 : vector<1x256xi1> to vector<32x256xi1>
    %39 = vector.broadcast %cst_15 : f32 to vector<32x256xf32>
    %40 = arith.select %38, %31, %39 : vector<32x256xi1>, vector<32x256xf32>
    %c2 = arith.constant 2 : index
    %c0_16 = arith.constant 0 : index
    %c0_17 = arith.constant 0 : index
    %41 = vector.load %arg2[%c2, %c0_16, %c0_17] : memref<9x32x32xbf16, #tpu.memory_space<vmem>>, vector<1x32x32xbf16>
    %42 = vector.shape_cast %41 : vector<1x32x32xbf16> to vector<32x32xbf16>
    %43 = arith.truncf %40 : vector<32x256xf32> to vector<32x256xbf16>
    %cst_18 = arith.constant dense<0.000000e+00> : vector<32x256xf32>
    %44 = tpu.matmul %42, %43, %cst_18 {dimension_numbers = #tpu.dot_dimension_numbers<[1], [0], [0], [1], [0, 0, 1, 1], [], []>} : vector<32x32xbf16>, vector<32x256xbf16>, vector<32x256xf32> -> vector<32x256xf32>
    %45 = arith.addf %30, %44 : vector<32x256xf32>
    %c1_i32_19 = arith.constant 1 : i32
    %46 = tpu.dynamic_rotate %4 by %c1_i32_19 dim 1 : vector<32x256xf32>, i32 -> vector<32x256xf32>
    %c1_i32_20 = arith.constant 1 : i32
    %47 = vector.broadcast %c1_i32_20 : i32 to vector<1x256xi32>
    %48 = arith.cmpi sge, %2, %47 : vector<1x256xi32>
    %cst_21 = arith.constant 0.000000e+00 : f32
    %49 = vector.shape_cast %48 : vector<1x256xi1> to vector<1x256xi1>
    %50 = vector.broadcast %49 : vector<1x256xi1> to vector<32x256xi1>
    %51 = vector.broadcast %cst_21 : f32 to vector<32x256xf32>
    %52 = arith.select %50, %46, %51 : vector<32x256xi1>, vector<32x256xf32>
    %c3 = arith.constant 3 : index
    %c0_22 = arith.constant 0 : index
    %c0_23 = arith.constant 0 : index
    %53 = vector.load %arg2[%c3, %c0_22, %c0_23] : memref<9x32x32xbf16, #tpu.memory_space<vmem>>, vector<1x32x32xbf16>
    %54 = vector.shape_cast %53 : vector<1x32x32xbf16> to vector<32x32xbf16>
    %55 = arith.truncf %52 : vector<32x256xf32> to vector<32x256xbf16>
    %cst_24 = arith.constant dense<0.000000e+00> : vector<32x256xf32>
    %56 = tpu.matmul %54, %55, %cst_24 {dimension_numbers = #tpu.dot_dimension_numbers<[1], [0], [0], [1], [0, 0, 1, 1], [], []>} : vector<32x32xbf16>, vector<32x256xbf16>, vector<32x256xf32> -> vector<32x256xf32>
    %57 = arith.addf %45, %56 : vector<32x256xf32>
    %c4 = arith.constant 4 : index
    %c0_25 = arith.constant 0 : index
    %c0_26 = arith.constant 0 : index
    %58 = vector.load %arg2[%c4, %c0_25, %c0_26] : memref<9x32x32xbf16, #tpu.memory_space<vmem>>, vector<1x32x32xbf16>
    %59 = vector.shape_cast %58 : vector<1x32x32xbf16> to vector<32x32xbf16>
    %60 = arith.truncf %4 : vector<32x256xf32> to vector<32x256xbf16>
    %cst_27 = arith.constant dense<0.000000e+00> : vector<32x256xf32>
    %61 = tpu.matmul %59, %60, %cst_27 {dimension_numbers = #tpu.dot_dimension_numbers<[1], [0], [0], [1], [0, 0, 1, 1], [], []>} : vector<32x32xbf16>, vector<32x256xbf16>, vector<32x256xf32> -> vector<32x256xf32>
    %62 = arith.addf %57, %61 : vector<32x256xf32>
    %c255_i32 = arith.constant 255 : i32
    %63 = tpu.dynamic_rotate %4 by %c255_i32 dim 1 : vector<32x256xf32>, i32 -> vector<32x256xf32>
    %c15_i32_28 = arith.constant 15 : i32
    %64 = vector.broadcast %c15_i32_28 : i32 to vector<1x256xi32>
    %65 = arith.cmpi slt, %2, %64 : vector<1x256xi32>
    %cst_29 = arith.constant 0.000000e+00 : f32
    %66 = vector.shape_cast %65 : vector<1x256xi1> to vector<1x256xi1>
    %67 = vector.broadcast %66 : vector<1x256xi1> to vector<32x256xi1>
    %68 = vector.broadcast %cst_29 : f32 to vector<32x256xf32>
    %69 = arith.select %67, %63, %68 : vector<32x256xi1>, vector<32x256xf32>
    %c5 = arith.constant 5 : index
    %c0_30 = arith.constant 0 : index
    %c0_31 = arith.constant 0 : index
    %70 = vector.load %arg2[%c5, %c0_30, %c0_31] : memref<9x32x32xbf16, #tpu.memory_space<vmem>>, vector<1x32x32xbf16>
    %71 = vector.shape_cast %70 : vector<1x32x32xbf16> to vector<32x32xbf16>
    %72 = arith.truncf %69 : vector<32x256xf32> to vector<32x256xbf16>
    %cst_32 = arith.constant dense<0.000000e+00> : vector<32x256xf32>
    %73 = tpu.matmul %71, %72, %cst_32 {dimension_numbers = #tpu.dot_dimension_numbers<[1], [0], [0], [1], [0, 0, 1, 1], [], []>} : vector<32x32xbf16>, vector<32x256xbf16>, vector<32x256xf32> -> vector<32x256xf32>
    %74 = arith.addf %62, %73 : vector<32x256xf32>
    %c241_i32 = arith.constant 241 : i32
    %75 = tpu.dynamic_rotate %4 by %c241_i32 dim 1 : vector<32x256xf32>, i32 -> vector<32x256xf32>
    %c240_i32 = arith.constant 240 : i32
    %76 = vector.broadcast %c240_i32 : i32 to vector<1x256xi32>
    %77 = arith.cmpi slt, %0, %76 : vector<1x256xi32>
    %c1_i32_33 = arith.constant 1 : i32
    %78 = vector.broadcast %c1_i32_33 : i32 to vector<1x256xi32>
    %79 = arith.cmpi sge, %2, %78 : vector<1x256xi32>
    %80 = arith.andi %77, %79 : vector<1x256xi1>
    %cst_34 = arith.constant 0.000000e+00 : f32
    %81 = vector.shape_cast %80 : vector<1x256xi1> to vector<1x256xi1>
    %82 = vector.broadcast %81 : vector<1x256xi1> to vector<32x256xi1>
    %83 = vector.broadcast %cst_34 : f32 to vector<32x256xf32>
    %84 = arith.select %82, %75, %83 : vector<32x256xi1>, vector<32x256xf32>
    %c6 = arith.constant 6 : index
    %c0_35 = arith.constant 0 : index
    %c0_36 = arith.constant 0 : index
    %85 = vector.load %arg2[%c6, %c0_35, %c0_36] : memref<9x32x32xbf16, #tpu.memory_space<vmem>>, vector<1x32x32xbf16>
    %86 = vector.shape_cast %85 : vector<1x32x32xbf16> to vector<32x32xbf16>
    %87 = arith.truncf %84 : vector<32x256xf32> to vector<32x256xbf16>
    %cst_37 = arith.constant dense<0.000000e+00> : vector<32x256xf32>
    %88 = tpu.matmul %86, %87, %cst_37 {dimension_numbers = #tpu.dot_dimension_numbers<[1], [0], [0], [1], [0, 0, 1, 1], [], []>} : vector<32x32xbf16>, vector<32x256xbf16>, vector<32x256xf32> -> vector<32x256xf32>
    %89 = arith.addf %74, %88 : vector<32x256xf32>
    %c240_i32_38 = arith.constant 240 : i32
    %90 = tpu.dynamic_rotate %4 by %c240_i32_38 dim 1 : vector<32x256xf32>, i32 -> vector<32x256xf32>
    %c240_i32_39 = arith.constant 240 : i32
    %91 = vector.broadcast %c240_i32_39 : i32 to vector<1x256xi32>
    %92 = arith.cmpi slt, %0, %91 : vector<1x256xi32>
    %cst_40 = arith.constant 0.000000e+00 : f32
    %93 = vector.shape_cast %92 : vector<1x256xi1> to vector<1x256xi1>
    %94 = vector.broadcast %93 : vector<1x256xi1> to vector<32x256xi1>
    %95 = vector.broadcast %cst_40 : f32 to vector<32x256xf32>
    %96 = arith.select %94, %90, %95 : vector<32x256xi1>, vector<32x256xf32>
    %c7 = arith.constant 7 : index
    %c0_41 = arith.constant 0 : index
    %c0_42 = arith.constant 0 : index
    %97 = vector.load %arg2[%c7, %c0_41, %c0_42] : memref<9x32x32xbf16, #tpu.memory_space<vmem>>, vector<1x32x32xbf16>
    %98 = vector.shape_cast %97 : vector<1x32x32xbf16> to vector<32x32xbf16>
    %99 = arith.truncf %96 : vector<32x256xf32> to vector<32x256xbf16>
    %cst_43 = arith.constant dense<0.000000e+00> : vector<32x256xf32>
    %100 = tpu.matmul %98, %99, %cst_43 {dimension_numbers = #tpu.dot_dimension_numbers<[1], [0], [0], [1], [0, 0, 1, 1], [], []>} : vector<32x32xbf16>, vector<32x256xbf16>, vector<32x256xf32> -> vector<32x256xf32>
    %101 = arith.addf %89, %100 : vector<32x256xf32>
    %c239_i32 = arith.constant 239 : i32
    %102 = tpu.dynamic_rotate %4 by %c239_i32 dim 1 : vector<32x256xf32>, i32 -> vector<32x256xf32>
    %c240_i32_44 = arith.constant 240 : i32
    %103 = vector.broadcast %c240_i32_44 : i32 to vector<1x256xi32>
    %104 = arith.cmpi slt, %0, %103 : vector<1x256xi32>
    %c15_i32_45 = arith.constant 15 : i32
    %105 = vector.broadcast %c15_i32_45 : i32 to vector<1x256xi32>
    %106 = arith.cmpi slt, %2, %105 : vector<1x256xi32>
    %107 = arith.andi %104, %106 : vector<1x256xi1>
    %cst_46 = arith.constant 0.000000e+00 : f32
    %108 = vector.shape_cast %107 : vector<1x256xi1> to vector<1x256xi1>
    %109 = vector.broadcast %108 : vector<1x256xi1> to vector<32x256xi1>
    %110 = vector.broadcast %cst_46 : f32 to vector<32x256xf32>
    %111 = arith.select %109, %102, %110 : vector<32x256xi1>, vector<32x256xf32>
    %c8 = arith.constant 8 : index
    %c0_47 = arith.constant 0 : index
    %c0_48 = arith.constant 0 : index
    %112 = vector.load %arg2[%c8, %c0_47, %c0_48] : memref<9x32x32xbf16, #tpu.memory_space<vmem>>, vector<1x32x32xbf16>
    %113 = vector.shape_cast %112 : vector<1x32x32xbf16> to vector<32x32xbf16>
    %114 = arith.truncf %111 : vector<32x256xf32> to vector<32x256xbf16>
    %cst_49 = arith.constant dense<0.000000e+00> : vector<32x256xf32>
    %115 = tpu.matmul %113, %114, %cst_49 {dimension_numbers = #tpu.dot_dimension_numbers<[1], [0], [0], [1], [0, 0, 1, 1], [], []>} : vector<32x32xbf16>, vector<32x256xbf16>, vector<32x256xf32> -> vector<32x256xf32>
    %116 = arith.addf %101, %115 : vector<32x256xf32>
    %cst_50 = arith.constant 0.000000e+00 : f32
    %117 = vector.broadcast %cst_50 : f32 to vector<32x256xf32>
    %118 = arith.maximumf %116, %117 : vector<32x256xf32>
    %c17_i32_51 = arith.constant 17 : i32
    %119 = tpu.dynamic_rotate %118 by %c17_i32_51 dim 1 : vector<32x256xf32>, i32 -> vector<32x256xf32>
    %c16_i32_52 = arith.constant 16 : i32
    %120 = vector.broadcast %c16_i32_52 : i32 to vector<1x256xi32>
    %121 = arith.cmpi sge, %0, %120 : vector<1x256xi32>
    %c1_i32_53 = arith.constant 1 : i32
    %122 = vector.broadcast %c1_i32_53 : i32 to vector<1x256xi32>
    %123 = arith.cmpi sge, %2, %122 : vector<1x256xi32>
    %124 = arith.andi %121, %123 : vector<1x256xi1>
    %cst_54 = arith.constant 0.000000e+00 : f32
    %125 = vector.shape_cast %124 : vector<1x256xi1> to vector<1x256xi1>
    %126 = vector.broadcast %125 : vector<1x256xi1> to vector<32x256xi1>
    %127 = vector.broadcast %cst_54 : f32 to vector<32x256xf32>
    %128 = arith.select %126, %119, %127 : vector<32x256xi1>, vector<32x256xf32>
    %c0_55 = arith.constant 0 : index
    %c0_56 = arith.constant 0 : index
    %c0_57 = arith.constant 0 : index
    %129 = vector.load %arg3[%c0_55, %c0_56, %c0_57] : memref<9x32x32xbf16, #tpu.memory_space<vmem>>, vector<1x32x32xbf16>
    %130 = vector.shape_cast %129 : vector<1x32x32xbf16> to vector<32x32xbf16>
    %131 = arith.truncf %128 : vector<32x256xf32> to vector<32x256xbf16>
    %cst_58 = arith.constant dense<0.000000e+00> : vector<32x256xf32>
    %132 = tpu.matmul %130, %131, %cst_58 {dimension_numbers = #tpu.dot_dimension_numbers<[1], [0], [0], [1], [0, 0, 1, 1], [], []>} : vector<32x32xbf16>, vector<32x256xbf16>, vector<32x256xf32> -> vector<32x256xf32>
    %c16_i32_59 = arith.constant 16 : i32
    %133 = tpu.dynamic_rotate %118 by %c16_i32_59 dim 1 : vector<32x256xf32>, i32 -> vector<32x256xf32>
    %c16_i32_60 = arith.constant 16 : i32
    %134 = vector.broadcast %c16_i32_60 : i32 to vector<1x256xi32>
    %135 = arith.cmpi sge, %0, %134 : vector<1x256xi32>
    %cst_61 = arith.constant 0.000000e+00 : f32
    %136 = vector.shape_cast %135 : vector<1x256xi1> to vector<1x256xi1>
    %137 = vector.broadcast %136 : vector<1x256xi1> to vector<32x256xi1>
    %138 = vector.broadcast %cst_61 : f32 to vector<32x256xf32>
    %139 = arith.select %137, %133, %138 : vector<32x256xi1>, vector<32x256xf32>
    %c1_62 = arith.constant 1 : index
    %c0_63 = arith.constant 0 : index
    %c0_64 = arith.constant 0 : index
    %140 = vector.load %arg3[%c1_62, %c0_63, %c0_64] : memref<9x32x32xbf16, #tpu.memory_space<vmem>>, vector<1x32x32xbf16>
    %141 = vector.shape_cast %140 : vector<1x32x32xbf16> to vector<32x32xbf16>
    %142 = arith.truncf %139 : vector<32x256xf32> to vector<32x256xbf16>
    %cst_65 = arith.constant dense<0.000000e+00> : vector<32x256xf32>
    %143 = tpu.matmul %141, %142, %cst_65 {dimension_numbers = #tpu.dot_dimension_numbers<[1], [0], [0], [1], [0, 0, 1, 1], [], []>} : vector<32x32xbf16>, vector<32x256xbf16>, vector<32x256xf32> -> vector<32x256xf32>
    %144 = arith.addf %132, %143 : vector<32x256xf32>
    %c15_i32_66 = arith.constant 15 : i32
    %145 = tpu.dynamic_rotate %118 by %c15_i32_66 dim 1 : vector<32x256xf32>, i32 -> vector<32x256xf32>
    %c16_i32_67 = arith.constant 16 : i32
    %146 = vector.broadcast %c16_i32_67 : i32 to vector<1x256xi32>
    %147 = arith.cmpi sge, %0, %146 : vector<1x256xi32>
    %c15_i32_68 = arith.constant 15 : i32
    %148 = vector.broadcast %c15_i32_68 : i32 to vector<1x256xi32>
    %149 = arith.cmpi slt, %2, %148 : vector<1x256xi32>
    %150 = arith.andi %147, %149 : vector<1x256xi1>
    %cst_69 = arith.constant 0.000000e+00 : f32
    %151 = vector.shape_cast %150 : vector<1x256xi1> to vector<1x256xi1>
    %152 = vector.broadcast %151 : vector<1x256xi1> to vector<32x256xi1>
    %153 = vector.broadcast %cst_69 : f32 to vector<32x256xf32>
    %154 = arith.select %152, %145, %153 : vector<32x256xi1>, vector<32x256xf32>
    %c2_70 = arith.constant 2 : index
    %c0_71 = arith.constant 0 : index
    %c0_72 = arith.constant 0 : index
    %155 = vector.load %arg3[%c2_70, %c0_71, %c0_72] : memref<9x32x32xbf16, #tpu.memory_space<vmem>>, vector<1x32x32xbf16>
    %156 = vector.shape_cast %155 : vector<1x32x32xbf16> to vector<32x32xbf16>
    %157 = arith.truncf %154 : vector<32x256xf32> to vector<32x256xbf16>
    %cst_73 = arith.constant dense<0.000000e+00> : vector<32x256xf32>
    %158 = tpu.matmul %156, %157, %cst_73 {dimension_numbers = #tpu.dot_dimension_numbers<[1], [0], [0], [1], [0, 0, 1, 1], [], []>} : vector<32x32xbf16>, vector<32x256xbf16>, vector<32x256xf32> -> vector<32x256xf32>
    %159 = arith.addf %144, %158 : vector<32x256xf32>
    %c1_i32_74 = arith.constant 1 : i32
    %160 = tpu.dynamic_rotate %118 by %c1_i32_74 dim 1 : vector<32x256xf32>, i32 -> vector<32x256xf32>
    %c1_i32_75 = arith.constant 1 : i32
    %161 = vector.broadcast %c1_i32_75 : i32 to vector<1x256xi32>
    %162 = arith.cmpi sge, %2, %161 : vector<1x256xi32>
    %cst_76 = arith.constant 0.000000e+00 : f32
    %163 = vector.shape_cast %162 : vector<1x256xi1> to vector<1x256xi1>
    %164 = vector.broadcast %163 : vector<1x256xi1> to vector<32x256xi1>
    %165 = vector.broadcast %cst_76 : f32 to vector<32x256xf32>
    %166 = arith.select %164, %160, %165 : vector<32x256xi1>, vector<32x256xf32>
    %c3_77 = arith.constant 3 : index
    %c0_78 = arith.constant 0 : index
    %c0_79 = arith.constant 0 : index
    %167 = vector.load %arg3[%c3_77, %c0_78, %c0_79] : memref<9x32x32xbf16, #tpu.memory_space<vmem>>, vector<1x32x32xbf16>
    %168 = vector.shape_cast %167 : vector<1x32x32xbf16> to vector<32x32xbf16>
    %169 = arith.truncf %166 : vector<32x256xf32> to vector<32x256xbf16>
    %cst_80 = arith.constant dense<0.000000e+00> : vector<32x256xf32>
    %170 = tpu.matmul %168, %169, %cst_80 {dimension_numbers = #tpu.dot_dimension_numbers<[1], [0], [0], [1], [0, 0, 1, 1], [], []>} : vector<32x32xbf16>, vector<32x256xbf16>, vector<32x256xf32> -> vector<32x256xf32>
    %171 = arith.addf %159, %170 : vector<32x256xf32>
    %c4_81 = arith.constant 4 : index
    %c0_82 = arith.constant 0 : index
    %c0_83 = arith.constant 0 : index
    %172 = vector.load %arg3[%c4_81, %c0_82, %c0_83] : memref<9x32x32xbf16, #tpu.memory_space<vmem>>, vector<1x32x32xbf16>
    %173 = vector.shape_cast %172 : vector<1x32x32xbf16> to vector<32x32xbf16>
    %174 = arith.truncf %118 : vector<32x256xf32> to vector<32x256xbf16>
    %cst_84 = arith.constant dense<0.000000e+00> : vector<32x256xf32>
    %175 = tpu.matmul %173, %174, %cst_84 {dimension_numbers = #tpu.dot_dimension_numbers<[1], [0], [0], [1], [0, 0, 1, 1], [], []>} : vector<32x32xbf16>, vector<32x256xbf16>, vector<32x256xf32> -> vector<32x256xf32>
    %176 = arith.addf %171, %175 : vector<32x256xf32>
    %c255_i32_85 = arith.constant 255 : i32
    %177 = tpu.dynamic_rotate %118 by %c255_i32_85 dim 1 : vector<32x256xf32>, i32 -> vector<32x256xf32>
    %c15_i32_86 = arith.constant 15 : i32
    %178 = vector.broadcast %c15_i32_86 : i32 to vector<1x256xi32>
    %179 = arith.cmpi slt, %2, %178 : vector<1x256xi32>
    %cst_87 = arith.constant 0.000000e+00 : f32
    %180 = vector.shape_cast %179 : vector<1x256xi1> to vector<1x256xi1>
    %181 = vector.broadcast %180 : vector<1x256xi1> to vector<32x256xi1>
    %182 = vector.broadcast %cst_87 : f32 to vector<32x256xf32>
    %183 = arith.select %181, %177, %182 : vector<32x256xi1>, vector<32x256xf32>
    %c5_88 = arith.constant 5 : index
    %c0_89 = arith.constant 0 : index
    %c0_90 = arith.constant 0 : index
    %184 = vector.load %arg3[%c5_88, %c0_89, %c0_90] : memref<9x32x32xbf16, #tpu.memory_space<vmem>>, vector<1x32x32xbf16>
    %185 = vector.shape_cast %184 : vector<1x32x32xbf16> to vector<32x32xbf16>
    %186 = arith.truncf %183 : vector<32x256xf32> to vector<32x256xbf16>
    %cst_91 = arith.constant dense<0.000000e+00> : vector<32x256xf32>
    %187 = tpu.matmul %185, %186, %cst_91 {dimension_numbers = #tpu.dot_dimension_numbers<[1], [0], [0], [1], [0, 0, 1, 1], [], []>} : vector<32x32xbf16>, vector<32x256xbf16>, vector<32x256xf32> -> vector<32x256xf32>
    %188 = arith.addf %176, %187 : vector<32x256xf32>
    %c241_i32_92 = arith.constant 241 : i32
    %189 = tpu.dynamic_rotate %118 by %c241_i32_92 dim 1 : vector<32x256xf32>, i32 -> vector<32x256xf32>
    %c240_i32_93 = arith.constant 240 : i32
    %190 = vector.broadcast %c240_i32_93 : i32 to vector<1x256xi32>
    %191 = arith.cmpi slt, %0, %190 : vector<1x256xi32>
    %c1_i32_94 = arith.constant 1 : i32
    %192 = vector.broadcast %c1_i32_94 : i32 to vector<1x256xi32>
    %193 = arith.cmpi sge, %2, %192 : vector<1x256xi32>
    %194 = arith.andi %191, %193 : vector<1x256xi1>
    %cst_95 = arith.constant 0.000000e+00 : f32
    %195 = vector.shape_cast %194 : vector<1x256xi1> to vector<1x256xi1>
    %196 = vector.broadcast %195 : vector<1x256xi1> to vector<32x256xi1>
    %197 = vector.broadcast %cst_95 : f32 to vector<32x256xf32>
    %198 = arith.select %196, %189, %197 : vector<32x256xi1>, vector<32x256xf32>
    %c6_96 = arith.constant 6 : index
    %c0_97 = arith.constant 0 : index
    %c0_98 = arith.constant 0 : index
    %199 = vector.load %arg3[%c6_96, %c0_97, %c0_98] : memref<9x32x32xbf16, #tpu.memory_space<vmem>>, vector<1x32x32xbf16>
    %200 = vector.shape_cast %199 : vector<1x32x32xbf16> to vector<32x32xbf16>
    %201 = arith.truncf %198 : vector<32x256xf32> to vector<32x256xbf16>
    %cst_99 = arith.constant dense<0.000000e+00> : vector<32x256xf32>
    %202 = tpu.matmul %200, %201, %cst_99 {dimension_numbers = #tpu.dot_dimension_numbers<[1], [0], [0], [1], [0, 0, 1, 1], [], []>} : vector<32x32xbf16>, vector<32x256xbf16>, vector<32x256xf32> -> vector<32x256xf32>
    %203 = arith.addf %188, %202 : vector<32x256xf32>
    %c240_i32_100 = arith.constant 240 : i32
    %204 = tpu.dynamic_rotate %118 by %c240_i32_100 dim 1 : vector<32x256xf32>, i32 -> vector<32x256xf32>
    %c240_i32_101 = arith.constant 240 : i32
    %205 = vector.broadcast %c240_i32_101 : i32 to vector<1x256xi32>
    %206 = arith.cmpi slt, %0, %205 : vector<1x256xi32>
    %cst_102 = arith.constant 0.000000e+00 : f32
    %207 = vector.shape_cast %206 : vector<1x256xi1> to vector<1x256xi1>
    %208 = vector.broadcast %207 : vector<1x256xi1> to vector<32x256xi1>
    %209 = vector.broadcast %cst_102 : f32 to vector<32x256xf32>
    %210 = arith.select %208, %204, %209 : vector<32x256xi1>, vector<32x256xf32>
    %c7_103 = arith.constant 7 : index
    %c0_104 = arith.constant 0 : index
    %c0_105 = arith.constant 0 : index
    %211 = vector.load %arg3[%c7_103, %c0_104, %c0_105] : memref<9x32x32xbf16, #tpu.memory_space<vmem>>, vector<1x32x32xbf16>
    %212 = vector.shape_cast %211 : vector<1x32x32xbf16> to vector<32x32xbf16>
    %213 = arith.truncf %210 : vector<32x256xf32> to vector<32x256xbf16>
    %cst_106 = arith.constant dense<0.000000e+00> : vector<32x256xf32>
    %214 = tpu.matmul %212, %213, %cst_106 {dimension_numbers = #tpu.dot_dimension_numbers<[1], [0], [0], [1], [0, 0, 1, 1], [], []>} : vector<32x32xbf16>, vector<32x256xbf16>, vector<32x256xf32> -> vector<32x256xf32>
    %215 = arith.addf %203, %214 : vector<32x256xf32>
    %c239_i32_107 = arith.constant 239 : i32
    %216 = tpu.dynamic_rotate %118 by %c239_i32_107 dim 1 : vector<32x256xf32>, i32 -> vector<32x256xf32>
    %c240_i32_108 = arith.constant 240 : i32
    %217 = vector.broadcast %c240_i32_108 : i32 to vector<1x256xi32>
    %218 = arith.cmpi slt, %0, %217 : vector<1x256xi32>
    %c15_i32_109 = arith.constant 15 : i32
    %219 = vector.broadcast %c15_i32_109 : i32 to vector<1x256xi32>
    %220 = arith.cmpi slt, %2, %219 : vector<1x256xi32>
    %221 = arith.andi %218, %220 : vector<1x256xi1>
    %cst_110 = arith.constant 0.000000e+00 : f32
    %222 = vector.shape_cast %221 : vector<1x256xi1> to vector<1x256xi1>
    %223 = vector.broadcast %222 : vector<1x256xi1> to vector<32x256xi1>
    %224 = vector.broadcast %cst_110 : f32 to vector<32x256xf32>
    %225 = arith.select %223, %216, %224 : vector<32x256xi1>, vector<32x256xf32>
    %c8_111 = arith.constant 8 : index
    %c0_112 = arith.constant 0 : index
    %c0_113 = arith.constant 0 : index
    %226 = vector.load %arg3[%c8_111, %c0_112, %c0_113] : memref<9x32x32xbf16, #tpu.memory_space<vmem>>, vector<1x32x32xbf16>
    %227 = vector.shape_cast %226 : vector<1x32x32xbf16> to vector<32x32xbf16>
    %228 = arith.truncf %225 : vector<32x256xf32> to vector<32x256xbf16>
    %cst_114 = arith.constant dense<0.000000e+00> : vector<32x256xf32>
    %229 = tpu.matmul %227, %228, %cst_114 {dimension_numbers = #tpu.dot_dimension_numbers<[1], [0], [0], [1], [0, 0, 1, 1], [], []>} : vector<32x32xbf16>, vector<32x256xbf16>, vector<32x256xf32> -> vector<32x256xf32>
    %230 = arith.addf %215, %229 : vector<32x256xf32>
    %231 = arith.addf %230, %4 : vector<32x256xf32>
    %cst_115 = arith.constant 0.000000e+00 : f32
    %232 = vector.broadcast %cst_115 : f32 to vector<32x256xf32>
    %233 = arith.maximumf %231, %232 : vector<32x256xf32>
    %c17_i32_116 = arith.constant 17 : i32
    %234 = tpu.dynamic_rotate %233 by %c17_i32_116 dim 1 : vector<32x256xf32>, i32 -> vector<32x256xf32>
    %c16_i32_117 = arith.constant 16 : i32
    %235 = vector.broadcast %c16_i32_117 : i32 to vector<1x256xi32>
    %236 = arith.cmpi sge, %0, %235 : vector<1x256xi32>
    %c1_i32_118 = arith.constant 1 : i32
    %237 = vector.broadcast %c1_i32_118 : i32 to vector<1x256xi32>
    %238 = arith.cmpi sge, %2, %237 : vector<1x256xi32>
    %239 = arith.andi %236, %238 : vector<1x256xi1>
    %cst_119 = arith.constant 0.000000e+00 : f32
    %240 = vector.shape_cast %239 : vector<1x256xi1> to vector<1x256xi1>
    %241 = vector.broadcast %240 : vector<1x256xi1> to vector<32x256xi1>
    %242 = vector.broadcast %cst_119 : f32 to vector<32x256xf32>
    %243 = arith.select %241, %234, %242 : vector<32x256xi1>, vector<32x256xf32>
    %c0_120 = arith.constant 0 : index
    %c0_121 = arith.constant 0 : index
    %c0_122 = arith.constant 0 : index
    %244 = vector.load %arg4[%c0_120, %c0_121, %c0_122] : memref<9x16x32xbf16, #tpu.memory_space<vmem>>, vector<1x16x32xbf16>
    %245 = vector.shape_cast %244 : vector<1x16x32xbf16> to vector<16x32xbf16>
    %246 = arith.truncf %243 : vector<32x256xf32> to vector<32x256xbf16>
    %cst_123 = arith.constant dense<0.000000e+00> : vector<16x256xf32>
    %247 = tpu.matmul %245, %246, %cst_123 {dimension_numbers = #tpu.dot_dimension_numbers<[1], [0], [0], [1], [0, 0, 1, 1], [], []>} : vector<16x32xbf16>, vector<32x256xbf16>, vector<16x256xf32> -> vector<16x256xf32>
    %c16_i32_124 = arith.constant 16 : i32
    %248 = tpu.dynamic_rotate %233 by %c16_i32_124 dim 1 : vector<32x256xf32>, i32 -> vector<32x256xf32>
    %c16_i32_125 = arith.constant 16 : i32
    %249 = vector.broadcast %c16_i32_125 : i32 to vector<1x256xi32>
    %250 = arith.cmpi sge, %0, %249 : vector<1x256xi32>
    %cst_126 = arith.constant 0.000000e+00 : f32
    %251 = vector.shape_cast %250 : vector<1x256xi1> to vector<1x256xi1>
    %252 = vector.broadcast %251 : vector<1x256xi1> to vector<32x256xi1>
    %253 = vector.broadcast %cst_126 : f32 to vector<32x256xf32>
    %254 = arith.select %252, %248, %253 : vector<32x256xi1>, vector<32x256xf32>
    %c1_127 = arith.constant 1 : index
    %c0_128 = arith.constant 0 : index
    %c0_129 = arith.constant 0 : index
    %255 = vector.load %arg4[%c1_127, %c0_128, %c0_129] : memref<9x16x32xbf16, #tpu.memory_space<vmem>>, vector<1x16x32xbf16>
    %256 = vector.shape_cast %255 : vector<1x16x32xbf16> to vector<16x32xbf16>
    %257 = arith.truncf %254 : vector<32x256xf32> to vector<32x256xbf16>
    %cst_130 = arith.constant dense<0.000000e+00> : vector<16x256xf32>
    %258 = tpu.matmul %256, %257, %cst_130 {dimension_numbers = #tpu.dot_dimension_numbers<[1], [0], [0], [1], [0, 0, 1, 1], [], []>} : vector<16x32xbf16>, vector<32x256xbf16>, vector<16x256xf32> -> vector<16x256xf32>
    %259 = arith.addf %247, %258 : vector<16x256xf32>
    %c15_i32_131 = arith.constant 15 : i32
    %260 = tpu.dynamic_rotate %233 by %c15_i32_131 dim 1 : vector<32x256xf32>, i32 -> vector<32x256xf32>
    %c16_i32_132 = arith.constant 16 : i32
    %261 = vector.broadcast %c16_i32_132 : i32 to vector<1x256xi32>
    %262 = arith.cmpi sge, %0, %261 : vector<1x256xi32>
    %c15_i32_133 = arith.constant 15 : i32
    %263 = vector.broadcast %c15_i32_133 : i32 to vector<1x256xi32>
    %264 = arith.cmpi slt, %2, %263 : vector<1x256xi32>
    %265 = arith.andi %262, %264 : vector<1x256xi1>
    %cst_134 = arith.constant 0.000000e+00 : f32
    %266 = vector.shape_cast %265 : vector<1x256xi1> to vector<1x256xi1>
    %267 = vector.broadcast %266 : vector<1x256xi1> to vector<32x256xi1>
    %268 = vector.broadcast %cst_134 : f32 to vector<32x256xf32>
    %269 = arith.select %267, %260, %268 : vector<32x256xi1>, vector<32x256xf32>
    %c2_135 = arith.constant 2 : index
    %c0_136 = arith.constant 0 : index
    %c0_137 = arith.constant 0 : index
    %270 = vector.load %arg4[%c2_135, %c0_136, %c0_137] : memref<9x16x32xbf16, #tpu.memory_space<vmem>>, vector<1x16x32xbf16>
    %271 = vector.shape_cast %270 : vector<1x16x32xbf16> to vector<16x32xbf16>
    %272 = arith.truncf %269 : vector<32x256xf32> to vector<32x256xbf16>
    %cst_138 = arith.constant dense<0.000000e+00> : vector<16x256xf32>
    %273 = tpu.matmul %271, %272, %cst_138 {dimension_numbers = #tpu.dot_dimension_numbers<[1], [0], [0], [1], [0, 0, 1, 1], [], []>} : vector<16x32xbf16>, vector<32x256xbf16>, vector<16x256xf32> -> vector<16x256xf32>
    %274 = arith.addf %259, %273 : vector<16x256xf32>
    %c1_i32_139 = arith.constant 1 : i32
    %275 = tpu.dynamic_rotate %233 by %c1_i32_139 dim 1 : vector<32x256xf32>, i32 -> vector<32x256xf32>
    %c1_i32_140 = arith.constant 1 : i32
    %276 = vector.broadcast %c1_i32_140 : i32 to vector<1x256xi32>
    %277 = arith.cmpi sge, %2, %276 : vector<1x256xi32>
    %cst_141 = arith.constant 0.000000e+00 : f32
    %278 = vector.shape_cast %277 : vector<1x256xi1> to vector<1x256xi1>
    %279 = vector.broadcast %278 : vector<1x256xi1> to vector<32x256xi1>
    %280 = vector.broadcast %cst_141 : f32 to vector<32x256xf32>
    %281 = arith.select %279, %275, %280 : vector<32x256xi1>, vector<32x256xf32>
    %c3_142 = arith.constant 3 : index
    %c0_143 = arith.constant 0 : index
    %c0_144 = arith.constant 0 : index
    %282 = vector.load %arg4[%c3_142, %c0_143, %c0_144] : memref<9x16x32xbf16, #tpu.memory_space<vmem>>, vector<1x16x32xbf16>
    %283 = vector.shape_cast %282 : vector<1x16x32xbf16> to vector<16x32xbf16>
    %284 = arith.truncf %281 : vector<32x256xf32> to vector<32x256xbf16>
    %cst_145 = arith.constant dense<0.000000e+00> : vector<16x256xf32>
    %285 = tpu.matmul %283, %284, %cst_145 {dimension_numbers = #tpu.dot_dimension_numbers<[1], [0], [0], [1], [0, 0, 1, 1], [], []>} : vector<16x32xbf16>, vector<32x256xbf16>, vector<16x256xf32> -> vector<16x256xf32>
    %286 = arith.addf %274, %285 : vector<16x256xf32>
    %c4_146 = arith.constant 4 : index
    %c0_147 = arith.constant 0 : index
    %c0_148 = arith.constant 0 : index
    %287 = vector.load %arg4[%c4_146, %c0_147, %c0_148] : memref<9x16x32xbf16, #tpu.memory_space<vmem>>, vector<1x16x32xbf16>
    %288 = vector.shape_cast %287 : vector<1x16x32xbf16> to vector<16x32xbf16>
    %289 = arith.truncf %233 : vector<32x256xf32> to vector<32x256xbf16>
    %cst_149 = arith.constant dense<0.000000e+00> : vector<16x256xf32>
    %290 = tpu.matmul %288, %289, %cst_149 {dimension_numbers = #tpu.dot_dimension_numbers<[1], [0], [0], [1], [0, 0, 1, 1], [], []>} : vector<16x32xbf16>, vector<32x256xbf16>, vector<16x256xf32> -> vector<16x256xf32>
    %291 = arith.addf %286, %290 : vector<16x256xf32>
    %c255_i32_150 = arith.constant 255 : i32
    %292 = tpu.dynamic_rotate %233 by %c255_i32_150 dim 1 : vector<32x256xf32>, i32 -> vector<32x256xf32>
    %c15_i32_151 = arith.constant 15 : i32
    %293 = vector.broadcast %c15_i32_151 : i32 to vector<1x256xi32>
    %294 = arith.cmpi slt, %2, %293 : vector<1x256xi32>
    %cst_152 = arith.constant 0.000000e+00 : f32
    %295 = vector.shape_cast %294 : vector<1x256xi1> to vector<1x256xi1>
    %296 = vector.broadcast %295 : vector<1x256xi1> to vector<32x256xi1>
    %297 = vector.broadcast %cst_152 : f32 to vector<32x256xf32>
    %298 = arith.select %296, %292, %297 : vector<32x256xi1>, vector<32x256xf32>
    %c5_153 = arith.constant 5 : index
    %c0_154 = arith.constant 0 : index
    %c0_155 = arith.constant 0 : index
    %299 = vector.load %arg4[%c5_153, %c0_154, %c0_155] : memref<9x16x32xbf16, #tpu.memory_space<vmem>>, vector<1x16x32xbf16>
    %300 = vector.shape_cast %299 : vector<1x16x32xbf16> to vector<16x32xbf16>
    %301 = arith.truncf %298 : vector<32x256xf32> to vector<32x256xbf16>
    %cst_156 = arith.constant dense<0.000000e+00> : vector<16x256xf32>
    %302 = tpu.matmul %300, %301, %cst_156 {dimension_numbers = #tpu.dot_dimension_numbers<[1], [0], [0], [1], [0, 0, 1, 1], [], []>} : vector<16x32xbf16>, vector<32x256xbf16>, vector<16x256xf32> -> vector<16x256xf32>
    %303 = arith.addf %291, %302 : vector<16x256xf32>
    %c241_i32_157 = arith.constant 241 : i32
    %304 = tpu.dynamic_rotate %233 by %c241_i32_157 dim 1 : vector<32x256xf32>, i32 -> vector<32x256xf32>
    %c240_i32_158 = arith.constant 240 : i32
    %305 = vector.broadcast %c240_i32_158 : i32 to vector<1x256xi32>
    %306 = arith.cmpi slt, %0, %305 : vector<1x256xi32>
    %c1_i32_159 = arith.constant 1 : i32
    %307 = vector.broadcast %c1_i32_159 : i32 to vector<1x256xi32>
    %308 = arith.cmpi sge, %2, %307 : vector<1x256xi32>
    %309 = arith.andi %306, %308 : vector<1x256xi1>
    %cst_160 = arith.constant 0.000000e+00 : f32
    %310 = vector.shape_cast %309 : vector<1x256xi1> to vector<1x256xi1>
    %311 = vector.broadcast %310 : vector<1x256xi1> to vector<32x256xi1>
    %312 = vector.broadcast %cst_160 : f32 to vector<32x256xf32>
    %313 = arith.select %311, %304, %312 : vector<32x256xi1>, vector<32x256xf32>
    %c6_161 = arith.constant 6 : index
    %c0_162 = arith.constant 0 : index
    %c0_163 = arith.constant 0 : index
    %314 = vector.load %arg4[%c6_161, %c0_162, %c0_163] : memref<9x16x32xbf16, #tpu.memory_space<vmem>>, vector<1x16x32xbf16>
    %315 = vector.shape_cast %314 : vector<1x16x32xbf16> to vector<16x32xbf16>
    %316 = arith.truncf %313 : vector<32x256xf32> to vector<32x256xbf16>
    %cst_164 = arith.constant dense<0.000000e+00> : vector<16x256xf32>
    %317 = tpu.matmul %315, %316, %cst_164 {dimension_numbers = #tpu.dot_dimension_numbers<[1], [0], [0], [1], [0, 0, 1, 1], [], []>} : vector<16x32xbf16>, vector<32x256xbf16>, vector<16x256xf32> -> vector<16x256xf32>
    %318 = arith.addf %303, %317 : vector<16x256xf32>
    %c240_i32_165 = arith.constant 240 : i32
    %319 = tpu.dynamic_rotate %233 by %c240_i32_165 dim 1 : vector<32x256xf32>, i32 -> vector<32x256xf32>
    %c240_i32_166 = arith.constant 240 : i32
    %320 = vector.broadcast %c240_i32_166 : i32 to vector<1x256xi32>
    %321 = arith.cmpi slt, %0, %320 : vector<1x256xi32>
    %cst_167 = arith.constant 0.000000e+00 : f32
    %322 = vector.shape_cast %321 : vector<1x256xi1> to vector<1x256xi1>
    %323 = vector.broadcast %322 : vector<1x256xi1> to vector<32x256xi1>
    %324 = vector.broadcast %cst_167 : f32 to vector<32x256xf32>
    %325 = arith.select %323, %319, %324 : vector<32x256xi1>, vector<32x256xf32>
    %c7_168 = arith.constant 7 : index
    %c0_169 = arith.constant 0 : index
    %c0_170 = arith.constant 0 : index
    %326 = vector.load %arg4[%c7_168, %c0_169, %c0_170] : memref<9x16x32xbf16, #tpu.memory_space<vmem>>, vector<1x16x32xbf16>
    %327 = vector.shape_cast %326 : vector<1x16x32xbf16> to vector<16x32xbf16>
    %328 = arith.truncf %325 : vector<32x256xf32> to vector<32x256xbf16>
    %cst_171 = arith.constant dense<0.000000e+00> : vector<16x256xf32>
    %329 = tpu.matmul %327, %328, %cst_171 {dimension_numbers = #tpu.dot_dimension_numbers<[1], [0], [0], [1], [0, 0, 1, 1], [], []>} : vector<16x32xbf16>, vector<32x256xbf16>, vector<16x256xf32> -> vector<16x256xf32>
    %330 = arith.addf %318, %329 : vector<16x256xf32>
    %c239_i32_172 = arith.constant 239 : i32
    %331 = tpu.dynamic_rotate %233 by %c239_i32_172 dim 1 : vector<32x256xf32>, i32 -> vector<32x256xf32>
    %c240_i32_173 = arith.constant 240 : i32
    %332 = vector.broadcast %c240_i32_173 : i32 to vector<1x256xi32>
    %333 = arith.cmpi slt, %0, %332 : vector<1x256xi32>
    %c15_i32_174 = arith.constant 15 : i32
    %334 = vector.broadcast %c15_i32_174 : i32 to vector<1x256xi32>
    %335 = arith.cmpi slt, %2, %334 : vector<1x256xi32>
    %336 = arith.andi %333, %335 : vector<1x256xi1>
    %cst_175 = arith.constant 0.000000e+00 : f32
    %337 = vector.shape_cast %336 : vector<1x256xi1> to vector<1x256xi1>
    %338 = vector.broadcast %337 : vector<1x256xi1> to vector<32x256xi1>
    %339 = vector.broadcast %cst_175 : f32 to vector<32x256xf32>
    %340 = arith.select %338, %331, %339 : vector<32x256xi1>, vector<32x256xf32>
    %c8_176 = arith.constant 8 : index
    %c0_177 = arith.constant 0 : index
    %c0_178 = arith.constant 0 : index
    %341 = vector.load %arg4[%c8_176, %c0_177, %c0_178] : memref<9x16x32xbf16, #tpu.memory_space<vmem>>, vector<1x16x32xbf16>
    %342 = vector.shape_cast %341 : vector<1x16x32xbf16> to vector<16x32xbf16>
    %343 = arith.truncf %340 : vector<32x256xf32> to vector<32x256xbf16>
    %cst_179 = arith.constant dense<0.000000e+00> : vector<16x256xf32>
    %344 = tpu.matmul %342, %343, %cst_179 {dimension_numbers = #tpu.dot_dimension_numbers<[1], [0], [0], [1], [0, 0, 1, 1], [], []>} : vector<16x32xbf16>, vector<32x256xbf16>, vector<16x256xf32> -> vector<16x256xf32>
    %345 = arith.addf %330, %344 : vector<16x256xf32>
    %c0_180 = arith.constant 0 : index
    %c0_181 = arith.constant 0 : index
    %346 = vector.load %arg8[%c0_180, %c0_181] : memref<16x2xf32, #tpu.memory_space<vmem>>, vector<16x1xf32>
    %c0_182 = arith.constant 0 : index
    %c1_183 = arith.constant 1 : index
    %347 = vector.load %arg8[%c0_182, %c1_183] : memref<16x2xf32, #tpu.memory_space<vmem>>, vector<16x1xf32>
    %cst_184 = arith.constant dense<0.000000e+00> : vector<16xf32>
    %348 = vector.multi_reduction <add>, %345, %cst_184 [1] : vector<16x256xf32> to vector<16xf32>
    %349 = vector.shape_cast %348 : vector<16xf32> to vector<16x1xf32>
    %350 = arith.mulf %345, %345 : vector<16x256xf32>
    %cst_185 = arith.constant dense<0.000000e+00> : vector<16xf32>
    %351 = vector.multi_reduction <add>, %350, %cst_185 [1] : vector<16x256xf32> to vector<16xf32>
    %352 = vector.shape_cast %351 : vector<16xf32> to vector<16x1xf32>
    %cst_186 = arith.constant 3.906250e-03 : f32
    %353 = vector.broadcast %cst_186 : f32 to vector<16x1xf32>
    %354 = arith.mulf %349, %353 : vector<16x1xf32>
    %cst_187 = arith.constant 3.906250e-03 : f32
    %355 = vector.broadcast %cst_187 : f32 to vector<16x1xf32>
    %356 = arith.mulf %352, %355 : vector<16x1xf32>
    %357 = arith.mulf %354, %354 : vector<16x1xf32>
    %358 = arith.subf %356, %357 : vector<16x1xf32>
    %cst_188 = arith.constant 9.99999974E-6 : f32
    %359 = vector.broadcast %cst_188 : f32 to vector<16x1xf32>
    %360 = arith.addf %358, %359 : vector<16x1xf32>
    %361 = math.rsqrt %360 : vector<16x1xf32>
    %362 = arith.mulf %346, %361 : vector<16x1xf32>
    %363 = arith.mulf %354, %362 : vector<16x1xf32>
    %364 = arith.subf %347, %363 : vector<16x1xf32>
    %365 = vector.broadcast %362 : vector<16x1xf32> to vector<16x256xf32>
    %366 = arith.mulf %345, %365 : vector<16x256xf32>
    %367 = vector.broadcast %364 : vector<16x1xf32> to vector<16x256xf32>
    %368 = arith.addf %366, %367 : vector<16x256xf32>
    %cst_189 = arith.constant 0.000000e+00 : f32
    %369 = vector.broadcast %cst_189 : f32 to vector<16x256xf32>
    %370 = arith.maximumf %368, %369 : vector<16x256xf32>
    %c0_190 = arith.constant 0 : index
    %c0_191 = arith.constant 0 : index
    %371 = vector.load %arg5[%c0_190, %c0_191] : memref<32x16xbf16, #tpu.memory_space<vmem>>, vector<32x16xbf16>
    %372 = arith.truncf %370 : vector<16x256xf32> to vector<16x256xbf16>
    %cst_192 = arith.constant dense<0.000000e+00> : vector<32x256xf32>
    %373 = tpu.matmul %371, %372, %cst_192 {dimension_numbers = #tpu.dot_dimension_numbers<[1], [0], [0], [1], [0, 0, 1, 1], [], []>} : vector<32x16xbf16>, vector<16x256xbf16>, vector<32x256xf32> -> vector<32x256xf32>
    %c0_193 = arith.constant 0 : index
    %c0_194 = arith.constant 0 : index
    %374 = vector.load %arg9[%c0_193, %c0_194] : memref<32x3xf32, #tpu.memory_space<vmem>>, vector<32x1xf32>
    %c0_195 = arith.constant 0 : index
    %c1_196 = arith.constant 1 : index
    %375 = vector.load %arg9[%c0_195, %c1_196] : memref<32x3xf32, #tpu.memory_space<vmem>>, vector<32x1xf32>
    %cst_197 = arith.constant dense<0.000000e+00> : vector<32xf32>
    %376 = vector.multi_reduction <add>, %373, %cst_197 [1] : vector<32x256xf32> to vector<32xf32>
    %377 = vector.shape_cast %376 : vector<32xf32> to vector<32x1xf32>
    %378 = arith.mulf %373, %373 : vector<32x256xf32>
    %cst_198 = arith.constant dense<0.000000e+00> : vector<32xf32>
    %379 = vector.multi_reduction <add>, %378, %cst_198 [1] : vector<32x256xf32> to vector<32xf32>
    %380 = vector.shape_cast %379 : vector<32xf32> to vector<32x1xf32>
    %c0_199 = arith.constant 0 : index
    %c0_200 = arith.constant 0 : index
    %381 = vector.load %arg7[%c0_199, %c0_200] : memref<32x32xf32, #tpu.memory_space<vmem>>, vector<32x32xf32>
    %382 = tpu.concatenate %377, %380 in 1 : vector<32x1xf32>, vector<32x1xf32> -> vector<32x2xf32>
    %cst_201 = arith.constant dense<0.000000e+00> : vector<32x2xf32>
    %383 = tpu.matmul %381, %382, %cst_201 {dimension_numbers = #tpu.dot_dimension_numbers<[1], [0], [0], [1], [0, 0, 1, 1], [], []>} : vector<32x32xf32>, vector<32x2xf32>, vector<32x2xf32> -> vector<32x2xf32>
    %384 = vector.extract_strided_slice %383 {offsets = [0, 0], sizes = [32, 1], strides = [1, 1]} : vector<32x2xf32> to vector<32x1xf32>
    %385 = vector.extract_strided_slice %383 {offsets = [0, 1], sizes = [32, 1], strides = [1, 1]} : vector<32x2xf32> to vector<32x1xf32>
    %cst_202 = arith.constant 0.001953125 : f32
    %386 = vector.broadcast %cst_202 : f32 to vector<32x1xf32>
    %387 = arith.mulf %384, %386 : vector<32x1xf32>
    %cst_203 = arith.constant 0.001953125 : f32
    %388 = vector.broadcast %cst_203 : f32 to vector<32x1xf32>
    %389 = arith.mulf %385, %388 : vector<32x1xf32>
    %390 = arith.mulf %387, %387 : vector<32x1xf32>
    %391 = arith.subf %389, %390 : vector<32x1xf32>
    %cst_204 = arith.constant 9.99999974E-6 : f32
    %392 = vector.broadcast %cst_204 : f32 to vector<32x1xf32>
    %393 = arith.addf %391, %392 : vector<32x1xf32>
    %394 = math.rsqrt %393 : vector<32x1xf32>
    %395 = arith.mulf %374, %394 : vector<32x1xf32>
    %396 = arith.mulf %387, %395 : vector<32x1xf32>
    %397 = arith.subf %375, %396 : vector<32x1xf32>
    %398 = vector.broadcast %395 : vector<32x1xf32> to vector<32x256xf32>
    %399 = arith.mulf %373, %398 : vector<32x256xf32>
    %400 = vector.broadcast %397 : vector<32x1xf32> to vector<32x256xf32>
    %401 = arith.addf %399, %400 : vector<32x256xf32>
    %cst_205 = arith.constant 0.000000e+00 : f32
    %402 = vector.broadcast %cst_205 : f32 to vector<32x256xf32>
    %403 = arith.maximumf %401, %402 : vector<32x256xf32>
    %c0_206 = arith.constant 0 : index
    %c2_207 = arith.constant 2 : index
    %404 = vector.load %arg9[%c0_206, %c2_207] : memref<32x3xf32, #tpu.memory_space<vmem>>, vector<32x1xf32>
    %405 = vector.broadcast %404 : vector<32x1xf32> to vector<32x256xf32>
    %406 = arith.mulf %403, %405 : vector<32x256xf32>
    %407 = arith.addf %233, %406 : vector<32x256xf32>
    %c0_208 = arith.constant 0 : index
    %c0_209 = arith.constant 0 : index
    %c0_210 = arith.constant 0 : index
    %408 = vector.load %arg10[%c0_208, %c0_209, %c0_210] : memref<1x32x256xf32, #tpu.memory_space<vmem>>, vector<1x32x256xf32>
    %409 = vector.shape_cast %408 : vector<1x32x256xf32> to vector<32x256xf32>
    %410 = vector.shape_cast %407 : vector<32x256xf32> to vector<1x32x256xf32>
    tpu.vector_store %arg10[%c0_208, %c0_209, %c0_210], %410 {strides = array<i32>} : memref<1x32x256xf32, #tpu.memory_space<vmem>>, vector<1x32x256xf32>,
    return
  }
  func.func @transform_0(%arg0: i32) -> (i32, i32, i32) {
    %c0_i32 = arith.constant 0 : i32
    %c0_i32_0 = arith.constant 0 : i32
    %c0_i32_1 = arith.constant 0 : i32
    return %arg0, %c0_i32, %c0_i32_0 : i32, i32, i32
  }
  func.func @transform_1(%arg0: i32) -> (i32, i32, i32) {
    %c0_i32 = arith.constant 0 : i32
    %c0_i32_0 = arith.constant 0 : i32
    %c0_i32_1 = arith.constant 0 : i32
    %c0_i32_2 = arith.constant 0 : i32
    return %c0_i32, %c0_i32_0, %c0_i32_1 : i32, i32, i32
  }
  func.func @transform_2(%arg0: i32) -> (i32, i32, i32) {
    %c0_i32 = arith.constant 0 : i32
    %c0_i32_0 = arith.constant 0 : i32
    %c0_i32_1 = arith.constant 0 : i32
    %c0_i32_2 = arith.constant 0 : i32
    return %c0_i32, %c0_i32_0, %c0_i32_1 : i32, i32, i32
  }
  func.func @transform_3(%arg0: i32) -> (i32, i32, i32) {
    %c0_i32 = arith.constant 0 : i32
    %c0_i32_0 = arith.constant 0 : i32
    %c0_i32_1 = arith.constant 0 : i32
    %c0_i32_2 = arith.constant 0 : i32
    return %c0_i32, %c0_i32_0, %c0_i32_1 : i32, i32, i32
  }
  func.func @transform_4(%arg0: i32) -> (i32, i32) {
    %c0_i32 = arith.constant 0 : i32
    %c0_i32_0 = arith.constant 0 : i32
    %c0_i32_1 = arith.constant 0 : i32
    return %c0_i32, %c0_i32_0 : i32, i32
  }
  func.func @transform_5(%arg0: i32) -> (i32, i32) {
    %c0_i32 = arith.constant 0 : i32
    %c0_i32_0 = arith.constant 0 : i32
    %c0_i32_1 = arith.constant 0 : i32
    return %c0_i32, %c0_i32_0 : i32, i32
  }
  func.func @transform_6(%arg0: i32) -> (i32, i32) {
    %c0_i32 = arith.constant 0 : i32
    %c0_i32_0 = arith.constant 0 : i32
    %c0_i32_1 = arith.constant 0 : i32
    return %c0_i32, %c0_i32_0 : i32, i32
  }
  func.func @transform_7(%arg0: i32) -> (i32, i32) {
    %c0_i32 = arith.constant 0 : i32
    %c0_i32_0 = arith.constant 0 : i32
    %c0_i32_1 = arith.constant 0 : i32
    return %c0_i32, %c0_i32_0 : i32, i32
  }
  func.func @transform_8(%arg0: i32) -> (i32, i32) {
    %c0_i32 = arith.constant 0 : i32
    %c0_i32_0 = arith.constant 0 : i32
    %c0_i32_1 = arith.constant 0 : i32
    return %c0_i32, %c0_i32_0 : i32, i32
  }
  func.func @transform_9(%arg0: i32) -> (i32, i32, i32) {
    %c0_i32 = arith.constant 0 : i32
    %c0_i32_0 = arith.constant 0 : i32
    %c0_i32_1 = arith.constant 0 : i32
    return %arg0, %c0_i32, %c0_i32_0 : i32, i32, i32
  }
}

</mosaic_0001>

<bundles_post_ra>
// kernel: sequential_block_adapter.1
= control target key start
LH: loop header
LB: loop body
LE: loop exit
PB: predicated region body
PF: predicated region fallthrough
CT: control target
= control target key end

     0   :  { %s4655_s30 = smov 0   ;;  %s6168_s0 = inlined_call_operand.vmem [shape: f32[2,32,256], index: 0, kind: input, shape index: {}]   ;;  %s6169_s1 = inlined_call_operand.vmem [shape: bf16[9,32,32], index: 1, kind: input, shape index: {}]   ;;  %s6170_s2 = inlined_call_operand.vmem [shape: bf16[9,32,32], index: 2, kind: input, shape index: {}]   ;;  %s6171_s3 = inlined_call_operand.vmem [shape: bf16[9,16,32], index: 3, kind: input, shape index: {}]   ;;  %s6172_s4 = inlined_call_operand.vmem [shape: bf16[32,16], index: 4, kind: input, shape index: {}]   ;;  %s6173_s5 = inlined_call_operand.vmem [shape: f32[16,16], index: 5, kind: input, shape index: {}]   ;;  %s6174_s6 = inlined_call_operand.vmem [shape: f32[32,32], index: 6, kind: input, shape index: {}]   ;;  %s6175_s7 = inlined_call_operand.vmem [shape: f32[16,2], index: 7, kind: input, shape index: {}]   ;;  %s6176_s8 = inlined_call_operand.vmem [shape: f32[32,3], index: 8, kind: input, shape index: {}]   ;;  %s6177_s9 = inlined_call_operand.vmem [shape: f32[2,32,256], index: 9, kind: output, shape index: {}]  }
   0x1 LB: > { %s3374_s5 = sadd.s32 4294967295, %s4592_s30   ;;  %p3378_p0 = scmp.ge.s32.totalorder %s4592_s30, 1  ;;  %s4592_s30 = sphi %s4655_s30, %s19_s30  }
   0x2   : > { %p287_p1 = scmp.lt.s32.totalorder %s4592_s30, 3 }
   0x4   : > { %p288_p2 = pnand %p3378_p0, %p287_p1 }
   0x6   : > { %291 = sbr.rel (%p288_p2) target bundleno = 2507 (0x9cb), region = 56 }
   0xb   : > { %p323_p3 = scmp.lt.s32.totalorder %s3374_s5, 1  ;;  %s4594_s14 = smov 16   ;;  %v334_v13 = vlaneseq  ;;  %v6209_v47 = vmov 0  ;;  %v4822_v60 = vld [vmem:[%s6169_s1 + $0x10] sm:$0xff]  ;;  %vm6186_vm9 = vcmask 261120   ;;  %v4827_v61 = vld [vmem:[%s6169_s1 + $0x18] sm:$0xff] }
   0xc   : > { %s4595_s15 = smov 17   ;;  %s4596_s16 = smov 15   ;;  %v4006_v21 = vld [vmem:[%s6169_s1 + $0x8] sm:$0xff]  ;;  %v6229_v30 = vmov 0 }
   0xd   : > { %s6409_s5 = smov (!%p323_p3, %s3374_s5), 1  ;;  %s4597_s17 = smov 1   ;;  %v4744_v14 = vand.u32 127, %v334_v13 }
   0xe   : > { %s4003_s10 = sshll.u32 %s6409_s5, 6  ;;  %s4598_s18 = smov 127  }
   0xf   : > { %s4671_s13 = scalar_lea.vmem %s6168_s0, %s4003_s10  ;;  %s4599_s19 = smov 113   ;;  %v337_v17 = vand.u32 15, %v4744_v14  ;;  %vm6180_vm0 = vcmp.lt.s32.totalorder %v4744_v14, 17  ;;  %vm372_vm1 = vcmp.ge.s32.totalorder %v4744_v14, 16  ;;  %v4768_v26 = vadd.s32 128, %v4744_v14 }
  0x10   : > { %v4674_v0 = vld [vmem:[%s4671_s13 + $0x20] sm:$0xff]  ;;  %v4677_v1 = vld [vmem:[%s4671_s13 + $0x30] sm:$0xff]  ;;  %v4696_v6 = vld [vmem:[%s4671_s13 + $0x28] sm:$0xff]  ;;  %s4600_s20 = smov 112   ;;  %s4601_s21 = smov 111   ;;  %vm6184_vm7 = vcmp.lt.s32.totalorder %v4744_v14, 16 }
  0x11   : > { %v4680_v2 = vld [vmem:[%s4671_s13] sm:$0xff]  ;;  %v4073_v3 = vpack.i.bf16 %v4677_v1, %v4674_v0  ;;  %v4685_v4 = vld [vmem:[%s4671_s13 + $0x10] sm:$0xff]  ;;  %v4699_v7 = vld [vmem:[%s4671_s13 + $0x38] sm:$0xff]  ;;  %vm4751_vm2 = vcmp.ge.s32.totalorder %v337_v17, 1  ;;  %v338_v27 = vand.u32 15, %v4768_v26  ;;  %vm4839_vm10 = vcmp.lt.s32.totalorder %v337_v17, 15  ;;  %s6141_s25 = scalar_lea.vmem %s6177_s9, %s4003_s10 }
  0x12   : > { %v4689_v5 = vpack.i.bf16 %v4685_v4, %v4680_v2  ;;  %v4702_v8 = vld [vmem:[%s4671_s13 + $0x8] sm:$0xff]  ;;  %v4705_v9 = vld [vmem:[%s4671_s13 + $0x18] sm:$0xff]  ;;  %v4078_v10 = vpack.i.bf16 %v4699_v7, %v4696_v6  ;;  %vm376_vm3 = vmand %vm372_vm1, %vm4751_vm2  ;;  %vm6181_vm12 = vcmp.lt.s32.totalorder %v4744_v14, 15 }
  0x13   : > { %4074 = vrot.lane.b32.xlu0 %v4073_v3, %s4594_s14  ;;  %4094 = vrot.lane.b32.xlu2 %v4073_v3, %s4595_s15  ;;  %v4088_v11 = vpack.i.bf16 %v4705_v9, %v4702_v8  ;;  %vm4763_vm4 = vmpackc.low %vm376_vm3, %vm376_vm3  ;;  %vm4781_vm5 = vcmp.ge.s32.totalorder %v338_v27, 1  ;;  %vm4874_vm14 = vcmp.lt.s32.totalorder %v338_v27, 15  ;;  %v6217_v27 = vmov 0 }
  0x14   : > { %4084 = vrot.lane.b32.xlu1 %v4689_v5, %s4594_s14  ;;  %vm4788_vm6 = vmpackc.low %vm4781_vm5, %vm4781_vm5 }
  0x15   : > { %vm4803_vm8 = vmpackc.low %vm372_vm1, %vm372_vm1 }
  0x16   : > { %v6210_v47 = vsel %vm4803_vm8, 4294967295, %v6209_v47  ;;  %vm580_vm11 = vmand %vm372_vm1, %vm4839_vm10  ;;  %vm6179_vm1 = vcmp.lt.s32.totalorder %v4744_v14, 1 }
  0x17   : > { %vm4868_vm13 = vmpackc.low %vm580_vm11, %vm580_vm11 }
  0x18   : > { %vm4890_vm15 = vmpackc.low %vm4874_vm14, %vm4874_vm14 }
  0x19   : > { %v6218_v27 = vsel %vm4890_vm15, 4294967295, %v6217_v27  ;;  %vm4923_vm3 = vmpackc.low %vm4751_vm2, %vm4751_vm2  ;;  %vm6178_vm2 = vcmp.lt.s32.totalorder %v4744_v14, 127 }
  0x1a   : > { %6219 = vst [vmem:[#allocation2_spill] sm:$0xff] %v6218_v27  ;;  %vm4960_vm11 = vmpackc.low %vm4839_vm10, %vm4839_vm10  ;;  %vm6182_vm10 = vcmp.lt.s32.totalorder %v4744_v14, 113 }
  0x1b   : > { %4079 = vrot.lane.b32.xlu0 %v4078_v10, %s4594_s14  ;;  %4099 = vrot.lane.b32.xlu2 %v4078_v10, %s4595_s15 }
  0x1c   : > { %4089 = vrot.lane.b32.xlu1 %v4088_v11, %s4594_s14 }
  0x23   : > { %4104 = vrot.lane.b32.xlu0 %v4689_v5, %s4595_s15  ;;  %4114 = vrot.lane.b32.xlu2 %v4073_v3, %s4596_s16 }
  0x24   : > { %4109 = vrot.lane.b32.xlu1 %v4088_v11, %s4595_s15 }
  0x2b   : > { %4119 = vrot.lane.b32.xlu0 %v4078_v10, %s4596_s16  ;;  %4129 = vrot.lane.b32.xlu2 %v4088_v11, %s4596_s16 }
  0x2c   : > { %4124 = vrot.lane.b32.xlu1 %v4689_v5, %s4596_s16 }
  0x33   : > { %4134 = vrot.lane.b32.xlu0 %v4073_v3, %s4597_s17  ;;  %4144 = vrot.lane.b32.xlu2 %v4689_v5, %s4597_s17 }
  0x34   : > { %4139 = vrot.lane.b32.xlu1 %v4078_v10, %s4597_s17 }
  0x3b   : > { %4149 = vrot.lane.b32.xlu0 %v4088_v11, %s4597_s17  ;;  %4159 = vrot.lane.b32.xlu2 %v4078_v10, %s4598_s18 }
  0x3c   : > { %4154 = vrot.lane.b32.xlu1 %v4073_v3, %s4598_s18 }
  0x43   : > { %4164 = vrot.lane.b32.xlu0 %v4689_v5, %s4598_s18  ;;  %4174 = vrot.lane.b32.xlu2 %v4073_v3, %s4599_s19 }
  0x44   : > { %4169 = vrot.lane.b32.xlu1 %v4088_v11, %s4598_s18 }
  0x4b   : > { %4179 = vrot.lane.b32.xlu0 %v4078_v10, %s4599_s19  ;;  %4189 = vrot.lane.b32.xlu2 %v4088_v11, %s4599_s19 }
  0x4c   : > { %4184 = vrot.lane.b32.xlu1 %v4689_v5, %s4599_s19 }
  0x53   : > { %4194 = vrot.lane.b32.xlu0 %v4073_v3, %s4600_s20  ;;  %4204 = vrot.lane.b32.xlu2 %v4689_v5, %s4600_s20 }
  0x54   : > { %4199 = vrot.lane.b32.xlu1 %v4078_v10, %s4600_s20 }
  0x5b   : > { %4209 = vrot.lane.b32.xlu0 %v4088_v11, %s4600_s20  ;;  %4219 = vrot.lane.b32.xlu2 %v4078_v10, %s4601_s21 }
  0x5c   : > { %4214 = vrot.lane.b32.xlu1 %v4073_v3, %s4601_s21 }
  0x63   : > { %4224 = vrot.lane.b32.xlu0 %v4689_v5, %s4601_s21 }
  0x64   : > { %4229 = vrot.lane.b32.xlu1 %v4088_v11, %s4601_s21 }
  0x6d   : > { %v4095_v12 = vpop.permute.xlu2 %4094 }
  0x6e   : > { %v4097_v15 = vunpack.i.h.bf16 %v4095_v12  ;;  %v4096_v16 = vunpack.i.l.bf16 %v4095_v12 }
  0x75   : > { %v4100_v18 = vpop.permute.xlu2 %4099 }
  0x76   : > { %v4102_v19 = vunpack.i.h.bf16 %v4100_v18  ;;  %v4101_v20 = vunpack.i.l.bf16 %v4100_v18 }
  0x78   : > { %v370_v22 = vsel %vm6180_vm0, %v4101_v20, %v4096_v16  ;;  %v371_v23 = vsel %vm6180_vm0, %v4102_v19, %v4097_v15  ;;  %v366_v28 = vsel %vm6180_vm0, %v4096_v16, %v4101_v20  ;;  %v367_v29 = vsel %vm6180_vm0, %v4097_v15, %v4102_v19  ;;  %v4005_v19 = vld [vmem:[%s6169_s1] sm:$0xff] }
  0x79   : > { %v3414_v25 = vpack.c.bf16 %v371_v23, %v370_v22  ;;  %v3422_v31 = vpack.c.bf16 %v367_v29, %v366_v28 }
  0x7b   : > { %3415 = vmatpush.bf16.msk.msra.mxu2 %vm4763_vm4, %v3414_v25  ;;  %3423 = vmatpush.bf16.msk.msra.mxu3 %vm4788_vm6, %v3422_v31 }
  0x7d   : > { %v4115_v49 = vpop.permute.xlu2 %4114 }
  0x7e   : > { %v4117_v22 = vunpack.i.h.bf16 %v4115_v49  ;;  %v4116_v23 = vunpack.i.l.bf16 %v4115_v49 }
  0x85   : > { %v4075_v33 = vpop.permute.xlu0 %4074  ;;  %v4130_v20 = vpop.permute.xlu2 %4129 }
  0x86   : > { %v4085_v34 = vpop.permute.xlu1 %4084  ;;  %v4077_v36 = vunpack.i.h.bf16 %v4075_v33  ;;  %v4076_v37 = vunpack.i.l.bf16 %v4075_v33  ;;  %v4132_v31 = vunpack.i.h.bf16 %v4130_v20  ;;  %v4131_v33 = vunpack.i.l.bf16 %v4130_v20 }
  0x87   : > { %v4087_v43 = vunpack.i.h.bf16 %v4085_v34  ;;  %v4086_v44 = vunpack.i.l.bf16 %v4085_v34 }
  0x8d   : > { %v4080_v35 = vpop.permute.xlu0 %4079 }
  0x8e   : > { %v4082_v38 = vunpack.i.h.bf16 %v4080_v35  ;;  %v4081_v39 = vunpack.i.l.bf16 %v4080_v35  ;;  %v4090_v40 = vpop.permute.xlu1 %4089 }
  0x8f   : > { %v4092_v41 = vunpack.i.h.bf16 %v4090_v40  ;;  %v4091_v42 = vunpack.i.l.bf16 %v4090_v40 }
  0x90   : > { %v421_v45 = vsel %vm6184_vm7, %v4081_v39, %v4076_v37  ;;  %v422_v46 = vsel %vm6184_vm7, %v4082_v38, %v4077_v36  ;;  %v417_v52 = vsel %vm6184_vm7, %v4076_v37, %v4081_v39  ;;  %v418_v53 = vsel %vm6184_vm7, %v4077_v36, %v4082_v38  ;;  %v4021_v38 = vld [vmem:[%s6169_s1 + $0x80] sm:$0xff] }
  0x91   : > { %v3396_v48 = vpack.c.bf16 %v422_v46, %v421_v45  ;;  %v419_v50 = vsel %vm6184_vm7, %v4091_v42, %v4086_v44  ;;  %v420_v51 = vsel %vm6184_vm7, %v4092_v41, %v4087_v43  ;;  %v443_v59 = vpack.c.bf16 %v418_v53, %v417_v52 }
  0x92   : > { %v3399_v55 = vpack.c.bf16 %v420_v51, %v419_v50  ;;  %v415_v3 = vsel %vm6184_vm7, %v4086_v44, %v4091_v42  ;;  %v416_v5 = vsel %vm6184_vm7, %v4087_v43, %v4092_v41  ;;  %v780_v52 = vpack.c.bf16 %v4677_v1, %v4674_v0 }
  0x93   : > { %3397 = vmatpush.bf16.msk.msra.mxu0 %vm4803_vm8, %v3396_v48  ;;  %4052 = vmatpush.bf16.msk.msra.mxu1 %vm4803_vm8, %v3396_v48  ;;  %v441_v17 = vpack.c.bf16 %v416_v5, %v415_v3  ;;  %v778_v0 = vpack.c.bf16 %v4685_v4, %v4680_v2  ;;  %v6220_v1 = vmov 0 }
  0x94   : > { %v6221_v1 = vsel %vm4923_vm3, 4294967295, %v6220_v1 }
  0x95   : > { %v4105_v54 = vpop.permute.xlu0 %4104  ;;  %6222 = vst [vmem:[#allocation3_spill] sm:$0xff] %v6221_v1 }
  0x96   : > { %v4107_v56 = vunpack.i.h.bf16 %v4105_v54  ;;  %v4106_v57 = vunpack.i.l.bf16 %v4105_v54  ;;  %v4110_v58 = vpop.permute.xlu1 %4109  ;;  %v4912_v54 = vld [vmem:[%s6169_s1 + $0x20] sm:$0xff] }
  0x97   : > { %v4112_v62 = vunpack.i.h.bf16 %v4110_v58  ;;  %v4111_v63 = vunpack.i.l.bf16 %v4110_v58  ;;  %3400 = vmatpush.bf16.msk.msra.mxu0 %vm4803_vm8, %v3399_v55  ;;  %4053 = vmatpush.bf16.msk.msra.mxu1 %vm4803_vm8, %v3399_v55 }
  0x99   : > { %v368_v11 = vsel %vm6180_vm0, %v4111_v63, %v4106_v57  ;;  %v369_v12 = vsel %vm6180_vm0, %v4112_v62, %v4107_v56  ;;  %v364_v13 = vsel %vm6180_vm0, %v4106_v57, %v4111_v63  ;;  %v365_v15 = vsel %vm6180_vm0, %v4107_v56, %v4112_v62  ;;  %v4145_v62 = vpop.permute.xlu2 %4144 }
  0x9a   : > { %3401 = vmatmul.msk.bf16.vlgmr.msra.gmra.mxu0 %vm6186_vm9, %v4822_v60  ;;  %3402 = vmatmul.msk.bf16.vlgmr.msra.gmra.mxu1 %vm6186_vm9, %v4827_v61  ;;  %v3417_v16 = vpack.c.bf16 %v369_v12, %v368_v11  ;;  %v3425_v18 = vpack.c.bf16 %v365_v15, %v364_v13  ;;  %v4147_v12 = vunpack.i.h.bf16 %v4145_v62  ;;  %v4146_v13 = vunpack.i.l.bf16 %v4145_v62 }
  0x9b   : > { %486 = vmatpush.bf16.msrb.mxu1 %v443_v59  ;;  %vm978_vm0 = vcmp.lt.s32.totalorder %v4768_v26, 240  ;;  %v4020_v26 = vld [vmem:[%s6169_s1 + $0x78] sm:$0xff] }
  0x9c   : > { %3418 = vmatpush.bf16.msk.msra.mxu2 %vm4763_vm4, %v3417_v16  ;;  %3426 = vmatpush.bf16.msk.msra.mxu3 %vm4788_vm6, %v3425_v18 }
  0x9d   : > { %v4120_v25 = vpop.permute.xlu0 %4119 }
  0x9e   : > { %v4122_v28 = vunpack.i.h.bf16 %v4120_v25  ;;  %v4121_v29 = vunpack.i.l.bf16 %v4120_v25  ;;  %v4125_v34 = vpop.permute.xlu1 %4124 }
  0x9f   : > { %487 = vmatpush.bf16.msrb.mxu1 %v441_v17  ;;  %3419 = vmatmul.msk.bf16.vlgmr.msra.gmra.mxu2 %vm6186_vm9, %v4005_v19  ;;  %v4127_v35 = vunpack.i.h.bf16 %v4125_v34  ;;  %v4126_v36 = vunpack.i.l.bf16 %v4125_v34 }
  0xa0   : > { %v573_v39 = vsel %vm6181_vm12, %v4117_v22, %v4122_v28  ;;  %v572_v40 = vsel %vm6181_vm12, %v4116_v23, %v4121_v29  ;;  %v576_v41 = vsel %vm6181_vm12, %v4121_v29, %v4116_v23  ;;  %v577_v42 = vsel %vm6181_vm12, %v4122_v28, %v4117_v22  ;;  %3427 = vmatmul.msk.bf16.vlgmr.msra.gmra.mxu3 %vm6186_vm9, %v4005_v19 }
  0xa1   : > { %v3450_v43 = vpack.c.bf16 %v573_v39, %v572_v40  ;;  %v571_v44 = vsel %vm6181_vm12, %v4127_v35, %v4132_v31  ;;  %v570_v45 = vsel %vm6181_vm12, %v4126_v36, %v4131_v33  ;;  %v3442_v46 = vpack.c.bf16 %v577_v42, %v576_v41  ;;  %v4160_v20 = vpop.permute.xlu2 %4159 }
  0xa2   : > { %v574_v48 = vsel %vm6181_vm12, %v4131_v33, %v4126_v36  ;;  %v575_v49 = vsel %vm6181_vm12, %v4132_v31, %v4127_v35  ;;  %v3453_v50 = vpack.c.bf16 %v571_v44, %v570_v45  ;;  %v4162_v33 = vunpack.i.h.bf16 %v4160_v20  ;;  %v4979_v44 = vld [vmem:[%s6169_s1 + $0x28] sm:$0xff]  ;;  %vm980_vm12 = vmand %vm978_vm0, %vm4781_vm5 }
  0xa3   : > { %3443 = vmatpush.bf16.msk.msrb.mxu0 %vm4868_vm13, %v3442_v46  ;;  %v3445_v51 = vpack.c.bf16 %v575_v49, %v574_v48  ;;  %3451 = vmatpush.bf16.msk.msra.mxu1 %vm4890_vm15, %v3450_v43  ;;  %v4161_v34 = vunpack.i.l.bf16 %v4160_v20  ;;  %v6223_v35 = vmov 0  ;;  %vm5099_vm5 = vmpackc.low %vm978_vm0, %vm978_vm0 }
  0xa4   : > { %v6224_v35 = vsel %vm4960_vm11, 4294967295, %v6223_v35  ;;  %v6230_v30 = vsel %vm5099_vm5, 4294967295, %v6229_v30 }
  0xa5   : > { %v4135_v53 = vpop.permute.xlu0 %4134  ;;  %6225 = vst [vmem:[#allocation4_spill] sm:$0xff] %v6224_v35 }
  0xa6   : > { %v4137_v55 = vunpack.i.h.bf16 %v4135_v53  ;;  %v4136_v56 = vunpack.i.l.bf16 %v4135_v53  ;;  %v4140_v57 = vpop.permute.xlu1 %4139  ;;  %6231 = vst [vmem:[#allocation6_spill] sm:$0xff] %v6230_v30 }
  0xa7   : > { %3446 = vmatpush.bf16.msk.msrb.mxu0 %vm4868_vm13, %v3445_v51  ;;  %v4142_v58 = vunpack.i.h.bf16 %v4140_v57  ;;  %v4141_v59 = vunpack.i.l.bf16 %v4140_v57  ;;  %3454 = vmatpush.bf16.msk.msra.mxu1 %vm4890_vm15, %v3453_v50 }
  0xa9   : > { %v688_v63 = vsel %vm6179_vm1, %v4141_v59, %v4136_v56  ;;  %v689_v3 = vsel %vm6179_vm1, %v4142_v58, %v4137_v55  ;;  %v684_v5 = vsel %vm6179_vm1, %v4136_v56, %v4141_v59  ;;  %v685_v11 = vsel %vm6179_vm1, %v4137_v55, %v4142_v58  ;;  %v4985_v51 = vpop.permute.xlu2 %4174  ;;  %v4011_v59 = vld [vmem:[%s6169_s1 + $0x30] sm:$0xff] }
  0xaa   : > { %3403 = vmatmul.msk.bf16.vlgmr.msrb.gmra.mxu1 %vm6186_vm9, %v4822_v60  ;;  %3447 = vmatmul.msk.bf16.vlgmr.msrb.gmra.mxu0 %vm6186_vm9, %v4912_v54  ;;  %v3470_v2 = vpack.c.bf16 %v689_v3, %v688_v63  ;;  %v3478_v4 = vpack.c.bf16 %v685_v11, %v684_v5  ;;  %v4177_v62 = vunpack.i.h.bf16 %v4985_v51  ;;  %v781_v11 = vpack.c.bf16 %v4699_v7, %v4696_v6 }
  0xab   : > { %804 = vmatpush.bf16.msra.mxu0 %v780_v52 }
  0xac   : > { %3471 = vmatpush.bf16.msk.msrb.mxu2 %vm4923_vm3, %v3470_v2  ;;  %3479 = vmatpush.bf16.msk.msrb.mxu3 %vm4788_vm6, %v3478_v4 }
  0xad   : > { %v4150_v15 = vpop.permute.xlu0 %4149  ;;  %823 = vmatpush.bf16.msrb.mxu1 %v781_v11 }
  0xae   : > { %v4152_v60 = vunpack.i.h.bf16 %v4150_v15  ;;  %v4151_v16 = vunpack.i.l.bf16 %v4150_v15  ;;  %v4155_v17 = vpop.permute.xlu1 %4154 }
  0xaf   : > { %805 = vmatpush.bf16.msra.mxu0 %v778_v0  ;;  %3420 = vmatmul.msk.bf16.gmra.mxu2 %vm6186_vm9, %v4006_v21  ;;  %v4157_v18 = vunpack.i.h.bf16 %v4155_v17  ;;  %v4156_v19 = vunpack.i.l.bf16 %v4155_v17  ;;  %v4176_v0 = vunpack.i.l.bf16 %v4985_v51 }
  0xb0   : > { %3428 = vmatmul.msk.bf16.gmra.mxu3 %vm6186_vm9, %v4006_v21  ;;  %v686_v22 = vsel %vm6179_vm1, %v4151_v16, %v4146_v13  ;;  %v687_v23 = vsel %vm6179_vm1, %v4152_v60, %v4147_v12  ;;  %v682_v25 = vsel %vm6179_vm1, %v4146_v13, %v4151_v16  ;;  %v683_v28 = vsel %vm6179_vm1, %v4147_v12, %v4152_v60 }
  0xb1   : > { %v3473_v29 = vpack.c.bf16 %v687_v23, %v686_v22  ;;  %v3481_v31 = vpack.c.bf16 %v683_v28, %v682_v25  ;;  %v863_v36 = vsel %vm6178_vm2, %v4156_v19, %v4161_v34  ;;  %v864_v39 = vsel %vm6178_vm2, %v4157_v18, %v4162_v33  ;;  %v4190_v15 = vpop.permute.xlu2 %4189 }
  0xb2   : > { %v867_v10 = vsel %vm6178_vm2, %v4161_v34, %v4156_v19  ;;  %v868_v40 = vsel %vm6178_vm2, %v4162_v33, %v4157_v18  ;;  %v3514_v41 = vpack.c.bf16 %v864_v39, %v863_v36  ;;  %v779_v60 = vpack.c.bf16 %v4705_v9, %v4702_v8  ;;  %v5028_v18 = vld [vmem:[%s6169_s1 + $0x40] sm:$0xff]  ;;  %v4012_v9 = vld [vmem:[%s6169_s1 + $0x38] sm:$0xff]  ;;  %v5049_v34 = vld [vmem:[%s6169_s1 + $0x48] sm:$0xff] }
  0xb3   : > { %3474 = vmatpush.bf16.msk.msrb.mxu2 %vm4923_vm3, %v3473_v29  ;;  %3482 = vmatpush.bf16.msk.msrb.mxu3 %vm4788_vm6, %v3481_v31  ;;  %v3522_v42 = vpack.c.bf16 %v868_v40, %v867_v10  ;;  %v4192_v16 = vunpack.i.h.bf16 %v4190_v15  ;;  %v4191_v17 = vunpack.i.l.bf16 %v4190_v15  ;;  %vm6185_vm1 = vcmp.lt.s32.totalorder %v4744_v14, 111 }
  0xb4   : > { %824 = vmatpush.bf16.msrb.mxu1 %v779_v60 }
  0xb5   : > { %v4165_v43 = vpop.permute.xlu0 %4164 }
  0xb6   : > { %v4167_v45 = vunpack.i.h.bf16 %v4165_v43  ;;  %v4166_v46 = vunpack.i.l.bf16 %v4165_v43  ;;  %v4170_v48 = vpop.permute.xlu1 %4169 }
  0xb7   : > { %3515 = vmatpush.bf16.msk.msra.mxu2 %vm4960_vm11, %v3514_v41  ;;  %v4172_v49 = vunpack.i.h.bf16 %v4170_v48  ;;  %v4171_v50 = vunpack.i.l.bf16 %v4170_v48  ;;  %3523 = vmatpush.bf16.msk.msra.mxu3 %vm4890_vm15, %v3522_v42 }
  0xb9   : > { %v862_v52 = vsel %vm6178_vm2, %v4167_v45, %v4172_v49  ;;  %v866_v53 = vsel %vm6178_vm2, %v4172_v49, %v4167_v45  ;;  %v861_v55 = vsel %vm6178_vm2, %v4166_v46, %v4171_v50  ;;  %v865_v56 = vsel %vm6178_vm2, %v4171_v50, %v4166_v46  ;;  %v4205_v36 = vpop.permute.xlu2 %4204  ;;  %v4015_v49 = vld [vmem:[%s6169_s1 + $0x50] sm:$0xff] }
  0xba   : > { %3404 = vmatmul.msk.bf16.gmra.mxu1 %vm6186_vm9, %v4827_v61  ;;  %3448 = vmatmul.msk.bf16.gmra.mxu0 %vm6186_vm9, %v4979_v44  ;;  %v3517_v57 = vpack.c.bf16 %v862_v52, %v861_v55  ;;  %v3525_v58 = vpack.c.bf16 %v866_v53, %v865_v56  ;;  %vm6183_vm2 = vcmp.lt.s32.totalorder %v4744_v14, 112  ;;  %v4207_v40 = vunpack.i.h.bf16 %v4205_v36 }
  0xbb   : > { %v4206_v41 = vunpack.i.l.bf16 %v4205_v36 }
  0xbc   : > { %3518 = vmatpush.bf16.msk.msra.mxu2 %vm4960_vm11, %v3517_v57  ;;  %3526 = vmatpush.bf16.msk.msra.mxu3 %vm4890_vm15, %v3525_v58 }
  0xbd   : > { %v4180_v61 = vpop.permute.xlu0 %4179 }
  0xbe   : > { %v4182_v63 = vunpack.i.h.bf16 %v4180_v61  ;;  %v4181_v3 = vunpack.i.l.bf16 %v4180_v61  ;;  %v4185_v5 = vpop.permute.xlu1 %4184 }
  0xbf   : > { %3475 = vmatmul.msk.bf16.vlgmr.msrb.gmra.mxu2 %vm6186_vm9, %v4011_v59  ;;  %v4187_v12 = vunpack.i.h.bf16 %v4185_v5  ;;  %v4186_v13 = vunpack.i.l.bf16 %v4185_v5 }
  0xc0   : > { %3483 = vmatmul.msk.bf16.vlgmr.msrb.gmra.mxu3 %vm6186_vm9, %v4011_v59  ;;  %v972_v2 = vsel %vm6182_vm10, %v4177_v62, %v4182_v63  ;;  %v971_v4 = vsel %vm6182_vm10, %v4176_v0, %v4181_v3  ;;  %v976_v42 = vsel %vm6182_vm10, %v4182_v63, %v4177_v62  ;;  %v975_v43 = vsel %vm6182_vm10, %v4181_v3, %v4176_v0 }
  0xc1   : > { %v3542_v21 = vpack.c.bf16 %v972_v2, %v971_v4  ;;  %v970_v6 = vsel %vm6182_vm10, %v4187_v12, %v4192_v16  ;;  %v969_v7 = vsel %vm6182_vm10, %v4186_v13, %v4191_v17  ;;  %v3550_v52 = vpack.c.bf16 %v976_v42, %v975_v43  ;;  %v4220_v59 = vpop.permute.xlu2 %4219 }
  0xc2   : > { %v3545_v19 = vpack.c.bf16 %v970_v6, %v969_v7  ;;  %v974_v56 = vsel %vm6182_vm10, %v4192_v16, %v4187_v12  ;;  %v973_v57 = vsel %vm6182_vm10, %v4191_v17, %v4186_v13  ;;  %v4222_v61 = vunpack.i.h.bf16 %v4220_v59  ;;  %vm5086_vm10 = vmpackc.low %vm980_vm12, %vm980_vm12 }
  0xc3   : > { %3543 = vmatpush.bf16.msk.msrb.mxu0 %vm4923_vm3, %v3542_v21  ;;  %v4221_v63 = vunpack.i.l.bf16 %v4220_v59  ;;  %v6226_v3 = vmov 0  ;;  %v3553_v5 = vpack.c.bf16 %v974_v56, %v973_v57  ;;  %vm1198_vm12 = vmand %vm978_vm0, %vm4874_vm14  ;;  %vm6235_vm0 = vcmp.lt.s32.totalorder %v4744_v14, 15 }
  0xc4   : > { %v6227_v3 = vsel %vm5086_vm10, 4294967295, %v6226_v3  ;;  %vm6236_vm14 = vmmov %vm6235_vm0 }
  0xc5   : > { %v4195_v8 = vpop.permute.xlu0 %4194  ;;  %6228 = vst [vmem:[#allocation5_spill] sm:$0xff] %v6227_v3 }
  0xc6   : > { %v4197_v20 = vunpack.i.h.bf16 %v4195_v8  ;;  %v4196_v22 = vunpack.i.l.bf16 %v4195_v8  ;;  %v4200_v23 = vpop.permute.xlu1 %4199 }
  0xc7   : > { %3546 = vmatpush.bf16.msk.msrb.mxu0 %vm4923_vm3, %v3545_v19  ;;  %v4202_v25 = vunpack.i.h.bf16 %v4200_v23  ;;  %v4201_v28 = vunpack.i.l.bf16 %v4200_v23  ;;  %v4017_v19 = vld [vmem:[%s6169_s1 + $0x60] sm:$0xff]  ;;  %v4019_v23 = vld [vmem:[%s6169_s1 + $0x70] sm:$0xff] }
  0xc9   : > { %v1083_v29 = vsel %vm6183_vm2, %v4196_v22, %v4201_v28  ;;  %v1087_v50 = vsel %vm6183_vm2, %v4201_v28, %v4196_v22 }
  0xca   : > { %3455 = vmatmul.msk.bf16.vlgmr.msra.gmra.mxu1 %vm6186_vm9, %v4912_v54  ;;  %3497 = vmatmul.msk.bf16.vlgmr.msra.gmra.mxu0 %vm6186_vm9, %v5028_v18  ;;  %v1084_v54 = vsel %vm6183_vm2, %v4197_v20, %v4202_v25 }
  0xcb   : > { %v1108_v31 = vpack.c.bf16 %v1084_v54, %v1083_v29  ;;  %3551 = vmatpush.bf16.msk.msra.mxu1 %vm5086_vm10, %v3550_v52  ;;  %v6232_v29 = vmov 0 }
  0xcd   : > { %v4210_v33 = vpop.permute.xlu0 %4209  ;;  %1132 = vmatpush.bf16.msrb.mxu2 %v1108_v31 }
  0xce   : > { %v4212_v39 = vunpack.i.h.bf16 %v4210_v33  ;;  %v4211_v10 = vunpack.i.l.bf16 %v4210_v33  ;;  %v4215_v45 = vpop.permute.xlu1 %4214  ;;  %v4022_v33 = vld [vmem:[%s6169_s1 + $0x88] sm:$0xff] }
  0xcf   : > { %3476 = vmatmul.msk.bf16.gmra.mxu2 %vm6186_vm9, %v4012_v9  ;;  %v4217_v53 = vunpack.i.h.bf16 %v4215_v45  ;;  %v4216_v55 = vunpack.i.l.bf16 %v4215_v45  ;;  %3554 = vmatpush.bf16.msk.msra.mxu1 %vm5086_vm10, %v3553_v5 }
  0xd0   : > { %3484 = vmatmul.msk.bf16.gmra.mxu3 %vm6186_vm9, %v4012_v9  ;;  %v1081_v46 = vsel %vm6183_vm2, %v4206_v41, %v4211_v10  ;;  %v1082_v48 = vsel %vm6183_vm2, %v4207_v40, %v4212_v39  ;;  %v1086_v62 = vsel %vm6183_vm2, %v4212_v39, %v4207_v40  ;;  %v1085_v0 = vsel %vm6183_vm2, %v4211_v10, %v4206_v41  ;;  %v4016_v9 = vld [vmem:[%s6169_s1 + $0x58] sm:$0xff] }
  0xd1   : > { %v1106_v51 = vpack.c.bf16 %v1082_v48, %v1081_v46  ;;  %v1191_v11 = vsel %vm6185_vm1, %v4216_v55, %v4221_v63  ;;  %v1192_v2 = vsel %vm6185_vm1, %v4217_v53, %v4222_v61  ;;  %v3575_v4 = vpack.c.bf16 %v1086_v62, %v1085_v0 }
  0xd2   : > { %v3592_v21 = vpack.c.bf16 %v1192_v2, %v1191_v11  ;;  %v1196_v22 = vsel %vm6185_vm1, %v4222_v61, %v4217_v53 }
  0xd3   : > { %1133 = vmatpush.bf16.msrb.mxu2 %v1106_v51 }
  0xd4   : > { %3593 = vmatpush.bf16.msk.msra.mxu0 %vm4960_vm11, %v3592_v21 }
  0xd5   : > { %v4225_v12 = vpop.permute.xlu0 %4224 }
  0xd6   : > { %v4230_v13 = vpop.permute.xlu1 %4229  ;;  %v4227_v15 = vunpack.i.h.bf16 %v4225_v12  ;;  %v4226_v60 = vunpack.i.l.bf16 %v4225_v12 }
  0xd7   : > { %v4232_v16 = vunpack.i.h.bf16 %v4230_v13  ;;  %v4231_v17 = vunpack.i.l.bf16 %v4230_v13 }
  0xd9   : > { %v1190_v6 = vsel %vm6185_vm1, %v4227_v15, %v4232_v16  ;;  %v1189_v7 = vsel %vm6185_vm1, %v4226_v60, %v4231_v17  ;;  %v1194_v28 = vsel %vm6185_vm1, %v4232_v16, %v4227_v15  ;;  %v1193_v54 = vsel %vm6185_vm1, %v4231_v17, %v4226_v60 }
  0xda   : > { %3456 = vmatmul.msk.bf16.gmra.mxu1 %vm6186_vm9, %v4979_v44  ;;  %3498 = vmatmul.msk.bf16.gmra.mxu0 %vm6186_vm9, %v5049_v34  ;;  %v1088_v44 = vsel %vm6183_vm2, %v4202_v25, %v4197_v20  ;;  %v3595_v8 = vpack.c.bf16 %v1190_v6, %v1189_v7  ;;  %v4018_v20 = vld [vmem:[%s6169_s1 + $0x68] sm:$0xff]  ;;  %vm5151_vm2 = vmpackc.low %vm1198_vm12, %vm1198_vm12  ;;  %v3603_v31 = vpack.c.bf16 %v1194_v28, %v1193_v54 }
  0xdb   : > { %v3572_v58 = vpack.c.bf16 %v1088_v44, %v1087_v50  ;;  %v6233_v29 = vsel %vm5151_vm2, 4294967295, %v6232_v29  ;;  %vm6237_vm12 = vmmov %vm6235_vm0 }
  0xdc   : > { %3596 = vmatpush.bf16.msk.msra.mxu0 %vm4960_vm11, %v3595_v8  ;;  %6234 = vst [vmem:[#allocation7_spill] sm:$0xff] %v6233_v29 }
  0xdd   : > { %3573 = vmatpush.bf16.msk.msrb.mxu3 %vm5099_vm5, %v3572_v58 }
  0xdf   : > { %3519 = vmatmul.msk.bf16.vlgmr.msra.gmra.mxu2 %vm6186_vm9, %v4015_v49 }
  0xe0   : > { %3527 = vmatmul.msk.bf16.vlgmr.msra.gmra.mxu3 %vm6186_vm9, %v4015_v49 }
  0xe1   : > { %3576 = vmatpush.bf16.msk.msrb.mxu3 %vm5099_vm5, %v3575_v4 }
  0xea   : > { %3499 = vmatmul.msk.bf16.vlgmr.msrb.gmra.mxu1 %vm6186_vm9, %v5028_v18  ;;  %3547 = vmatmul.msk.bf16.vlgmr.msrb.gmra.mxu0 %vm6186_vm9, %v4017_v19  ;;  %v1195_v18 = vsel %vm6185_vm1, %v4221_v63, %v4216_v55  ;;  %vm6239_vm1 = vmmov %vm6235_vm0 }
  0xeb   : > { %v3600_v25 = vpack.c.bf16 %v1196_v22, %v1195_v18 }
  0xed   : > { %3601 = vmatpush.bf16.msk.msrb.mxu1 %vm5151_vm2, %v3600_v25 }
  0xef   : > { %3520 = vmatmul.msk.bf16.gmra.mxu2 %vm6186_vm9, %v4016_v9 }
  0xf0   : > { %3528 = vmatmul.msk.bf16.gmra.mxu3 %vm6186_vm9, %v4016_v9 }
  0xf1   : > { %3604 = vmatpush.bf16.msk.msrb.mxu1 %vm5151_vm2, %v3603_v31 }
  0xfa   : > { %3500 = vmatmul.msk.bf16.gmra.mxu1 %vm6186_vm9, %v5049_v34  ;;  %3548 = vmatmul.msk.bf16.gmra.mxu0 %vm6186_vm9, %v4018_v20 }
  0xff   : > { %3569 = vmatmul.msk.bf16.vlgmr.msrb.gmra.mxu2 %vm6186_vm9, %v4019_v23 }
 0x100   : > { %3577 = vmatmul.msk.bf16.vlgmr.msrb.gmra.mxu3 %vm6186_vm9, %v4019_v23 }
 0x10a   : > { %3555 = vmatmul.msk.bf16.vlgmr.msra.gmra.mxu1 %vm6186_vm9, %v4017_v19  ;;  %3597 = vmatmul.msk.bf16.vlgmr.msra.gmra.mxu0 %vm6186_vm9, %v4021_v38 }
 0x10f   : > { %3570 = vmatmul.msk.bf16.gmra.mxu2 %vm6186_vm9, %v4020_v26 }
 0x110   : > { %3578 = vmatmul.msk.bf16.gmra.mxu3 %vm6186_vm9, %v4020_v26 }
 0x117   : > { %v470_v34 = vpop.f32.mrf.mxu0  ;;  %v475_v36 = vpop.f32.mrf.mxu1 }
 0x11a   : > { %3556 = vmatmul.msk.bf16.gmra.mxu1 %vm6186_vm9, %v4018_v20  ;;  %3598 = vmatmul.msk.bf16.gmra.mxu0 %vm6186_vm9, %v4022_v33 }
 0x11f   : > { %v5174_v39 = vpop.f32.mrf.mxu0  ;;  %v5176_v10 = vpop.f32.mrf.mxu1 }
 0x122   : > { %v524_v40 = vpop.f32.mrf.mxu2 }
 0x123   : > { %v525_v41 = vadd.f32 %v524_v40, %v470_v34  ;;  %v543_v42 = vpop.f32.mrf.mxu3 }
 0x127   : > { %v489_v43 = vpop.f32.mrf.mxu1  ;;  %v628_v45 = vpop.f32.mrf.mxu0 }
 0x128   : > { %v544_v46 = vadd.f32 %v543_v42, %v489_v43  ;;  %v657_v48 = vadd.f32 %v628_v45, %v525_v41 }
 0x12a   : > { %v526_v49 = vpop.f32.mrf.mxu2  ;;  %3605 = vmatmul.msk.bf16.vlgmr.msrb.gmra.mxu1 %vm6186_vm9, %v4021_v38 }
 0x12b   : > { %v5179_v44 = vpop.f32.mrf.mxu3 }
 0x12f   : > { %v5181_v50 = vpop.f32.mrf.mxu1  ;;  %v630_v51 = vpop.f32.mrf.mxu0 }
 0x132   : > { %v529_v52 = vpop.f32.mrf.mxu2 }
 0x133   : > { %v530_v53 = vadd.f32 %v529_v52, %v475_v36  ;;  %v548_v55 = vpop.f32.mrf.mxu3 }
 0x137   : > { %v494_v56 = vpop.f32.mrf.mxu1  ;;  %v633_v57 = vpop.f32.mrf.mxu0 }
 0x138   : > { %v549_v58 = vadd.f32 %v548_v55, %v494_v56  ;;  %v661_v59 = vadd.f32 %v633_v57, %v530_v53  ;;  %v527_v53 = vadd.f32 %v526_v49, %v5174_v39 }
 0x13a   : > { %v5183_v62 = vpop.f32.mrf.mxu2  ;;  %3606 = vmatmul.msk.bf16.gmra.mxu1 %vm6186_vm9, %v4022_v33  ;;  %vm6240_vm9 = vmmov %vm6235_vm0 }
 0x13b   : > { %v5186_v0 = vpop.f32.mrf.mxu3 }
 0x13f   : > { %v5188_v61 = vpop.f32.mrf.mxu1  ;;  %v5190_v63 = vpop.f32.mrf.mxu0 }
 0x142   : > { %v736_v5 = vpop.f32.mrf.mxu2 }
 0x143   : > { %v765_v11 = vadd.f32 %v736_v5, %v657_v48  ;;  %v755_v2 = vpop.f32.mrf.mxu3 }
 0x147   : > { %v647_v4 = vpop.f32.mrf.mxu1  ;;  %v807_v21 = vpop.f32.mrf.mxu0 }
 0x148   : > { %v658_v12 = vadd.f32 %v647_v4, %v544_v46  ;;  %v836_v13 = vadd.f32 %v807_v21, %v765_v11 }
 0x14a   : > { %v738_v15 = vpop.f32.mrf.mxu2  ;;  %v766_v60 = vadd.f32 %v755_v2, %v658_v12 }
 0x14b   : > { %v5192_v16 = vpop.f32.mrf.mxu3 }
 0x14f   : > { %v5194_v17 = vpop.f32.mrf.mxu1  ;;  %v809_v6 = vpop.f32.mrf.mxu0 }
 0x152   : > { %v741_v7 = vpop.f32.mrf.mxu2 }
 0x153   : > { %v769_v19 = vadd.f32 %v741_v7, %v661_v59  ;;  %v760_v8 = vpop.f32.mrf.mxu3 }
 0x157   : > { %v652_v9 = vpop.f32.mrf.mxu1  ;;  %v812_v20 = vpop.f32.mrf.mxu0 }
 0x158   : > { %v662_v18 = vadd.f32 %v652_v9, %v549_v58  ;;  %v840_v22 = vadd.f32 %v812_v20, %v769_v19  ;;  %v659_v58 = vadd.f32 %v630_v51, %v527_v53  ;;  %v532_v51 = vadd.f32 %v5183_v62, %v5176_v10 }
 0x15a   : > { %v743_v23 = vpop.f32.mrf.mxu2  ;;  %v770_v25 = vadd.f32 %v760_v8, %v662_v18  ;;  %v767_v5 = vadd.f32 %v738_v15, %v659_v58 }
 0x15b   : > { %v5200_v34 = vpop.f32.mrf.mxu3 }
 0x15c   : > { %v838_v4 = vadd.f32 %v809_v6, %v767_v5 }
 0x15f   : > { %v5196_v28 = vpop.f32.mrf.mxu1  ;;  %v814_v54 = vpop.f32.mrf.mxu0 }
 0x162   : > { %v915_v31 = vpop.f32.mrf.mxu2 }
 0x163   : > { %v934_v43 = vpop.f32.mrf.mxu3  ;;  %v944_v21 = vadd.f32 %v915_v31, %v836_v13  ;;  %v663_v13 = vadd.f32 %v5190_v63, %v532_v51 }
 0x167   : > { %v826_v38 = vpop.f32.mrf.mxu1  ;;  %v1027_v26 = vpop.f32.mrf.mxu0 }
 0x168   : > { %v5198_v33 = vadd.f32 %v826_v38, %v766_v60  ;;  %v1056_v60 = vadd.f32 %v1027_v26, %v944_v21  ;;  %v771_v26 = vadd.f32 %v743_v23, %v663_v13 }
 0x16a   : > { %v917_v36 = vpop.f32.mrf.mxu2  ;;  %v842_v58 = vadd.f32 %v814_v54, %v771_v26 }
 0x16b   : > { %v936_v55 = vpop.f32.mrf.mxu3  ;;  %v946_v7 = vadd.f32 %v917_v36, %v838_v4 }
 0x16f   : > { %v828_v40 = vpop.f32.mrf.mxu1  ;;  %v1029_v41 = vpop.f32.mrf.mxu0 }
 0x170   : > { %v1058_v8 = vadd.f32 %v1029_v41, %v946_v7 }
 0x172   : > { %v920_v42 = vpop.f32.mrf.mxu2 }
 0x173   : > { %v5207_v12 = vpop.f32.mrf.mxu3 }
 0x177   : > { %v831_v45 = vpop.f32.mrf.mxu1  ;;  %v1032_v46 = vpop.f32.mrf.mxu0 }
 0x178   : > { %v5202_v48 = vadd.f32 %v831_v45, %v770_v25 }
 0x17a   : > { %v922_v52 = vpop.f32.mrf.mxu2 }
 0x17b   : > { %v941_v6 = vpop.f32.mrf.mxu3  ;;  %v950_v10 = vadd.f32 %v922_v52, %v842_v58 }
 0x17f   : > { %v5205_v56 = vpop.f32.mrf.mxu1  ;;  %v1034_v57 = vpop.f32.mrf.mxu0 }
 0x180   : > { %v1062_v4 = vadd.f32 %v1034_v57, %v950_v10 }
 0x182   : > { %v1135_v59 = vpop.f32.mrf.mxu2 }
 0x183   : > { %v1164_v9 = vadd.f32 %v1135_v59, %v1056_v60  ;;  %v948_v59 = vadd.f32 %v920_v42, %v840_v22  ;;  %v1154_v21 = vpop.f32.mrf.mxu3 }
 0x185   : > { %v1060_v5 = vadd.f32 %v1032_v46, %v948_v59 }
 0x187   : > { %v1046_v11 = vpop.f32.mrf.mxu1  ;;  %v1245_v2 = vpop.f32.mrf.mxu0 }
 0x188   : > { %v1274_v20 = vadd.f32 %v1245_v2, %v1164_v9  ;;  %v546_v2 = vadd.f32 %v5179_v44, %v5181_v50  ;;  %v945_v44 = vadd.f32 %v934_v43, %v5198_v33 }
 0x18a   : > { %v1137_v19 = vpop.f32.mrf.mxu2  ;;  %v1282_v15 = vmax.f32 %v1274_v20, 0.0  ;;  %v660_v23 = vadd.f32 %v5194_v17, %v546_v2 }
 0x18b   : > { %v1166_v39 = vadd.f32 %v1137_v19, %v1058_v8  ;;  %v1156_v17 = vpop.f32.mrf.mxu3 }
 0x18c   : > { %v768_v22 = vadd.f32 %v5192_v16, %v660_v23 }
 0x18e   : > { %v839_v52 = vadd.f32 %v828_v40, %v768_v22 }
 0x18f   : > { %v1048_v49 = vpop.f32.mrf.mxu1  ;;  %v1247_v18 = vpop.f32.mrf.mxu0 }
 0x190   : > { %v1276_v25 = vadd.f32 %v1247_v18, %v1166_v39  ;;  %v947_v20 = vadd.f32 %v936_v55, %v839_v52  ;;  %v1057_v39 = vadd.f32 %v1046_v11, %v945_v44  ;;  %v949_v11 = vadd.f32 %v5207_v12, %v5202_v48 }
 0x192   : > { %v1284_v38 = vmax.f32 %v1276_v25, 0.0  ;;  %v1140_v45 = vpop.f32.mrf.mxu2  ;;  %v1059_v18 = vadd.f32 %v1048_v49, %v947_v20  ;;  %v551_v25 = vadd.f32 %v5186_v0, %v5188_v61  ;;  %v1165_v51 = vadd.f32 %v1154_v21, %v1057_v39 }
 0x193   : > { %v1168_v63 = vadd.f32 %v1140_v45, %v1060_v5  ;;  %v1159_v33 = vpop.f32.mrf.mxu3 }
 0x194   : > { %v5212_v31 = vpack.i.bf16 %v1284_v38, %v1282_v15  ;;  %v5216_v36 = vpack.c.bf16 %v1284_v38, %v1282_v15  ;;  %v664_v16 = vadd.f32 %v5196_v28, %v551_v25  ;;  %v1167_v15 = vadd.f32 %v1156_v17, %v1059_v18 }
 0x196   : > { %4244 = vrot.lane.b32.xlu1 %v5212_v31, %s4594_s14  ;;  %v772_v43 = vadd.f32 %v5200_v34, %v664_v16 }
 0x197   : > { %v1051_v41 = vpop.f32.mrf.mxu1  ;;  %v1250_v53 = vpop.f32.mrf.mxu0 }
 0x198   : > { %v1278_v60 = vadd.f32 %v1250_v53, %v1168_v63  ;;  %v843_v53 = vadd.f32 %v5205_v56, %v772_v43  ;;  %v1061_v49 = vadd.f32 %v1051_v41, %v949_v11 }
 0x19a   : > { %v1142_v62 = vpop.f32.mrf.mxu2  ;;  %v1286_v42 = vmax.f32 %v1278_v60, 0.0  ;;  %v951_v28 = vadd.f32 %v941_v6, %v843_v53  ;;  %v1169_v5 = vadd.f32 %v1159_v33, %v1061_v49 }
 0x19b   : > { %v1170_v7 = vadd.f32 %v1142_v62, %v1062_v4  ;;  %v1161_v59 = vpop.f32.mrf.mxu3 }
 0x19e   : > { %4264 = vrot.lane.b32.xlu1 %v5212_v31, %s4596_s16 }
 0x19f   : > { %v1053_v19 = vpop.f32.mrf.mxu1  ;;  %v1252_v8 = vpop.f32.mrf.mxu0 }
 0x1a0   : > { %v1280_v54 = vadd.f32 %v1252_v8, %v1170_v7  ;;  %v1063_v58 = vadd.f32 %v1053_v19, %v951_v28  ;;  %v4025_v28 = vld [vmem:[%s6170_s2 + $0x10] sm:$0xff] }
 0x1a2   : > { %v1288_v46 = vmax.f32 %v1280_v54, 0.0  ;;  %v1171_v10 = vadd.f32 %v1161_v59, %v1063_v58 }
 0x1a4   : > { %v4233_v9 = vpack.i.bf16 %v1288_v46, %v1286_v42  ;;  %v5226_v50 = vpack.c.bf16 %v1288_v46, %v1286_v42 }
 0x1a6   : > { %4234 = vrot.lane.b32.xlu2 %v4233_v9, %s4594_s14 }
 0x1a7   : > { %v1264_v57 = vpop.f32.mrf.mxu1 }
 0x1a8   : > { %v1275_v40 = vadd.f32 %v1264_v57, %v1165_v51 }
 0x1aa   : > { %v1283_v13 = vmax.f32 %v1275_v40, 0.0 }
 0x1af   : > { %v1266_v38 = vpop.f32.mrf.mxu1 }
 0x1b0   : > { %v1277_v45 = vadd.f32 %v1266_v38, %v1167_v15 }
 0x1b2   : > { %v1285_v26 = vmax.f32 %v1277_v45, 0.0 }
 0x1b4   : > { %v4248_v55 = vpack.i.bf16 %v1285_v26, %v1283_v13  ;;  %v5236_v0 = vpack.c.bf16 %v1285_v26, %v1283_v13 }
 0x1b6   : > { %4249 = vrot.lane.b32.xlu2 %v4248_v55, %s4594_s14 }
 0x1b7   : > { %v1269_v61 = vpop.f32.mrf.mxu1 }
 0x1b8   : > { %v1279_v34 = vadd.f32 %v1269_v61, %v1169_v5 }
 0x1ba   : > { %v1287_v2 = vmax.f32 %v1279_v34, 0.0 }
 0x1be   : > { %4259 = vrot.lane.b32.xlu2 %v4233_v9, %s4595_s15 }
 0x1bf   : > { %v1271_v62 = vpop.f32.mrf.mxu1 }
 0x1c0   : > { %v1281_v56 = vadd.f32 %v1271_v62, %v1171_v10 }
 0x1c2   : > { %v1289_v4 = vmax.f32 %v1281_v56, 0.0 }
 0x1c4   : > { %v4238_v63 = vpack.i.bf16 %v1289_v4, %v1287_v2  ;;  %v5241_v48 = vpack.c.bf16 %v1289_v4, %v1287_v2 }
 0x1c6   : > { %4239 = vrot.lane.b32.xlu0 %v4238_v63, %s4594_s14  ;;  %4274 = vrot.lane.b32.xlu1 %v4238_v63, %s4596_s16 }
 0x1c7   : > { %4269 = vrot.lane.b32.xlu2 %v4248_v55, %s4596_s16 }
 0x1ce   : > { %4289 = vrot.lane.b32.xlu1 %v4248_v55, %s4595_s15  ;;  %4254 = vrot.lane.b32.xlu0 %v4233_v9, %s4596_s16 }
 0x1cf   : > { %4294 = vrot.lane.b32.xlu2 %v4233_v9, %s4597_s17 }
 0x1d6   : > { %4304 = vrot.lane.b32.xlu1 %v5212_v31, %s4597_s17  ;;  %4279 = vrot.lane.b32.xlu0 %v4238_v63, %s4595_s15 }
 0x1d7   : > { %4309 = vrot.lane.b32.xlu2 %v4248_v55, %s4597_s17 }
 0x1de   : > { %4324 = vrot.lane.b32.xlu1 %v5212_v31, %s4599_s19  ;;  %4284 = vrot.lane.b32.xlu0 %v5212_v31, %s4595_s15 }
 0x1df   : > { %4319 = vrot.lane.b32.xlu2 %v4233_v9, %s4598_s18 }
 0x1e6   : > { %4334 = vrot.lane.b32.xlu1 %v4238_v63, %s4599_s19  ;;  %4299 = vrot.lane.b32.xlu0 %v4238_v63, %s4597_s17 }
 0x1e7   : > { %4329 = vrot.lane.b32.xlu2 %v4248_v55, %s4599_s19 }
 0x1ee   : > { %4349 = vrot.lane.b32.xlu1 %v4248_v55, %s4598_s18  ;;  %4314 = vrot.lane.b32.xlu0 %v4233_v9, %s4599_s19 }
 0x1ef   : > { %4354 = vrot.lane.b32.xlu2 %v4233_v9, %s4601_s21 }
 0x1f6   : > { %4359 = vrot.lane.b32.xlu1 %v4233_v9, %s4600_s20  ;;  %4339 = vrot.lane.b32.xlu0 %v4238_v63, %s4598_s18 }
 0x1f7   : > { %4379 = vrot.lane.b32.xlu2 %v4238_v63, %s4600_s20 }
 0x1fe   : > { %4369 = vrot.lane.b32.xlu1 %v4248_v55, %s4601_s21  ;;  %4344 = vrot.lane.b32.xlu0 %v5212_v31, %s4598_s18 }
 0x1ff   : > { %4384 = vrot.lane.b32.xlu2 %v5212_v31, %s4600_s20 }
 0x200   : > { %v4235_v12 = vpop.permute.xlu2 %4234 }
 0x201   : > { %v4237_v7 = vunpack.i.h.bf16 %v4235_v12  ;;  %v4236_v19 = vunpack.i.l.bf16 %v4235_v12 }
 0x206   : > { %4364 = vrot.lane.b32.xlu0 %v5212_v31, %s4601_s21 }
 0x208   : > { %v4245_v41 = vpop.permute.xlu1 %4244 }
 0x209   : > { %v4247_v31 = vunpack.i.h.bf16 %v4245_v41  ;;  %v4246_v9 = vunpack.i.l.bf16 %v4245_v41 }
 0x20e   : > { %4374 = vrot.lane.b32.xlu0 %v4238_v63, %s4601_s21 }
 0x210   : > { %v4250_v6 = vpop.permute.xlu2 %4249  ;;  %v4265_v23 = vpop.permute.xlu1 %4264 }
 0x211   : > { %v4252_v22 = vunpack.i.h.bf16 %v4250_v6  ;;  %v4251_v42 = vunpack.i.l.bf16 %v4250_v6  ;;  %v4267_v49 = vunpack.i.h.bf16 %v4265_v23  ;;  %v4266_v58 = vunpack.i.l.bf16 %v4265_v23 }
 0x213   : > { %v1351_v25 = vsel %vm6184_vm7, %v4252_v22, %v4247_v31  ;;  %v1350_v51 = vsel %vm6184_vm7, %v4251_v42, %v4246_v9  ;;  %v1346_v16 = vsel %vm6184_vm7, %v4246_v9, %v4251_v42  ;;  %v1347_v15 = vsel %vm6184_vm7, %v4247_v31, %v4252_v22 }
 0x214   : > { %v3623_v38 = vpack.c.bf16 %v1351_v25, %v1350_v51  ;;  %v1368_v26 = vpack.c.bf16 %v1347_v15, %v1346_v16 }
 0x216   : > { %4389 = vrot.lane.b32.xlu0 %v4248_v55, %s4600_s20 }
 0x218   : > { %v5274_v21 = vpop.permute.xlu2 %4259 }
 0x221   : > { %v4270_v60 = vpop.permute.xlu2 %4269 }
 0x222   : > { %v4272_v45 = vunpack.i.h.bf16 %v4270_v60  ;;  %v4271_v33 = vunpack.i.l.bf16 %v4270_v60 }
 0x224   : > { %v1496_v62 = vsel %vm6239_vm1, %v4267_v49, %v4272_v45  ;;  %v1500_v4 = vsel %vm6240_vm9, %v4272_v45, %v4267_v49  ;;  %v1499_v12 = vsel %vm6235_vm0, %v4271_v33, %v4266_v58 }
 0x225   : > { %v3669_v6 = vpack.c.bf16 %v1500_v4, %v1499_v12 }
 0x229   : > { %v5294_v40 = vpop.permute.xlu2 %4294 }
 0x22a   : > { %v4297_v45 = vunpack.i.h.bf16 %v5294_v40 }
 0x231   : > { %v4310_v22 = vpop.permute.xlu2 %4309 }
 0x238   : > { %v4240_v8 = vpop.permute.xlu0 %4239  ;;  %v4275_v54 = vpop.permute.xlu1 %4274 }
 0x239   : > { %v4242_v46 = vunpack.i.h.bf16 %v4240_v8  ;;  %v4241_v52 = vunpack.i.l.bf16 %v4240_v8  ;;  %v4277_v53 = vunpack.i.h.bf16 %v4275_v54  ;;  %v4276_v55 = vunpack.i.l.bf16 %v4275_v54 }
 0x23a   : > { %v4262_v8 = vunpack.i.h.bf16 %v5274_v21  ;;  %v4261_v54 = vunpack.i.l.bf16 %v5274_v21 }
 0x23b   : > { %v1348_v44 = vsel %vm6184_vm7, %v4236_v19, %v4241_v52  ;;  %v1349_v17 = vsel %vm6184_vm7, %v4237_v7, %v4242_v46  ;;  %v1352_v57 = vsel %vm6184_vm7, %v4241_v52, %v4236_v19  ;;  %v1353_v20 = vsel %vm6184_vm7, %v4242_v46, %v4237_v7  ;;  %vm6238_vm7 = vmmov %vm6235_vm0 }
 0x23c   : > { %v1370_v39 = vpack.c.bf16 %v1349_v17, %v1348_v44  ;;  %v3620_v18 = vpack.c.bf16 %v1353_v20, %v1352_v57  ;;  %v4026_v57 = vld [vmem:[%s6170_s2 + $0x18] sm:$0xff] }
 0x23e   : > { %3621 = vmatpush.bf16.msk.msra.mxu2 %vm4803_vm8, %v3620_v18  ;;  %1412 = vmatpush.bf16.msra.mxu3 %v1370_v39  ;;  %v5352_v18 = vpop.permute.xlu2 %4319 }
 0x240   : > { %v4290_v43 = vpop.permute.xlu1 %4289  ;;  %v4255_v13 = vpop.permute.xlu0 %4254 }
 0x241   : > { %v4257_v11 = vunpack.i.h.bf16 %v4255_v13  ;;  %v4256_v61 = vunpack.i.l.bf16 %v4255_v13  ;;  %v4292_v20 = vunpack.i.h.bf16 %v4290_v43  ;;  %v4291_v39 = vunpack.i.l.bf16 %v4290_v43 }
 0x242   : > { %3624 = vmatpush.bf16.msk.msra.mxu2 %vm4803_vm8, %v3623_v38  ;;  %1413 = vmatpush.bf16.msra.mxu3 %v1368_v26  ;;  %vm6241_vm8 = vmmov %vm6235_vm0  ;;  %v4023_v38 = vld [vmem:[%s6170_s2] sm:$0xff] }
 0x243   : > { %v1498_v59 = vsel %vm6235_vm0, %v4257_v11, %v4277_v53  ;;  %v1502_v5 = vsel %vm6236_vm14, %v4277_v53, %v4257_v11  ;;  %v1497_v10 = vsel %vm6237_vm12, %v4256_v61, %v4276_v55  ;;  %v1501_v34 = vsel %vm6238_vm7, %v4276_v55, %v4256_v61 }
 0x244   : > { %v3666_v56 = vpack.c.bf16 %v1502_v5, %v1501_v34  ;;  %v3674_v2 = vpack.c.bf16 %v1498_v59, %v1497_v10  ;;  %v1495_v63 = vsel %vm6241_vm8, %v4266_v58, %v4271_v33  ;;  %vm6242_vm14 = vcmask 261120  }
 0x245   : > { %3625 = vmatmul.msk.bf16.vlgmr.msra.gmra.mxu2 %vm6242_vm14, %v4025_v28  ;;  %vm6243_vm12 = vmmov %vm6242_vm14  ;;  %v3677_v41 = vpack.c.bf16 %v1496_v62, %v1495_v63  ;;  %vm6244_vm7 = vcmp.lt.s32.totalorder %v4744_v14, 17  ;;  %v4296_v33 = vunpack.i.l.bf16 %v5294_v40  ;;  %v4312_v11 = vunpack.i.h.bf16 %v4310_v22 }
 0x246   : > { %3627 = vmatmul.msk.bf16.vlgmr.msra.gmra.mxu3 %vm6243_vm12, %v4025_v28  ;;  %3667 = vmatpush.bf16.msk.msrb.mxu2 %vm4868_vm13, %v3666_v56  ;;  %vm6245_vm8 = vmmov %vm6244_vm7  ;;  %v4311_v61 = vunpack.i.l.bf16 %v4310_v22  ;;  %v4330_v4 = vpop.permute.xlu2 %4329 }
 0x247   : > { %3675 = vmatpush.bf16.msk.msrb.mxu3 %vm4890_vm15, %v3674_v2  ;;  %vm6246_vm9 = vmmov %vm6244_vm7  ;;  %v4332_v22 = vunpack.i.h.bf16 %v4330_v4 }
 0x248   : > { %v5323_v23 = vpop.permute.xlu1 %4304  ;;  %v4280_v60 = vpop.permute.xlu0 %4279  ;;  %vm6247_vm1 = vmmov %vm6244_vm7 }
 0x249   : > { %v4282_v7 = vunpack.i.h.bf16 %v4280_v60  ;;  %v4281_v19 = vunpack.i.l.bf16 %v4280_v60  ;;  %vm6248_vm0 = vmmov %vm6247_vm1  ;;  %v4307_v13 = vunpack.i.h.bf16 %v5323_v23  ;;  %v4306_v26 = vunpack.i.l.bf16 %v5323_v23 }
 0x24a   : > { %3670 = vmatpush.bf16.msk.msrb.mxu2 %vm4868_vm13, %v3669_v6  ;;  %vm6249_vm14 = vmmov %vm6248_vm0 }
 0x24b   : > { %3678 = vmatpush.bf16.msk.msrb.mxu3 %vm4890_vm15, %v3677_v41  ;;  %v1308_v42 = vsel %vm6244_vm7, %v4261_v54, %v4281_v19  ;;  %v1309_v46 = vsel %vm6245_vm8, %v4262_v8, %v4282_v7  ;;  %v1312_v21 = vsel %vm6246_vm9, %v4281_v19, %v4261_v54  ;;  %v1313_v52 = vsel %vm6247_vm1, %v4282_v7, %v4262_v8  ;;  %vm6250_vm12 = vmmov %vm6248_vm0  ;;  %v4027_v54 = vld [vmem:[%s6170_s2 + $0x20] sm:$0xff] }
 0x24c   : > { %v3646_v31 = vpack.c.bf16 %v1309_v46, %v1308_v42  ;;  %v3638_v9 = vpack.c.bf16 %v1313_v52, %v1312_v21  ;;  %vm6251_vm7 = vmmov %vm6248_vm0  ;;  %vm6252_vm8 = vcmask 261120   ;;  %vm6254_vm1 = vcmp.lt.s32.totalorder %v4744_v14, 1 }
 0x24d   : > { %vm6253_vm9 = vmmov %vm6252_vm8  ;;  %v4331_v42 = vunpack.i.l.bf16 %v4330_v4 }
 0x24e   : > { %1716 = vmatpush.bf16.msra.mxu2 %v5226_v50  ;;  %3647 = vmatpush.bf16.msk.msra.mxu1 %vm4788_vm6, %v3646_v31 }
 0x24f   : > { %1735 = vmatpush.bf16.msra.mxu3 %v5241_v48  ;;  %3639 = vmatpush.bf16.msk.msrb.mxu0 %vm4763_vm4, %v3638_v9 }
 0x250   : > { %v4285_v50 = vpop.permute.xlu0 %4284  ;;  %v5347_v48 = vpop.permute.xlu1 %4324 }
 0x251   : > { %v4287_v44 = vunpack.i.h.bf16 %v4285_v50  ;;  %v4286_v17 = vunpack.i.l.bf16 %v4285_v50  ;;  %v4327_v6 = vunpack.i.h.bf16 %v5347_v48  ;;  %v4326_v41 = vunpack.i.l.bf16 %v5347_v48 }
 0x252   : > { %1717 = vmatpush.bf16.msra.mxu2 %v5216_v36 }
 0x253   : > { %1736 = vmatpush.bf16.msra.mxu3 %v5236_v0  ;;  %v1307_v36 = vsel %vm6248_vm0, %v4287_v44, %v4292_v20  ;;  %v1311_v25 = vsel %vm6249_vm14, %v4292_v20, %v4287_v44  ;;  %v1306_v0 = vsel %vm6250_vm12, %v4286_v17, %v4291_v39  ;;  %v1310_v51 = vsel %vm6251_vm7, %v4291_v39, %v4286_v17  ;;  %vm6255_vm0 = vmmov %vm6254_vm1  ;;  %v4024_v39 = vld [vmem:[%s6170_s2 + $0x8] sm:$0xff] }
 0x254   : > { %v3641_v16 = vpack.c.bf16 %v1311_v25, %v1310_v51  ;;  %v3649_v15 = vpack.c.bf16 %v1307_v36, %v1306_v0  ;;  %vm6256_vm14 = vmmov %vm6255_vm0  ;;  %v1602_v56 = vsel %vm6255_vm0, %v4311_v61, %v4306_v26  ;;  %v5431_v36 = vpop.permute.xlu2 %4354 }
 0x255   : > { %3626 = vmatmul.msk.bf16.gmra.mxu2 %vm6252_vm8, %v4026_v57  ;;  %vm6257_vm12 = vmmov %vm6255_vm0 }
 0x256   : > { %3628 = vmatmul.msk.bf16.gmra.mxu3 %vm6253_vm9, %v4026_v57  ;;  %3642 = vmatpush.bf16.msk.msrb.mxu0 %vm4763_vm4, %v3641_v16  ;;  %vm6258_vm7 = vmmov %vm6252_vm8 }
 0x257   : > { %3650 = vmatpush.bf16.msk.msra.mxu1 %vm4788_vm6, %v3649_v15  ;;  %vm6259_vm8 = vmmov %vm6258_vm7 }
 0x258   : > { %v4300_v43 = vpop.permute.xlu0 %4299  ;;  %v4335_v28 = vpop.permute.xlu1 %4334  ;;  %vm6260_vm9 = vmmov %vm6255_vm0 }
 0x259   : > { %v4302_v53 = vunpack.i.h.bf16 %v4300_v43  ;;  %v4301_v55 = vunpack.i.l.bf16 %v4300_v43  ;;  %3643 = vmatmul.msk.bf16.vlgmr.msrb.gmra.mxu0 %vm6258_vm7, %v4023_v38  ;;  %v1598_v34 = vsel %vm6260_vm9, %v4306_v26, %v4311_v61  ;;  %v4337_v60 = vunpack.i.h.bf16 %v4335_v28 }
 0x25a   : > { %3651 = vmatmul.msk.bf16.vlgmr.msra.gmra.mxu1 %vm6259_vm8, %v4023_v38  ;;  %v4336_v7 = vunpack.i.l.bf16 %v4335_v28  ;;  %v4322_v38 = vunpack.i.h.bf16 %v5352_v18 }
 0x25b   : > { %v1600_v49 = vsel %vm6254_vm1, %v4296_v33, %v4301_v55  ;;  %v1601_v40 = vsel %vm6255_vm0, %v4297_v45, %v4302_v53  ;;  %v1604_v58 = vsel %vm6256_vm14, %v4301_v55, %v4296_v33  ;;  %v1605_v59 = vsel %vm6257_vm12, %v4302_v53, %v4297_v45  ;;  %vm6261_vm1 = vmmov %vm6255_vm0 }
 0x25c   : > { %v3694_v5 = vpack.c.bf16 %v1605_v59, %v1604_v58  ;;  %v3702_v10 = vpack.c.bf16 %v1601_v40, %v1600_v49  ;;  %v1599_v62 = vsel %vm6261_vm1, %v4307_v13, %v4312_v11  ;;  %vm6262_vm14 = vmmov %vm6255_vm0  ;;  %vm6263_vm12 = vcmp.lt.s32.totalorder %v4744_v14, 113  ;;  %v4028_v58 = vld [vmem:[%s6170_s2 + $0x28] sm:$0xff]  ;;  %v4380_v59 = vpop.permute.xlu2 %4379 }
 0x25d   : > { %v1603_v2 = vsel %vm6262_vm14, %v4312_v11, %v4307_v13  ;;  %v3705_v12 = vpack.c.bf16 %v1599_v62, %v1598_v34  ;;  %vm6264_vm7 = vmmov %vm6263_vm12  ;;  %v4321_v45 = vunpack.i.l.bf16 %v5352_v18 }
 0x25e   : > { %3695 = vmatpush.bf16.msk.msra.mxu0 %vm4923_vm3, %v3694_v5  ;;  %3703 = vmatpush.bf16.msk.msrb.mxu1 %vm4788_vm6, %v3702_v10  ;;  %v3697_v63 = vpack.c.bf16 %v1603_v2, %v1602_v56  ;;  %vm6265_vm8 = vmmov %vm6264_vm7 }
 0x25f   : > { %vm6266_vm9 = vmmov %vm6264_vm7 }
 0x260   : > { %v4315_v23 = vpop.permute.xlu0 %4314  ;;  %vm6267_vm1 = vmmov %vm6264_vm7  ;;  %v4350_v20 = vpop.permute.xlu1 %4349 }
 0x261   : > { %v4317_v19 = vunpack.i.h.bf16 %v4315_v23  ;;  %v4316_v8 = vunpack.i.l.bf16 %v4315_v23  ;;  %v1875_v9 = vsel %vm6267_vm1, %v4326_v41, %v4331_v42  ;;  %vm6268_vm0 = vmmov %vm6267_vm1  ;;  %vm6274_vm1 = vcmp.lt.s32.totalorder %v4744_v14, 127 }
 0x262   : > { %3698 = vmatpush.bf16.msk.msra.mxu0 %vm4923_vm3, %v3697_v63  ;;  %3706 = vmatpush.bf16.msk.msrb.mxu1 %vm4788_vm6, %v3705_v12  ;;  %v1876_v44 = vsel %vm6268_vm0, %v4327_v6, %v4332_v22  ;;  %vm6269_vm14 = vmmov %vm6268_vm0  ;;  %v4352_v61 = vunpack.i.h.bf16 %v4350_v20  ;;  %v4351_v28 = vunpack.i.l.bf16 %v4350_v20  ;;  %v4382_v12 = vunpack.i.h.bf16 %v4380_v59 }
 0x263   : > { %v1878_v46 = vsel %vm6263_vm12, %v4317_v19, %v4337_v60  ;;  %v1882_v21 = vsel %vm6264_vm7, %v4337_v60, %v4317_v19  ;;  %v1877_v52 = vsel %vm6265_vm8, %v4316_v8, %v4336_v7  ;;  %v1881_v31 = vsel %vm6266_vm9, %v4336_v7, %v4316_v8  ;;  %vm6270_vm12 = vmmov %vm6268_vm0  ;;  %v4029_v60 = vld [vmem:[%s6170_s2 + $0x30] sm:$0xff] }
 0x264   : > { %v3766_v50 = vpack.c.bf16 %v1878_v46, %v1877_v52  ;;  %v3774_v48 = vpack.c.bf16 %v1882_v21, %v1881_v31  ;;  %v1879_v17 = vsel %vm6269_vm14, %v4331_v42, %v4326_v41  ;;  %v1880_v57 = vsel %vm6270_vm12, %v4332_v22, %v4327_v6  ;;  %vm6275_vm0 = vmmov %vm6274_vm1 }
 0x265   : > { %vm6271_vm7 = vcmask 261120   ;;  %v3769_v25 = vpack.c.bf16 %v1876_v44, %v1875_v9  ;;  %v3777_v0 = vpack.c.bf16 %v1880_v57, %v1879_v17  ;;  %vm6277_vm12 = vmmov %vm6275_vm0  ;;  %v4381_v6 = vunpack.i.l.bf16 %v4380_v59  ;;  %v4031_v44 = vld [vmem:[%s6170_s2 + $0x40] sm:$0xff] }
 0x266   : > { %3671 = vmatmul.msk.bf16.vlgmr.msrb.gmra.mxu2 %vm6271_vm7, %v4027_v54  ;;  %vm6272_vm8 = vmmov %vm6271_vm7  ;;  %v4357_v46 = vunpack.i.h.bf16 %v5431_v36  ;;  %v4356_v31 = vunpack.i.l.bf16 %v5431_v36 }
 0x267   : > { %3679 = vmatmul.msk.bf16.vlgmr.msrb.gmra.mxu3 %vm6272_vm8, %v4027_v54  ;;  %3767 = vmatpush.bf16.msk.msrb.mxu2 %vm4923_vm3, %v3766_v50  ;;  %vm6273_vm9 = vmmov %vm6271_vm7 }
 0x268   : > { %3775 = vmatpush.bf16.msk.msrb.mxu3 %vm5086_vm10, %v3774_v48  ;;  %v4340_v51 = vpop.permute.xlu0 %4339  ;;  %vm6276_vm14 = vmmov %vm6271_vm7  ;;  %v4360_v55 = vpop.permute.xlu1 %4359 }
 0x269   : > { %v4342_v16 = vunpack.i.h.bf16 %v4340_v51  ;;  %v4341_v15 = vunpack.i.l.bf16 %v4340_v51  ;;  %3644 = vmatmul.msk.bf16.gmra.mxu0 %vm6273_vm9, %v4024_v39  ;;  %vm6278_vm7 = vmmov %vm6275_vm0  ;;  %v4362_v5 = vunpack.i.h.bf16 %v4360_v55  ;;  %v4361_v10 = vunpack.i.l.bf16 %v4360_v55 }
 0x26a   : > { %3652 = vmatmul.msk.bf16.gmra.mxu1 %vm6276_vm14, %v4024_v39  ;;  %vm6279_vm8 = vmmov %vm6275_vm0 }
 0x26b   : > { %3770 = vmatpush.bf16.msk.msrb.mxu2 %vm4923_vm3, %v3769_v25  ;;  %v1774_v33 = vsel %vm6274_vm1, %v4321_v45, %v4341_v15  ;;  %v1775_v43 = vsel %vm6275_vm0, %v4322_v38, %v4342_v16  ;;  %v1778_v13 = vsel %vm6277_vm12, %v4341_v15, %v4321_v45  ;;  %v1779_v18 = vsel %vm6278_vm7, %v4342_v16, %v4322_v38  ;;  %vm6280_vm9 = vmmov %vm6275_vm0 }
 0x26c   : > { %3778 = vmatpush.bf16.msk.msrb.mxu3 %vm5086_vm10, %v3777_v0  ;;  %v3738_v26 = vpack.c.bf16 %v1775_v43, %v1774_v33  ;;  %v3746_v53 = vpack.c.bf16 %v1779_v18, %v1778_v13  ;;  %vm6281_vm1 = vmmov %vm6275_vm0  ;;  %vm6283_vm7 = vcmp.lt.s32.totalorder %v4744_v14, 112  ;;  %v4385_v33 = vpop.permute.xlu2 %4384  ;;  %v4030_v43 = vld [vmem:[%s6170_s2 + $0x38] sm:$0xff] }
 0x26d   : > { %vm6282_vm12 = vmmov %vm6276_vm14  ;;  %v1980_v41 = vsel %vm6283_vm7, %v4361_v10, %v4381_v6  ;;  %v4386_v55 = vunpack.i.l.bf16 %v4385_v33 }
 0x26e   : > { %3739 = vmatpush.bf16.msk.msrb.mxu0 %vm4960_vm11, %v3738_v26  ;;  %3747 = vmatpush.bf16.msk.msra.mxu1 %vm4890_vm15, %v3746_v53  ;;  %v4387_v53 = vunpack.i.h.bf16 %v4385_v33 }
 0x270   : > { %v4345_v11 = vpop.permute.xlu0 %4344  ;;  %v4370_v42 = vpop.permute.xlu1 %4369 }
 0x271   : > { %v4347_v49 = vunpack.i.h.bf16 %v4345_v11  ;;  %v4346_v40 = vunpack.i.l.bf16 %v4345_v11  ;;  %v4372_v17 = vunpack.i.h.bf16 %v4370_v42  ;;  %v4371_v57 = vunpack.i.l.bf16 %v4370_v42 }
 0x273   : > { %v1773_v34 = vsel %vm6279_vm8, %v4347_v49, %v4352_v61  ;;  %v1777_v62 = vsel %vm6280_vm9, %v4352_v61, %v4347_v49  ;;  %v1772_v56 = vsel %vm6281_vm1, %v4346_v40, %v4351_v28  ;;  %v1776_v2 = vsel %vm6275_vm0, %v4351_v28, %v4346_v40  ;;  %vm6284_vm8 = vmmov %vm6283_vm7 }
 0x274   : > { %v3741_v4 = vpack.c.bf16 %v1773_v34, %v1772_v56  ;;  %v3749_v63 = vpack.c.bf16 %v1777_v62, %v1776_v2  ;;  %v1981_v23 = vsel %vm6284_vm8, %v4362_v5, %v4382_v12  ;;  %vm6285_vm9 = vmmov %vm6283_vm7  ;;  %v4033_v34 = vld [vmem:[%s6170_s2 + $0x50] sm:$0xff]  ;;  %v4035_v62 = vld [vmem:[%s6170_s2 + $0x60] sm:$0xff] }
 0x275   : > { %v1984_v7 = vsel %vm6285_vm9, %v4381_v6, %v4361_v10  ;;  %vm6286_vm1 = vmmov %vm6283_vm7  ;;  %v2001_v54 = vpack.c.bf16 %v1981_v23, %v1980_v41  ;;  %v4032_v10 = vld [vmem:[%s6170_s2 + $0x48] sm:$0xff]  ;;  %v4034_v56 = vld [vmem:[%s6170_s2 + $0x58] sm:$0xff] }
 0x276   : > { %3672 = vmatmul.msk.bf16.gmra.mxu2 %vm6276_vm14, %v4028_v58  ;;  %3742 = vmatpush.bf16.msk.msrb.mxu0 %vm4960_vm11, %v3741_v4  ;;  %v1985_v19 = vsel %vm6286_vm1, %v4382_v12, %v4362_v5  ;;  %vm6287_vm0 = vmmov %vm6282_vm12  ;;  %v4036_v2 = vld [vmem:[%s6170_s2 + $0x68] sm:$0xff]  ;;  %v4037_v4 = vld [vmem:[%s6170_s2 + $0x70] sm:$0xff] }
 0x277   : > { %3680 = vmatmul.msk.bf16.gmra.mxu3 %vm6282_vm12, %v4028_v58  ;;  %3750 = vmatpush.bf16.msk.msra.mxu1 %vm4890_vm15, %v3749_v63  ;;  %v3796_v22 = vpack.c.bf16 %v1985_v19, %v1984_v7  ;;  %vm6288_vm14 = vmmov %vm6287_vm0  ;;  %vm6289_vm12 = vcmp.lt.s32.totalorder %v4744_v14, 111  ;;  %v4039_v63 = vld [vmem:[%s6170_s2 + $0x80] sm:$0xff]  ;;  %v4038_v12 = vld [vmem:[%s6170_s2 + $0x78] sm:$0xff] }
 0x278   : > { %v4365_v8 = vpop.permute.xlu0 %4364  ;;  %vm6290_vm7 = vmmov %vm6289_vm12  ;;  %v4040_v7 = vld [vmem:[%s6170_s2 + $0x88] sm:$0xff] }
 0x279   : > { %3699 = vmatmul.msk.bf16.vlgmr.msra.gmra.mxu0 %vm6287_vm0, %v4029_v60  ;;  %v4367_v21 = vunpack.i.h.bf16 %v4365_v8  ;;  %v4366_v9 = vunpack.i.l.bf16 %v4365_v8  ;;  %vm6291_vm8 = vmmov %vm6290_vm7 }
 0x27a   : > { %3707 = vmatmul.msk.bf16.vlgmr.msrb.gmra.mxu1 %vm6288_vm14, %v4029_v60  ;;  %2025 = vmatpush.bf16.msra.mxu0 %v2001_v54  ;;  %vm6292_vm9 = vmmov %vm6290_vm7 }
 0x27b   : > { %3797 = vmatpush.bf16.msk.msrb.mxu1 %vm5099_vm5, %v3796_v22  ;;  %vm6293_vm1 = vmmov %vm6290_vm7 }
 0x27c   : > { %v2082_v0 = vsel %vm6293_vm1, %v4367_v21, %v4372_v17  ;;  %vm6294_vm0 = vmmov %vm6293_vm1 }
 0x27d   : > { %v2086_v15 = vsel %vm6294_vm0, %v4372_v17, %v4367_v21  ;;  %vm6295_vm14 = vmmov %vm6294_vm0 }
 0x27e   : > { %v2081_v38 = vsel %vm6295_vm14, %v4366_v9, %v4371_v57 }
 0x27f   : > { %v3819_v13 = vpack.c.bf16 %v2082_v0, %v2081_v38 }
 0x280   : > { %v4375_v52 = vpop.permute.xlu0 %4374 }
 0x281   : > { %v4377_v50 = vunpack.i.h.bf16 %v4375_v52  ;;  %v4376_v48 = vunpack.i.l.bf16 %v4375_v52 }
 0x283   : > { %v2083_v20 = vsel %vm6289_vm12, %v4356_v31, %v4376_v48  ;;  %v2084_v39 = vsel %vm6290_vm7, %v4357_v46, %v4377_v50  ;;  %v2087_v25 = vsel %vm6291_vm8, %v4376_v48, %v4356_v31  ;;  %v2088_v36 = vsel %vm6292_vm9, %v4377_v50, %v4357_v46  ;;  %vm6296_vm12 = vmmov %vm6294_vm0 }
 0x284   : > { %v3816_v51 = vpack.c.bf16 %v2084_v39, %v2083_v20  ;;  %v3824_v16 = vpack.c.bf16 %v2088_v36, %v2087_v25  ;;  %v2085_v45 = vsel %vm6296_vm12, %v4371_v57, %v4366_v9  ;;  %vm6297_vm7 = vcmask 261120  }
 0x285   : > { %vm6298_vm8 = vmmov %vm6297_vm7  ;;  %v3827_v18 = vpack.c.bf16 %v2086_v15, %v2085_v45  ;;  %vm6299_vm9 = vcmp.lt.s32.totalorder %v4744_v14, 112 }
 0x286   : > { %3721 = vmatmul.msk.bf16.vlgmr.msra.gmra.mxu2 %vm6297_vm7, %v4031_v44  ;;  %vm6300_vm1 = vmmov %vm6299_vm9 }
 0x287   : > { %3723 = vmatmul.msk.bf16.vlgmr.msra.gmra.mxu3 %vm6298_vm8, %v4031_v44  ;;  %3817 = vmatpush.bf16.msk.msra.mxu2 %vm4960_vm11, %v3816_v51  ;;  %vm6301_vm0 = vmmov %vm6297_vm7 }
 0x288   : > { %3825 = vmatpush.bf16.msk.msra.mxu3 %vm5151_vm2, %v3824_v16  ;;  %v4390_v26 = vpop.permute.xlu0 %4389  ;;  %vm6302_vm14 = vmmov %vm6300_vm1 }
 0x289   : > { %v4392_v11 = vunpack.i.h.bf16 %v4390_v26  ;;  %v4391_v61 = vunpack.i.l.bf16 %v4390_v26  ;;  %3700 = vmatmul.msk.bf16.gmra.mxu0 %vm6301_vm0, %v4030_v43  ;;  %vm6303_vm12 = vmmov %vm6300_vm1 }
 0x28a   : > { %vm6304_vm7 = vmmov %vm6301_vm0 }
 0x28b   : > { %3820 = vmatpush.bf16.msk.msra.mxu2 %vm4960_vm11, %v3819_v13  ;;  %v1982_v28 = vsel %vm6299_vm9, %v4391_v61, %v4386_v55  ;;  %v1983_v49 = vsel %vm6300_vm1, %v4392_v11, %v4387_v53  ;;  %v1978_v40 = vsel %vm6302_vm14, %v4386_v55, %v4391_v61  ;;  %v1979_v58 = vsel %vm6303_vm12, %v4387_v53, %v4392_v11  ;;  %vm6305_vm8 = vmmov %vm6301_vm0 }
 0x28c   : > { %3828 = vmatpush.bf16.msk.msra.mxu3 %vm5151_vm2, %v3827_v18  ;;  %v3799_v59 = vpack.c.bf16 %v1983_v49, %v1982_v28  ;;  %3708 = vmatmul.msk.bf16.gmra.mxu1 %vm6304_vm7, %v4030_v43  ;;  %v1999_v5 = vpack.c.bf16 %v1979_v58, %v1978_v40  ;;  %vm6306_vm9 = vmmov %vm6301_vm0 }
 0x28d   : > { %vm6307_vm1 = vmmov %vm6301_vm0 }
 0x28e   : > { %2026 = vmatpush.bf16.msra.mxu0 %v1999_v5  ;;  %3800 = vmatpush.bf16.msk.msrb.mxu1 %vm5099_vm5, %v3799_v59  ;;  %vm6308_vm14 = vmmov %vm6301_vm0 }
 0x28f   : > { %vm6309_vm12 = vmmov %vm6301_vm0 }
 0x290   : > { %vm6310_vm7 = vmmov %vm6301_vm0 }
 0x296   : > { %3722 = vmatmul.msk.bf16.gmra.mxu2 %vm6305_vm8, %v4032_v10  ;;  %vm6311_vm8 = vmmov %vm6301_vm0 }
 0x297   : > { %3724 = vmatmul.msk.bf16.gmra.mxu3 %vm6306_vm9, %v4032_v10  ;;  %vm6312_vm9 = vmmov %vm6301_vm0 }
 0x299   : > { %3743 = vmatmul.msk.bf16.vlgmr.msrb.gmra.mxu0 %vm6307_vm1, %v4033_v34  ;;  %vm6313_vm1 = vmmov %vm6301_vm0 }
 0x29c   : > { %3751 = vmatmul.msk.bf16.vlgmr.msra.gmra.mxu1 %vm6301_vm0, %v4033_v34 }
 0x2a6   : > { %3771 = vmatmul.msk.bf16.vlgmr.msrb.gmra.mxu2 %vm6308_vm14, %v4035_v62  ;;  %vm6314_vm14 = vmmov %vm6301_vm0 }
 0x2a7   : > { %3779 = vmatmul.msk.bf16.vlgmr.msrb.gmra.mxu3 %vm6309_vm12, %v4035_v62  ;;  %vm6315_vm12 = vmmov %vm6301_vm0 }
 0x2a9   : > { %3744 = vmatmul.msk.bf16.gmra.mxu0 %vm6310_vm7, %v4034_v56  ;;  %vm6316_vm7 = vmmov %vm6301_vm0 }
 0x2ac   : > { %3752 = vmatmul.msk.bf16.gmra.mxu1 %vm6311_vm8, %v4034_v56  ;;  %vm6317_vm8 = vmmov %vm6301_vm0 }
 0x2b6   : > { %3772 = vmatmul.msk.bf16.gmra.mxu2 %vm6312_vm9, %v4036_v2  ;;  %vm6318_vm9 = vmmov %vm6301_vm0 }
 0x2b7   : > { %3780 = vmatmul.msk.bf16.gmra.mxu3 %vm6313_vm1, %v4036_v2  ;;  %vm6319_vm1 = vmmov %vm6301_vm0 }
 0x2b9   : > { %3793 = vmatmul.msk.bf16.vlgmr.msra.gmra.mxu0 %vm6301_vm0, %v4037_v4 }
 0x2bc   : > { %3801 = vmatmul.msk.bf16.vlgmr.msrb.gmra.mxu1 %vm6314_vm14, %v4037_v4  ;;  %vm6320_vm14 = vcmp.lt.s32.totalorder %v4744_v14, 16 }
 0x2c6   : > { %3821 = vmatmul.msk.bf16.vlgmr.msra.gmra.mxu2 %vm6315_vm12, %v4039_v63  ;;  %vm6321_vm12 = vmmov %vm6320_vm14 }
 0x2c7   : > { %3829 = vmatmul.msk.bf16.vlgmr.msra.gmra.mxu3 %vm6316_vm7, %v4039_v63  ;;  %vm6322_vm7 = vmmov %vm6321_vm12 }
 0x2c8   : > { %v1396_v6 = vpop.f32.mrf.mxu2 }
 0x2c9   : > { %v1415_v41 = vpop.f32.mrf.mxu3  ;;  %3794 = vmatmul.msk.bf16.gmra.mxu0 %vm6317_vm8, %v4038_v12  ;;  %vm6323_vm8 = vmmov %vm6322_vm7 }
 0x2cc   : > { %3802 = vmatmul.msk.bf16.gmra.mxu1 %vm6318_vm9, %v4038_v12  ;;  %vm6324_vm9 = vcmp.lt.s32.totalorder %v4744_v14, 17 }
 0x2d0   : > { %v5571_v23 = vpop.f32.mrf.mxu2 }
 0x2d1   : > { %v5573_v60 = vpop.f32.mrf.mxu3 }
 0x2d6   : > { %3822 = vmatmul.msk.bf16.gmra.mxu2 %vm6319_vm1, %v4040_v7  ;;  %v1450_v19 = vpop.f32.mrf.mxu0  ;;  %vm6325_vm1 = vmmov %vm6324_vm9 }
 0x2d7   : > { %3830 = vmatmul.msk.bf16.gmra.mxu3 %vm6301_vm0, %v4040_v7  ;;  %v1451_v54 = vadd.f32 %v1450_v19, %v1396_v6  ;;  %v1469_v22 = vpop.f32.mrf.mxu1  ;;  %vm6326_vm0 = vmmov %vm6325_vm1 }
 0x2d8   : > { %v1401_v8 = vpop.f32.mrf.mxu2  ;;  %v1470_v46 = vadd.f32 %v1469_v22, %v1415_v41 }
 0x2d9   : > { %v1420_v42 = vpop.f32.mrf.mxu3 }
 0x2de   : > { %v5580_v21 = vpop.f32.mrf.mxu0 }
 0x2df   : > { %v5584_v31 = vpop.f32.mrf.mxu1 }
 0x2e0   : > { %v5582_v52 = vpop.f32.mrf.mxu2 }
 0x2e1   : > { %v5586_v9 = vpop.f32.mrf.mxu3 }
 0x2e6   : > { %v1455_v50 = vpop.f32.mrf.mxu0 }
 0x2e7   : > { %v1474_v44 = vpop.f32.mrf.mxu1  ;;  %v1456_v16 = vadd.f32 %v1455_v50, %v1401_v8 }
 0x2e8   : > { %v1475_v20 = vadd.f32 %v1474_v44, %v1420_v42 }
 0x2e9   : > { %v1545_v48 = vpop.f32.mrf.mxu2 }
 0x2ea   : > { %v1574_v17 = vadd.f32 %v1545_v48, %v1451_v54  ;;  %v1564_v57 = vpop.f32.mrf.mxu3 }
 0x2eb   : > { %v1575_v39 = vadd.f32 %v1564_v57, %v1470_v46 }
 0x2ee   : > { %v5588_v25 = vpop.f32.mrf.mxu0 }
 0x2ef   : > { %v5590_v0 = vpop.f32.mrf.mxu1 }
 0x2f1   : > { %v1547_v36 = vpop.f32.mrf.mxu2 }
 0x2f2   : > { %v1566_v51 = vpop.f32.mrf.mxu3 }
 0x2f6   : > { %v1648_v15 = vpop.f32.mrf.mxu0 }
 0x2f7   : > { %v1667_v45 = vpop.f32.mrf.mxu1  ;;  %v1677_v61 = vadd.f32 %v1648_v15, %v1574_v17 }
 0x2f8   : > { %v1678_v13 = vadd.f32 %v1667_v45, %v1575_v39 }
 0x2f9   : > { %v1550_v38 = vpop.f32.mrf.mxu2 }
 0x2fa   : > { %v1578_v33 = vadd.f32 %v1550_v38, %v1456_v16  ;;  %v1569_v43 = vpop.f32.mrf.mxu3 }
 0x2fb   : > { %v1579_v18 = vadd.f32 %v1569_v43, %v1475_v20 }
 0x2fe   : > { %v1650_v26 = vpop.f32.mrf.mxu0 }
 0x2ff   : > { %v1669_v55 = vpop.f32.mrf.mxu1 }
 0x301   : > { %v5592_v53 = vpop.f32.mrf.mxu2 }
 0x302   : > { %v5594_v11 = vpop.f32.mrf.mxu3 }
 0x306   : > { %v1653_v28 = vpop.f32.mrf.mxu0 }
 0x307   : > { %v1681_v40 = vadd.f32 %v1653_v28, %v1578_v33 }
 0x309   : > { %v1719_v49 = vpop.f32.mrf.mxu2  ;;  %v1672_v58 = vpop.f32.mrf.mxu1 }
 0x30a   : > { %v1748_v59 = vadd.f32 %v1719_v49, %v1677_v61  ;;  %v1738_v5 = vpop.f32.mrf.mxu3  ;;  %v1682_v10 = vadd.f32 %v1672_v58, %v1579_v18  ;;  %v1472_v18 = vadd.f32 %v5584_v31, %v5573_v60 }
 0x30b   : > { %v1749_v34 = vadd.f32 %v1738_v5, %v1678_v13  ;;  %v1453_v13 = vadd.f32 %v5580_v21, %v5571_v23 }
 0x30c   : > { %v1577_v28 = vadd.f32 %v1566_v51, %v1472_v18 }
 0x30d   : > { %v1576_v61 = vadd.f32 %v1547_v36, %v1453_v13 }
 0x30e   : > { %v5596_v62 = vpop.f32.mrf.mxu0  ;;  %v1680_v58 = vadd.f32 %v1669_v55, %v1577_v28 }
 0x30f   : > { %v1679_v49 = vadd.f32 %v1650_v26, %v1576_v61 }
 0x311   : > { %v1721_v56 = vpop.f32.mrf.mxu2  ;;  %v5598_v2 = vpop.f32.mrf.mxu1 }
 0x312   : > { %v1740_v4 = vpop.f32.mrf.mxu3 }
 0x313   : > { %v1751_v35 = vadd.f32 %v1740_v4, %v1680_v58 }
 0x316   : > { %v1822_v63 = vpop.f32.mrf.mxu0 }
 0x319   : > { %v1724_v12 = vpop.f32.mrf.mxu2  ;;  %v1841_v6 = vpop.f32.mrf.mxu1 }
 0x31a   : > { %v5600_v41 = vadd.f32 %v1724_v12, %v1681_v40  ;;  %v1743_v7 = vpop.f32.mrf.mxu3  ;;  %v1851_v40 = vadd.f32 %v1822_v63, %v1748_v59  ;;  %v1852_v5 = vadd.f32 %v1841_v6, %v1749_v34 }
 0x31b   : > { %v5602_v19 = vadd.f32 %v1743_v7, %v1682_v10  ;;  %v1750_v7 = vadd.f32 %v1721_v56, %v1679_v49  ;;  %v4578_v56 = vld [vmem:[%s4671_s13] sm:$0xff] }
 0x31e   : > { %v1824_v8 = vpop.f32.mrf.mxu0 }
 0x31f   : > { %v1853_v27 = vadd.f32 %v1824_v8, %v1750_v7 }
 0x321   : > { %v5604_v54 = vpop.f32.mrf.mxu2  ;;  %v1843_v22 = vpop.f32.mrf.mxu1 }
 0x322   : > { %v5606_v42 = vpop.f32.mrf.mxu3  ;;  %v1854_v21 = vadd.f32 %v1843_v22, %v1751_v35  ;;  %v4580_v35 = vld [vmem:[%s4671_s13 + $0x10] sm:$0xff]  ;;  %v4581_v22 = vld [vmem:[%s4671_s13 + $0x18] sm:$0xff] }
 0x326   : > { %v1827_v48 = vpop.f32.mrf.mxu0 }
 0x329   : > { %v1925_v46 = vpop.f32.mrf.mxu2  ;;  %v5608_v44 = vpop.f32.mrf.mxu1 }
 0x32a   : > { %v1944_v50 = vpop.f32.mrf.mxu3  ;;  %v1954_v29 = vadd.f32 %v1925_v46, %v1851_v40 }
 0x32b   : > { %v1955_v1 = vadd.f32 %v1944_v50, %v1852_v5  ;;  %v4579_v50 = vld [vmem:[%s4671_s13 + $0x8] sm:$0xff] }
 0x32e   : > { %v5610_v20 = vpop.f32.mrf.mxu0 }
 0x331   : > { %v1927_v17 = vpop.f32.mrf.mxu2  ;;  %v5612_v39 = vpop.f32.mrf.mxu1 }
 0x332   : > { %v1946_v57 = vpop.f32.mrf.mxu3  ;;  %v1956_v31 = vadd.f32 %v1927_v17, %v1853_v27 }
 0x333   : > { %v1957_v51 = vadd.f32 %v1946_v57, %v1854_v21  ;;  %v4582_v21 = vld [vmem:[%s4671_s13 + $0x20] sm:$0xff] }
 0x336   : > { %v2028_v38 = vpop.f32.mrf.mxu0 }
 0x337   : > { %v2057_v23 = vadd.f32 %v2028_v38, %v1954_v29 }
 0x339   : > { %v1930_v16 = vpop.f32.mrf.mxu2  ;;  %v2047_v45 = vpop.f32.mrf.mxu1 }
 0x33a   : > { %v5614_v15 = vpop.f32.mrf.mxu3  ;;  %v2058_v60 = vadd.f32 %v2047_v45, %v1955_v1  ;;  %v1458_v1 = vadd.f32 %v5588_v25, %v5582_v52  ;;  %v1855_v25 = vadd.f32 %v1827_v48, %v5600_v41 }
 0x33c   : > { %v1580_v17 = vadd.f32 %v5592_v53, %v1458_v1  ;;  %v1856_v53 = vadd.f32 %v5608_v44, %v5602_v19  ;;  %v1958_v40 = vadd.f32 %v1930_v16, %v1855_v25 }
 0x33e   : > { %v2030_v10 = vpop.f32.mrf.mxu0  ;;  %v1683_v52 = vadd.f32 %v5596_v62, %v1580_v17  ;;  %v1959_v48 = vadd.f32 %v5614_v15, %v1856_v53 }
 0x33f   : > { %v2059_v55 = vadd.f32 %v2030_v10, %v1956_v31 }
 0x340   : > { %v1754_v49 = vadd.f32 %v5604_v54, %v1683_v52 }
 0x341   : > { %v5616_v33 = vpop.f32.mrf.mxu2  ;;  %v2049_v30 = vpop.f32.mrf.mxu1 }
 0x342   : > { %v5618_v43 = vpop.f32.mrf.mxu3  ;;  %v2060_v59 = vadd.f32 %v2049_v30, %v1957_v51  ;;  %v4584_v51 = vld [vmem:[%s4671_s13 + $0x30] sm:$0xff] }
 0x346   : > { %v2033_v4 = vpop.f32.mrf.mxu0 }
 0x347   : > { %v2061_v19 = vadd.f32 %v2033_v4, %v1958_v40 }
 0x349   : > { %v2131_v12 = vpop.f32.mrf.mxu2  ;;  %v2052_v27 = vpop.f32.mrf.mxu1 }
 0x34a   : > { %v2150_v3 = vpop.f32.mrf.mxu3  ;;  %v2160_v36 = vadd.f32 %v2131_v12, %v2057_v23  ;;  %v2062_v44 = vadd.f32 %v2052_v27, %v1959_v48 }
 0x34b   : > { %v2161_v26 = vadd.f32 %v2150_v3, %v2058_v60  ;;  %v1477_v3 = vadd.f32 %v5590_v0, %v5586_v9 }
 0x34c   : > { %v2168_v63 = vadd.f32 %v4578_v56, %v2160_v36 }
 0x34d   : > { %v2169_v8 = vadd.f32 %v4579_v50, %v2161_v26  ;;  %v1581_v45 = vadd.f32 %v5594_v11, %v1477_v3 }
 0x34e   : > { %v5633_v57 = vmax.f32 %v2168_v63, 0.0  ;;  %v2035_v16 = vpop.f32.mrf.mxu0 }
 0x34f   : > { %v5638_v18 = vmax.f32 %v2169_v8, 0.0  ;;  %v1684_v0 = vadd.f32 %v5598_v2, %v1581_v45  ;;  %v1857_v2 = vadd.f32 %v5610_v20, %v1754_v49 }
 0x351   : > { %v2133_v34 = vpop.f32.mrf.mxu2  ;;  %v1755_v41 = vadd.f32 %v5606_v42, %v1684_v0  ;;  %v1960_v58 = vadd.f32 %v5616_v33, %v1857_v2  ;;  %v2054_v42 = vpop.f32.mrf.mxu1 }
 0x352   : > { %v2162_v6 = vadd.f32 %v2133_v34, %v2059_v55  ;;  %v2152_v46 = vpop.f32.mrf.mxu3  ;;  %v4585_v55 = vld [vmem:[%s4671_s13 + $0x38] sm:$0xff] }
 0x353   : > { %v2163_v13 = vadd.f32 %v2152_v46, %v2060_v59  ;;  %v1858_v54 = vadd.f32 %v5612_v39, %v1755_v41  ;;  %v2063_v12 = vadd.f32 %v2035_v16, %v1960_v58  ;;  %v4583_v39 = vld [vmem:[%s4671_s13 + $0x28] sm:$0xff] }
 0x354   : > { %v2170_v29 = vadd.f32 %v4580_v35, %v2162_v6 }
 0x355   : > { %v2171_v30 = vadd.f32 %v4581_v22, %v2163_v13  ;;  %v1961_v5 = vadd.f32 %v5618_v43, %v1858_v54 }
 0x356   : > { %v5635_v38 = vmax.f32 %v2170_v29, 0.0 }
 0x357   : > { %v5640_v61 = vmax.f32 %v2171_v30, 0.0  ;;  %v2064_v7 = vadd.f32 %v2054_v42, %v1961_v5 }
 0x358   : > { %v5646_v9 = vpack.i.bf16 %v5635_v38, %v5633_v57 }
 0x359   : > { %v2136_v28 = vpop.f32.mrf.mxu2  ;;  %v5653_v11 = vpack.i.bf16 %v5640_v61, %v5638_v18 }
 0x35a   : > { %v2155_v62 = vpop.f32.mrf.mxu3  ;;  %4394 = vrot.lane.b32.xlu0 %v5646_v9, %s4594_s14  ;;  %v2164_v15 = vadd.f32 %v2136_v28, %v2061_v19 }
 0x35b   : > { %4414 = vrot.lane.b32.xlu2 %v5653_v11, %s4595_s15  ;;  %4399 = vrot.lane.b32.xlu1 %v5653_v11, %s4594_s14  ;;  %v2165_v10 = vadd.f32 %v2155_v62, %v2062_v44 }
 0x35c   : > { %v2172_v20 = vadd.f32 %v4582_v21, %v2164_v15 }
 0x35d   : > { %v2173_v36 = vadd.f32 %v4583_v39, %v2165_v10 }
 0x35e   : > { %v5674_v34 = vmax.f32 %v2172_v20, 0.0 }
 0x35f   : > { %v5678_v56 = vmax.f32 %v2173_v36, 0.0 }
 0x361   : > { %v2138_v23 = vpop.f32.mrf.mxu2 }
 0x362   : > { %v2166_v60 = vadd.f32 %v2138_v23, %v2063_v12  ;;  %v2157_v31 = vpop.f32.mrf.mxu3  ;;  %4434 = vrot.lane.b32.xlu0 %v5653_v11, %s4596_s16 }
 0x363   : > { %v2167_v33 = vadd.f32 %v2157_v31, %v2064_v7 }
 0x364   : > { %v2174_v26 = vadd.f32 %v4584_v51, %v2166_v60 }
 0x365   : > { %v2175_v59 = vadd.f32 %v4585_v55, %v2167_v33 }
 0x366   : > { %v5676_v43 = vmax.f32 %v2174_v26, 0.0  ;;  %v4042_v26 = vld [vmem:[%s6171_s3 + $0x8] sm:$0xff] }
 0x367   : > { %v5680_v63 = vmax.f32 %v2175_v59, 0.0 }
 0x368   : > { %v4403_v6 = vpack.i.bf16 %v5676_v43, %v5674_v34 }
 0x369   : > { %v4418_v46 = vpack.i.bf16 %v5680_v63, %v5678_v56 }
 0x36a   : > { %4404 = vrot.lane.b32.xlu1 %v4403_v6, %s4594_s14 }
 0x36b   : > { %4419 = vrot.lane.b32.xlu2 %v4418_v46, %s4594_s14  ;;  %4439 = vrot.lane.b32.xlu0 %v4418_v46, %s4595_s15 }
 0x372   : > { %4409 = vrot.lane.b32.xlu1 %v5646_v9, %s4595_s15 }
 0x373   : > { %4444 = vrot.lane.b32.xlu0 %v4403_v6, %s4596_s16  ;;  %4424 = vrot.lane.b32.xlu2 %v4403_v6, %s4595_s15 }
 0x37a   : > { %4454 = vrot.lane.b32.xlu1 %v4418_v46, %s4596_s16 }
 0x37b   : > { %4449 = vrot.lane.b32.xlu0 %v5646_v9, %s4597_s17  ;;  %4429 = vrot.lane.b32.xlu2 %v5646_v9, %s4596_s16 }
 0x382   : > { %4459 = vrot.lane.b32.xlu1 %v4403_v6, %s4597_s17 }
 0x383   : > { %4494 = vrot.lane.b32.xlu0 %v5653_v11, %s4599_s19  ;;  %4474 = vrot.lane.b32.xlu2 %v4418_v46, %s4597_s17 }
 0x38a   : > { %4464 = vrot.lane.b32.xlu1 %v5653_v11, %s4597_s17 }
 0x38b   : > { %4499 = vrot.lane.b32.xlu0 %v4418_v46, %s4598_s18  ;;  %4479 = vrot.lane.b32.xlu2 %v5653_v11, %s4598_s18 }
 0x392   : > { %4469 = vrot.lane.b32.xlu1 %v5646_v9, %s4598_s18 }
 0x393   : > { %4504 = vrot.lane.b32.xlu0 %v4403_v6, %s4599_s19  ;;  %4484 = vrot.lane.b32.xlu2 %v4403_v6, %s4598_s18 }
 0x39a   : > { %4514 = vrot.lane.b32.xlu1 %v4418_v46, %s4599_s19 }
 0x39b   : > { %4509 = vrot.lane.b32.xlu0 %v5646_v9, %s4600_s20  ;;  %4489 = vrot.lane.b32.xlu2 %v5646_v9, %s4599_s19 }
 0x3a2   : > { %4519 = vrot.lane.b32.xlu1 %v4403_v6, %s4600_s20 }
 0x3a3   : > { %4539 = vrot.lane.b32.xlu0 %v4418_v46, %s4601_s21  ;;  %4529 = vrot.lane.b32.xlu2 %v4418_v46, %s4600_s20 }
 0x3aa   : > { %4524 = vrot.lane.b32.xlu1 %v5653_v11, %s4600_s20 }
 0x3ab   : > { %4534 = vrot.lane.b32.xlu2 %v4403_v6, %s4601_s21 }
 0x3b2   : > { %4544 = vrot.lane.b32.xlu1 %v5646_v9, %s4601_s21 }
 0x3b3   : > { %4549 = vrot.lane.b32.xlu2 %v5653_v11, %s4601_s21 }
 0x3b5   : > { %v4415_v4 = vpop.permute.xlu2 %4414 }
 0x3b6   : > { %v4417_v21 = vunpack.i.h.bf16 %v4415_v4  ;;  %v4416_v60 = vunpack.i.l.bf16 %v4415_v4 }
 0x3c5   : > { %v4420_v50 = vpop.permute.xlu2 %4419 }
 0x3c6   : > { %v4422_v29 = vunpack.i.h.bf16 %v4420_v50  ;;  %v4421_v3 = vunpack.i.l.bf16 %v4420_v50 }
 0x3cc   : > { %v4395_v8 = vpop.permute.xlu0 %4394 }
 0x3cd   : > { %v4425_v13 = vpop.permute.xlu2 %4424  ;;  %v4400_v1 = vpop.permute.xlu1 %4399  ;;  %v4397_v22 = vunpack.i.h.bf16 %v4395_v8  ;;  %v4396_v30 = vunpack.i.l.bf16 %v4395_v8  ;;  %v4041_v8 = vld [vmem:[%s6171_s3] sm:$0xff] }
 0x3ce   : > { %v4402_v45 = vunpack.i.h.bf16 %v4400_v1  ;;  %v4401_v52 = vunpack.i.l.bf16 %v4400_v1  ;;  %v4427_v53 = vunpack.i.h.bf16 %v4425_v13  ;;  %v4426_v28 = vunpack.i.l.bf16 %v4425_v13 }
 0x3d0   : > { %v2242_v12 = vsel %vm6322_vm7, %v4401_v52, %v4396_v30 }
 0x3d4   : > { %v5726_v27 = vpop.permute.xlu0 %4434 }
 0x3d5   : > { %v5728_v35 = vpop.permute.xlu2 %4429  ;;  %v4436_v1 = vunpack.i.l.bf16 %v5726_v27 }
 0x3dc   : > { %v4405_v17 = vpop.permute.xlu1 %4404 }
 0x3dd   : > { %v4440_v25 = vpop.permute.xlu0 %4439  ;;  %v4407_v9 = vunpack.i.h.bf16 %v4405_v17  ;;  %v4406_v0 = vunpack.i.l.bf16 %v4405_v17  ;;  %v5746_v42 = vpop.permute.xlu2 %4474 }
 0x3de   : > { %v4442_v11 = vunpack.i.h.bf16 %v4440_v25  ;;  %v4441_v49 = vunpack.i.l.bf16 %v4440_v25 }
 0x3df   : > { %v2241_v40 = vsel %vm6320_vm14, %v4407_v9, %v4422_v29  ;;  %v2245_v62 = vsel %vm6321_vm12, %v4422_v29, %v4407_v9  ;;  %v2240_v41 = vsel %vm6322_vm7, %v4406_v0, %v4421_v3  ;;  %v2244_v48 = vsel %vm6323_vm8, %v4421_v3, %v4406_v0  ;;  %vm6327_vm14 = vmmov %vm6326_vm0 }
 0x3e0   : > { %v2202_v2 = vsel %vm6324_vm9, %v4426_v28, %v4441_v49  ;;  %v2203_v19 = vsel %vm6325_vm1, %v4427_v53, %v4442_v11  ;;  %v2206_v54 = vsel %vm6326_vm0, %v4441_v49, %v4426_v28  ;;  %v2207_v44 = vsel %vm6327_vm14, %v4442_v11, %v4427_v53  ;;  %vm6328_vm12 = vmmov %vm6322_vm7 }
 0x3e1   : > { %v3850_v16 = vpack.c.bf16 %v2207_v44, %v2206_v54  ;;  %v3857_v58 = vpack.c.bf16 %v2203_v19, %v2202_v2  ;;  %v2260_v15 = vpack.c.bf16 %v2241_v40, %v2240_v41  ;;  %v3838_v5 = vpack.c.bf16 %v2245_v62, %v2244_v48  ;;  %vm6330_vm9 = vmmov %vm6322_vm7 }
 0x3e2   : > { %v2243_v10 = vsel %vm6328_vm12, %v4402_v45, %v4397_v22  ;;  %vm6329_vm8 = vnez %v6210_v47  ;;  %v2238_v7 = vsel %vm6330_vm9, %v4396_v30, %v4401_v52  ;;  %vm6331_vm1 = vmmov %vm6322_vm7  ;;  %vm6335_vm9 = vcmask 261120  }
 0x3e3   : > { %3839 = vmatpush.bf16.msk.msrb.mxu0 %vm6329_vm8, %v3838_v5  ;;  %2289 = vmatpush.bf16.msra.mxu1 %v2260_v15  ;;  %v2239_v23 = vsel %vm6331_vm1, %v4397_v22, %v4402_v45  ;;  %v3841_v31 = vpack.c.bf16 %v2243_v10, %v2242_v12  ;;  %vm6332_vm14 = vmmov %vm6326_vm0  ;;  %v4437_v47 = vunpack.i.h.bf16 %v5726_v27  ;;  %v4432_v29 = vunpack.i.h.bf16 %v5728_v35  ;;  %v4043_v12 = vld [vmem:[%s6171_s3 + $0x10] sm:$0xff] }
 0x3e4   : > { %3851 = vmatpush.bf16.msk.msrb.mxu2 %vm4763_vm4, %v3850_v16  ;;  %3858 = vmatpush.bf16.msk.msrb.mxu3 %vm4788_vm6, %v3857_v58  ;;  %v4410_v20 = vpop.permute.xlu1 %4409  ;;  %v2258_v51 = vpack.c.bf16 %v2239_v23, %v2238_v7  ;;  %vm6333_vm12 = vmmov %vm6326_vm0  ;;  %v4431_v3 = vunpack.i.l.bf16 %v5728_v35  ;;  %v2496_v19 = vpack.c.bf16 %v5676_v43, %v5674_v34  ;;  %v4477_v54 = vunpack.i.h.bf16 %v5746_v42 }
 0x3e5   : > { %v4445_v39 = vpop.permute.xlu0 %4444  ;;  %v4412_v36 = vunpack.i.h.bf16 %v4410_v20  ;;  %v4411_v33 = vunpack.i.l.bf16 %v4410_v20  ;;  %vm6334_vm7 = vmmov %vm6326_vm0  ;;  %v5781_v13 = vpop.permute.xlu2 %4479  ;;  %v4476_v44 = vunpack.i.l.bf16 %v5746_v42  ;;  %v2497_v10 = vpack.c.bf16 %v5680_v63, %v5678_v56 }
 0x3e6   : > { %vm6336_vm1 = vmmov %vm6335_vm9  ;;  %v4447_v30 = vunpack.i.h.bf16 %v4445_v39  ;;  %v4446_v17 = vunpack.i.l.bf16 %v4445_v39  ;;  %v2495_v39 = vpack.c.bf16 %v5640_v61, %v5638_v18 }
 0x3e7   : > { %v2201_v55 = vsel %vm6326_vm0, %v4412_v36, %v4417_v21  ;;  %v2205_v59 = vsel %vm6332_vm14, %v4417_v21, %v4412_v36  ;;  %v2200_v6 = vsel %vm6333_vm12, %v4411_v33, %v4416_v60  ;;  %v2204_v46 = vsel %vm6334_vm7, %v4416_v60, %v4411_v33  ;;  %3842 = vmatpush.bf16.msk.msrb.mxu0 %vm6329_vm8, %v3841_v31  ;;  %vm6338_vm8 = vmmov %vm6336_vm1 }
 0x3e8   : > { %v3853_v4 = vpack.c.bf16 %v2205_v59, %v2204_v46  ;;  %v3860_v50 = vpack.c.bf16 %v2201_v55, %v2200_v6  ;;  %2290 = vmatpush.bf16.msra.mxu1 %v2258_v51  ;;  %vm6339_vm0 = vcmp.lt.s32.totalorder %v4744_v14, 15  ;;  %v2494_v60 = vpack.c.bf16 %v5635_v38, %v5633_v57 }
 0x3e9   : > { %vm6340_vm14 = vmmov %vm6339_vm0 }
 0x3ea   : > { %3843 = vmatmul.msk.bf16.vlgmr.msrb.gmra.mxu0 %vm6335_vm9, %v4042_v26  ;;  %3854 = vmatpush.bf16.msk.msrb.mxu2 %vm4763_vm4, %v3853_v4  ;;  %vm6337_vm4 = vmmov %vm6336_vm1 }
 0x3eb   : > { %3844 = vmatmul.msk.bf16.vlgmr.msra.gmra.mxu1 %vm6336_vm1, %v4042_v26  ;;  %3861 = vmatpush.bf16.msk.msrb.mxu3 %vm4788_vm6, %v3860_v50  ;;  %vm6341_vm12 = vmmov %vm6339_vm0 }
 0x3ec   : > { %v4455_v22 = vpop.permute.xlu1 %4454  ;;  %vm6342_vm7 = vmmov %vm6339_vm0 }
 0x3ed   : > { %v5790_v24 = vpop.permute.xlu0 %4449  ;;  %v4457_v45 = vunpack.i.h.bf16 %v4455_v22  ;;  %v4456_v52 = vunpack.i.l.bf16 %v4455_v22  ;;  %3855 = vmatmul.msk.bf16.vlgmr.msrb.gmra.mxu2 %vm6337_vm4, %v4041_v8  ;;  %vm6343_vm9 = vmmov %vm6339_vm0  ;;  %v4485_v16 = vpop.permute.xlu2 %4484 }
 0x3ee   : > { %3862 = vmatmul.msk.bf16.vlgmr.msrb.gmra.mxu3 %vm6338_vm8, %v4041_v8  ;;  %v2350_v28 = vsel %vm6343_vm9, %v4432_v29, %v4437_v47  ;;  %vm6344_vm1 = vmmov %vm6339_vm0  ;;  %v4452_v33 = vunpack.i.h.bf16 %v5790_v24  ;;  %v4451_v51 = vunpack.i.l.bf16 %v5790_v24  ;;  %v4487_v6 = vunpack.i.h.bf16 %v4485_v16 }
 0x3ef   : > { %v2352_v25 = vsel %vm6339_vm0, %v4447_v30, %v4457_v45  ;;  %v2356_v27 = vsel %vm6340_vm14, %v4457_v45, %v4447_v30  ;;  %v2351_v35 = vsel %vm6341_vm12, %v4446_v17, %v4456_v52  ;;  %v2355_v9 = vsel %vm6342_vm7, %v4456_v52, %v4446_v17  ;;  %vm6345_vm4 = vmmov %vm6339_vm0 }
 0x3f0   : > { %v3870_v0 = vpack.c.bf16 %v2356_v27, %v2355_v9  ;;  %v3877_v53 = vpack.c.bf16 %v2352_v25, %v2351_v35  ;;  %v2354_v11 = vsel %vm6344_vm1, %v4437_v47, %v4432_v29  ;;  %v2349_v49 = vsel %vm6345_vm4, %v4431_v3, %v4436_v1  ;;  %vm6346_vm8 = vmmov %vm6339_vm0  ;;  %v4044_v35 = vld [vmem:[%s6171_s3 + $0x18] sm:$0xff] }
 0x3f1   : > { %v2353_v40 = vsel %vm6346_vm8, %v4436_v1, %v4431_v3  ;;  %v3880_v48 = vpack.c.bf16 %v2350_v28, %v2349_v49  ;;  %vm6348_vm0 = vcmp.lt.s32.totalorder %v4744_v14, 1  ;;  %vm6352_vm7 = vcmask 261120  }
 0x3f2   : > { %3871 = vmatpush.bf16.msk.msra.mxu0 %vm4868_vm13, %v3870_v0  ;;  %3878 = vmatpush.bf16.msk.msrb.mxu1 %vm4890_vm15, %v3877_v53  ;;  %v3873_v41 = vpack.c.bf16 %v2354_v11, %v2353_v40  ;;  %vm6349_vm14 = vmmov %vm6348_vm0  ;;  %v4486_v46 = vunpack.i.l.bf16 %v4485_v16  ;;  %v4482_v53 = vunpack.i.h.bf16 %v5781_v13  ;;  %v4481_v28 = vunpack.i.l.bf16 %v5781_v13  ;;  %v4045_v13 = vld [vmem:[%s6171_s3 + $0x20] sm:$0xff] }
 0x3f3   : > { %vm6350_vm12 = vmmov %vm6348_vm0 }
 0x3f4   : > { %v4460_v2 = vpop.permute.xlu1 %4459  ;;  %vm6353_vm9 = vmmov %vm6352_vm7 }
 0x3f5   : > { %v5818_v58 = vpop.permute.xlu0 %4494  ;;  %v4462_v15 = vunpack.i.h.bf16 %v4460_v2  ;;  %v4461_v5 = vunpack.i.l.bf16 %v4460_v2  ;;  %v4490_v8 = vpop.permute.xlu2 %4489  ;;  %vm6355_vm1 = vmmov %vm6348_vm0 }
 0x3f6   : > { %3874 = vmatpush.bf16.msk.msra.mxu0 %vm4868_vm13, %v3873_v41  ;;  %3881 = vmatpush.bf16.msk.msrb.mxu1 %vm4890_vm15, %v3880_v48  ;;  %vm6351_vm13 = vmmov %vm6348_vm0  ;;  %v4497_v16 = vunpack.i.h.bf16 %v5818_v58 }
 0x3f7   : > { %v2431_v42 = vsel %vm6348_vm0, %v4462_v15, %v4477_v54  ;;  %v2435_v7 = vsel %vm6349_vm14, %v4477_v54, %v4462_v15  ;;  %v2430_v37 = vsel %vm6350_vm12, %v4461_v5, %v4476_v44  ;;  %v2434_v23 = vsel %vm6351_vm13, %v4476_v44, %v4461_v5  ;;  %vm6356_vm4 = vmmov %vm6348_vm0 }
 0x3f8   : > { %v3890_v21 = vpack.c.bf16 %v2435_v7, %v2434_v23  ;;  %v3897_v20 = vpack.c.bf16 %v2431_v42, %v2430_v37  ;;  %vm6357_vm8 = vmmov %vm6348_vm0  ;;  %vm6358_vm14 = vcmp.lt.s32.totalorder %v4744_v14, 127  ;;  %v4496_v15 = vunpack.i.l.bf16 %v5818_v58 }
 0x3f9   : > { %vm6359_vm12 = vmmov %vm6358_vm14  ;;  %v4492_v5 = vunpack.i.h.bf16 %v4490_v8 }
 0x3fa   : > { %2512 = vmatpush.bf16.msrb.mxu0 %v2496_v19  ;;  %2526 = vmatpush.bf16.msra.mxu1 %v2497_v10  ;;  %vm6360_vm13 = vmmov %vm6359_vm12  ;;  %v4491_v10 = vunpack.i.l.bf16 %v4490_v8 }
 0x3fb   : > { %3875 = vmatmul.msk.bf16.vlgmr.msra.gmra.mxu0 %vm6352_vm7, %v4043_v12  ;;  %3882 = vmatmul.msk.bf16.vlgmr.msrb.gmra.mxu1 %vm6353_vm9, %v4043_v12  ;;  %vm6361_vm7 = vmmov %vm6359_vm12 }
 0x3fc   : > { %3891 = vmatpush.bf16.msk.msra.mxu2 %vm4923_vm3, %v3890_v21  ;;  %3898 = vmatpush.bf16.msk.msra.mxu3 %vm4788_vm6, %v3897_v20  ;;  %v4465_v36 = vpop.permute.xlu1 %4464 }
 0x3fd   : > { %v4500_v26 = vpop.permute.xlu0 %4499  ;;  %v4467_v55 = vunpack.i.h.bf16 %v4465_v36  ;;  %v4466_v59 = vunpack.i.l.bf16 %v4465_v36  ;;  %v4530_v44 = vpop.permute.xlu2 %4529 }
 0x3fe   : > { %2513 = vmatpush.bf16.msrb.mxu0 %v2494_v60  ;;  %2527 = vmatpush.bf16.msra.mxu1 %v2495_v39  ;;  %v4502_v4 = vunpack.i.h.bf16 %v4500_v26  ;;  %v4501_v50 = vunpack.i.l.bf16 %v4500_v26 }
 0x3ff   : > { %v2429_v47 = vsel %vm6355_vm1, %v4452_v33, %v4467_v55  ;;  %v2433_v1 = vsel %vm6356_vm4, %v4467_v55, %v4452_v33  ;;  %v2428_v29 = vsel %vm6357_vm8, %v4451_v51, %v4466_v59  ;;  %v2432_v3 = vsel %vm6348_vm0, %v4466_v59, %v4451_v51  ;;  %vm6363_vm1 = vmmov %vm6353_vm9  ;;  %v4049_v59 = vld [vmem:[%s6171_s3 + $0x40] sm:$0xff] }
 0x400   : > { %v2556_v22 = vsel %vm6358_vm14, %v4486_v46, %v4501_v50  ;;  %v2557_v30 = vsel %vm6359_vm12, %v4487_v6, %v4502_v4  ;;  %v2560_v17 = vsel %vm6360_vm13, %v4501_v50, %v4486_v46  ;;  %v2561_v24 = vsel %vm6361_vm7, %v4502_v4, %v4487_v6  ;;  %vm6368_vm14 = vmmov %vm6363_vm1  ;;  %v4046_v6 = vld [vmem:[%s6171_s3 + $0x28] sm:$0xff] }
 0x401   : > { %v3918_v45 = vpack.c.bf16 %v2557_v30, %v2556_v22  ;;  %v3925_v52 = vpack.c.bf16 %v2561_v24, %v2560_v17  ;;  %v3893_v25 = vpack.c.bf16 %v2433_v1, %v2432_v3  ;;  %v3900_v27 = vpack.c.bf16 %v2429_v47, %v2428_v29  ;;  %vm6369_vm12 = vmmov %vm6363_vm1 }
 0x402   : > { %vm6370_vm13 = vcmp.lt.s32.totalorder %v4744_v14, 113  ;;  %v4532_v47 = vunpack.i.h.bf16 %v4530_v44  ;;  %v4531_v1 = vunpack.i.l.bf16 %v4530_v44 }
 0x403   : > { %3894 = vmatpush.bf16.msk.msra.mxu2 %vm4923_vm3, %v3893_v25  ;;  %3901 = vmatpush.bf16.msk.msra.mxu3 %vm4788_vm6, %v3900_v27  ;;  %vm6364_vm6 = vmmov %vm6361_vm7 }
 0x404   : > { %v4470_v0 = vpop.permute.xlu1 %4469  ;;  %vm6365_vm4 = vmmov %vm6364_vm6 }
 0x405   : > { %v4505_v11 = vpop.permute.xlu0 %4504  ;;  %v4472_v49 = vunpack.i.h.bf16 %v4470_v0  ;;  %v4471_v40 = vunpack.i.l.bf16 %v4470_v0  ;;  %vm6366_vm8 = vmmov %vm6365_vm4  ;;  %v4535_v46 = vpop.permute.xlu2 %4534 }
 0x406   : > { %3895 = vmatmul.msk.bf16.vlgmr.msra.gmra.mxu2 %vm6353_vm9, %v4044_v35  ;;  %3902 = vmatmul.msk.bf16.vlgmr.msra.gmra.mxu3 %vm6363_vm1, %v4044_v35  ;;  %vm6367_vm0 = vmmov %vm6365_vm4  ;;  %v4507_v42 = vunpack.i.h.bf16 %v4505_v11  ;;  %v4506_v7 = vunpack.i.l.bf16 %v4505_v11  ;;  %v4537_v30 = vunpack.i.h.bf16 %v4535_v46  ;;  %v4536_v17 = vunpack.i.l.bf16 %v4535_v46 }
 0x407   : > { %3919 = vmatpush.bf16.msk.msrb.mxu2 %vm4960_vm11, %v3918_v45  ;;  %3926 = vmatpush.bf16.msk.msrb.mxu3 %vm4890_vm15, %v3925_v52  ;;  %v2555_v32 = vsel %vm6364_vm6, %v4472_v49, %v4482_v53  ;;  %v2559_v41 = vsel %vm6365_vm4, %v4482_v53, %v4472_v49  ;;  %v2554_v48 = vsel %vm6366_vm8, %v4471_v40, %v4481_v28  ;;  %vm6372_vm7 = vmmov %vm6370_vm13 }
 0x408   : > { %v2558_v2 = vsel %vm6367_vm0, %v4481_v28, %v4471_v40  ;;  %v3921_v19 = vpack.c.bf16 %v2555_v32, %v2554_v48  ;;  %vm6373_vm9 = vmmov %vm6372_vm7 }
 0x409   : > { %v3928_v54 = vpack.c.bf16 %v2559_v41, %v2558_v2  ;;  %vm6374_vm1 = vmmov %vm6372_vm7  ;;  %v4047_v41 = vld [vmem:[%s6171_s3 + $0x30] sm:$0xff] }
 0x40a   : > { %v2634_v33 = vsel %vm6374_vm1, %v4492_v5, %v4497_v16  ;;  %vm6375_vm6 = vmmov %vm6374_vm1 }
 0x40b   : > { %3922 = vmatpush.bf16.msk.msrb.mxu2 %vm4960_vm11, %v3921_v19  ;;  %3929 = vmatpush.bf16.msk.msrb.mxu3 %vm4890_vm15, %v3928_v54  ;;  %vm6371_vm15 = vmmov %vm6370_vm13  ;;  %v2638_v51 = vsel %vm6375_vm6, %v4497_v16, %v4492_v5 }
 0x40c   : > { %3909 = vmatmul.msk.bf16.vlgmr.msrb.gmra.mxu0 %vm6368_vm14, %v4045_v13  ;;  %3910 = vmatmul.msk.bf16.vlgmr.msra.gmra.mxu1 %vm6369_vm12, %v4045_v13  ;;  %v4515_v12 = vpop.permute.xlu1 %4514  ;;  %vm6376_vm4 = vmmov %vm6374_vm1 }
 0x40d   : > { %v4510_v37 = vpop.permute.xlu0 %4509  ;;  %v4517_v23 = vunpack.i.h.bf16 %v4515_v12  ;;  %v4516_v21 = vunpack.i.l.bf16 %v4515_v12  ;;  %v2633_v26 = vsel %vm6376_vm4, %v4491_v10, %v4496_v15  ;;  %vm6377_vm8 = vmmov %vm6374_vm1 }
 0x40e   : > { %v2637_v55 = vsel %vm6377_vm8, %v4496_v15, %v4491_v10  ;;  %v3941_v4 = vpack.c.bf16 %v2634_v33, %v2633_v26  ;;  %vm6379_vm0 = vmmov %vm6369_vm12  ;;  %vm6381_vm12 = vcmp.lt.s32.totalorder %v4744_v14, 112  ;;  %v4512_v19 = vunpack.i.h.bf16 %v4510_v37 }
 0x40f   : > { %v2636_v62 = vsel %vm6370_vm13, %v4507_v42, %v4517_v23  ;;  %v2640_v20 = vsel %vm6371_vm15, %v4517_v23, %v4507_v42  ;;  %v2635_v60 = vsel %vm6372_vm7, %v4506_v7, %v4516_v21  ;;  %v2639_v58 = vsel %vm6373_vm9, %v4516_v21, %v4506_v7  ;;  %vm6380_vm14 = vmmov %vm6379_vm0  ;;  %v4048_v23 = vld [vmem:[%s6171_s3 + $0x38] sm:$0xff] }
 0x410   : > { %v3938_v39 = vpack.c.bf16 %v2636_v62, %v2635_v60  ;;  %v3945_v36 = vpack.c.bf16 %v2640_v20, %v2639_v58  ;;  %v3948_v50 = vpack.c.bf16 %v2638_v51, %v2637_v55  ;;  %vm6382_vm13 = vmmov %vm6381_vm12  ;;  %vm6385_vm9 = vcmp.lt.s32.totalorder %v4744_v14, 111 }
 0x411   : > { %vm6383_vm15 = vmmov %vm6381_vm12  ;;  %v4511_v54 = vunpack.i.l.bf16 %v4510_v37  ;;  %v4550_v37 = vpop.permute.xlu2 %4549 }
 0x412   : > { %3939 = vmatpush.bf16.msk.msra.mxu0 %vm4923_vm3, %v3938_v39  ;;  %3946 = vmatpush.bf16.msk.msrb.mxu1 %vm5086_vm10, %v3945_v36  ;;  %vm6384_vm7 = vmmov %vm6381_vm12  ;;  %v4552_v62 = vunpack.i.h.bf16 %v4550_v37  ;;  %v4551_v20 = vunpack.i.l.bf16 %v4550_v37 }
 0x413   : > { %vm6386_vm1 = vmmov %vm6385_vm9 }
 0x414   : > { %v4520_v8 = vpop.permute.xlu1 %4519  ;;  %vm6387_vm6 = vmmov %vm6386_vm1 }
 0x415   : > { %v4540_v29 = vpop.permute.xlu0 %4539  ;;  %v4522_v3 = vunpack.i.h.bf16 %v4520_v8  ;;  %v4521_v22 = vunpack.i.l.bf16 %v4520_v8  ;;  %vm6388_vm4 = vmmov %vm6386_vm1 }
 0x416   : > { %v4542_v24 = vunpack.i.h.bf16 %v4540_v29  ;;  %v4541_v45 = vunpack.i.l.bf16 %v4540_v29  ;;  %3923 = vmatmul.msk.bf16.vlgmr.msrb.gmra.mxu2 %vm6379_vm0, %v4046_v6  ;;  %3930 = vmatmul.msk.bf16.vlgmr.msrb.gmra.mxu3 %vm6380_vm14, %v4046_v6  ;;  %vm6393_vm8 = vmmov %vm6384_vm7 }
 0x417   : > { %v2715_v52 = vsel %vm6381_vm12, %v4522_v3, %v4532_v47  ;;  %v2719_v25 = vsel %vm6382_vm13, %v4532_v47, %v4522_v3  ;;  %v2714_v27 = vsel %vm6383_vm15, %v4521_v22, %v4531_v1  ;;  %v2718_v35 = vsel %vm6384_vm7, %v4531_v1, %v4521_v22  ;;  %3942 = vmatpush.bf16.msk.msra.mxu0 %vm4923_vm3, %v3941_v4  ;;  %vm6391_vm3 = vmmov %vm6379_vm0 }
 0x418   : > { %v2793_v0 = vsel %vm6385_vm9, %v4536_v17, %v4541_v45  ;;  %v2794_v53 = vsel %vm6386_vm1, %v4537_v30, %v4542_v24  ;;  %v2797_v28 = vsel %vm6387_vm6, %v4541_v45, %v4536_v17  ;;  %v2798_v11 = vsel %vm6388_vm4, %v4542_v24, %v4537_v30  ;;  %3949 = vmatpush.bf16.msk.msrb.mxu1 %vm5086_vm10, %v3948_v50  ;;  %vm6392_vm10 = vmmov %vm6379_vm0 }
 0x419   : > { %v3972_v49 = vpack.c.bf16 %v2794_v53, %v2793_v0  ;;  %v3979_v40 = vpack.c.bf16 %v2798_v11, %v2797_v28  ;;  %v2733_v32 = vpack.c.bf16 %v2715_v52, %v2714_v27  ;;  %v3959_v31 = vpack.c.bf16 %v2719_v25, %v2718_v35  ;;  %vm6394_vm0 = vmmov %vm6384_vm7 }
 0x41a   : > { %vm6395_vm14 = vmmov %vm6394_vm0 }
 0x41b   : > { %2749 = vmatpush.bf16.msra.mxu2 %v2733_v32  ;;  %3960 = vmatpush.bf16.msk.msra.mxu3 %vm5099_vm5, %v3959_v31  ;;  %vm6396_vm12 = vmmov %vm6394_vm0 }
 0x41c   : > { %3973 = vmatpush.bf16.msk.msrb.mxu0 %vm4960_vm11, %v3972_v49  ;;  %3980 = vmatpush.bf16.msk.msra.mxu1 %vm5151_vm2, %v3979_v40  ;;  %v4525_v13 = vpop.permute.xlu1 %4524  ;;  %vm6397_vm13 = vmmov %vm6391_vm3 }
 0x41d   : > { %v4527_v44 = vunpack.i.h.bf16 %v4525_v13  ;;  %v4526_v16 = vunpack.i.l.bf16 %v4525_v13  ;;  %3943 = vmatmul.msk.bf16.vlgmr.msra.gmra.mxu0 %vm6391_vm3, %v4047_v41  ;;  %3950 = vmatmul.msk.bf16.vlgmr.msrb.gmra.mxu1 %vm6392_vm10, %v4047_v41  ;;  %vm6398_vm15 = vmmov %vm6391_vm3 }
 0x41e   : > { %vm6399_vm7 = vmmov %vm6386_vm1 }
 0x41f   : > { %v2717_v15 = vsel %vm6393_vm8, %v4527_v44, %v4512_v19  ;;  %v2716_v5 = vsel %vm6394_vm0, %v4526_v16, %v4511_v54  ;;  %v2712_v10 = vsel %vm6395_vm14, %v4511_v54, %v4526_v16  ;;  %v2713_v12 = vsel %vm6396_vm12, %v4512_v19, %v4527_v44  ;;  %vm6400_vm9 = vmmov %vm6386_vm1 }
 0x420   : > { %v3962_v42 = vpack.c.bf16 %v2717_v15, %v2716_v5  ;;  %v2731_v7 = vpack.c.bf16 %v2713_v12, %v2712_v10  ;;  %vm6402_vm6 = vmmov %vm6391_vm3  ;;  %vm2964_vm14 = vcmask 130048   ;;  %vm3049_vm12 = vcmask 7168  }
 0x421   : > { %vm6403_vm4 = vmmov %vm6391_vm3 }
 0x422   : > { %2750 = vmatpush.bf16.msra.mxu2 %v2731_v7  ;;  %3963 = vmatpush.bf16.msk.msra.mxu3 %vm5099_vm5, %v3962_v42  ;;  %vm6401_vm5 = vmmov %vm6386_vm1 }
 0x424   : > { %v4545_v21 = vpop.permute.xlu1 %4544 }
 0x425   : > { %v4547_v60 = vunpack.i.h.bf16 %v4545_v21  ;;  %v4546_v58 = vunpack.i.l.bf16 %v4545_v21 }
 0x426   : > { %3957 = vmatmul.msk.bf16.vlgmr.msra.gmra.mxu2 %vm6397_vm13, %v4048_v23  ;;  %3964 = vmatmul.msk.bf16.vlgmr.msra.gmra.mxu3 %vm6398_vm15, %v4048_v23  ;;  %vm6404_vm13 = vmmov %vm6403_vm4 }
 0x427   : > { %v2792_v39 = vsel %vm6399_vm7, %v4547_v60, %v4552_v62  ;;  %v2796_v36 = vsel %vm6400_vm9, %v4552_v62, %v4547_v60  ;;  %v2791_v33 = vsel %vm6401_vm5, %v4546_v58, %v4551_v20  ;;  %v2795_v51 = vsel %vm6386_vm1, %v4551_v20, %v4546_v58  ;;  %vm6405_vm15 = vmmov %vm6403_vm4 }
 0x428   : > { %v3975_v26 = vpack.c.bf16 %v2792_v39, %v2791_v33  ;;  %v3982_v55 = vpack.c.bf16 %v2796_v36, %v2795_v51  ;;  %vm6406_vm7 = vmmov %vm6403_vm4 }
 0x429   : > { %vm6407_vm9 = vmmov %vm6403_vm4 }
 0x42a   : > { %3976 = vmatpush.bf16.msk.msrb.mxu0 %vm4960_vm11, %v3975_v26  ;;  %3983 = vmatpush.bf16.msk.msra.mxu1 %vm5151_vm2, %v3982_v55 }
 0x42d   : > { %3977 = vmatmul.msk.bf16.vlgmr.msrb.gmra.mxu0 %vm6402_vm6, %v4049_v59  ;;  %3984 = vmatmul.msk.bf16.vlgmr.msra.gmra.mxu1 %vm6403_vm4, %v4049_v59 }
 0x467   : > { %v2278_v6 = vpop.f32.mrf.mxu0 }
 0x468   : > { %v2292_v46 = vpop.f32.mrf.mxu1 }
 0x46f   : > { %v2280_v14 = vpop.f32.mrf.mxu0 }
 0x470   : > { %v2294_v4 = vpop.f32.mrf.mxu1  ;;  %v2314_v50 = vpop.f32.mrf.mxu2 }
 0x471   : > { %v2328_v8 = vpop.f32.mrf.mxu3  ;;  %v2315_v28 = vadd.f32 %v2314_v50, %v2278_v6 }
 0x472   : > { %v2329_v11 = vadd.f32 %v2328_v8, %v2292_v46 }
 0x478   : > { %v2389_v47 = vpop.f32.mrf.mxu0  ;;  %v2403_v1 = vpop.f32.mrf.mxu1 }
 0x479   : > { %v2316_v22 = vpop.f32.mrf.mxu2  ;;  %v2330_v9 = vpop.f32.mrf.mxu3  ;;  %v2408_v32 = vadd.f32 %v2389_v47, %v2315_v28  ;;  %v2409_v31 = vadd.f32 %v2403_v1, %v2329_v11 }
 0x47a   : > { %v2317_v19 = vadd.f32 %v2316_v22, %v2280_v14  ;;  %v2331_v54 = vadd.f32 %v2330_v9, %v2294_v4 }
 0x480   : > { %v2391_v29 = vpop.f32.mrf.mxu0  ;;  %v2405_v3 = vpop.f32.mrf.mxu1 }
 0x481   : > { %v2410_v10 = vadd.f32 %v2391_v29, %v2317_v19  ;;  %v2411_v12 = vadd.f32 %v2405_v3, %v2331_v54 }
 0x489   : > { %v2515_v30 = vpop.f32.mrf.mxu0  ;;  %v2529_v17 = vpop.f32.mrf.mxu1 }
 0x48a   : > { %v2468_v24 = vpop.f32.mrf.mxu2  ;;  %v2482_v45 = vpop.f32.mrf.mxu3 }
 0x48b   : > { %v2487_v41 = vadd.f32 %v2468_v24, %v2408_v32  ;;  %v2488_v48 = vadd.f32 %v2482_v45, %v2409_v31 }
 0x48d   : > { %v2534_v44 = vadd.f32 %v2515_v30, %v2487_v41  ;;  %v2535_v16 = vadd.f32 %v2529_v17, %v2488_v48 }
 0x491   : > { %v2517_v52 = vpop.f32.mrf.mxu0  ;;  %v2531_v25 = vpop.f32.mrf.mxu1 }
 0x492   : > { %v2470_v27 = vpop.f32.mrf.mxu2  ;;  %v2484_v35 = vpop.f32.mrf.mxu3 }
 0x493   : > { %v2489_v37 = vadd.f32 %v2470_v27, %v2410_v10  ;;  %v2490_v23 = vadd.f32 %v2484_v35, %v2411_v12 }
 0x495   : > { %v2536_v58 = vadd.f32 %v2517_v52, %v2489_v37  ;;  %v2537_v39 = vadd.f32 %v2531_v25, %v2490_v23  ;;  %v2854_v37 = vld [vmem:[%s6175_s7] sm:$0xff] }
 0x49a   : > { %v2594_v0 = vpop.f32.mrf.mxu2  ;;  %v2608_v53 = vpop.f32.mrf.mxu3 }
 0x49b   : > { %v2673_v49 = vpop.f32.mrf.mxu0  ;;  %v2687_v40 = vpop.f32.mrf.mxu1  ;;  %v2613_v42 = vadd.f32 %v2594_v0, %v2534_v44  ;;  %v2614_v7 = vadd.f32 %v2608_v53, %v2535_v16  ;;  %v4602_v0 = vmov 0  }
 0x49c   : > { %4553 = vset.pattern.permute.xlu2 %v4602_v0  ;;  %4554 = vset.pattern.permute.xlu0 %v4602_v0 }
 0x49d   : > { %v2692_v21 = vadd.f32 %v2673_v49, %v2613_v42  ;;  %v2693_v62 = vadd.f32 %v2687_v40, %v2614_v7 }
 0x4a2   : > { %v2596_v2 = vpop.f32.mrf.mxu2  ;;  %v2610_v13 = vpop.f32.mrf.mxu3 }
 0x4a3   : > { %v2675_v15 = vpop.f32.mrf.mxu0  ;;  %v2689_v5 = vpop.f32.mrf.mxu1  ;;  %v2615_v55 = vadd.f32 %v2596_v2, %v2536_v58  ;;  %v2616_v59 = vadd.f32 %v2610_v13, %v2537_v39 }
 0x4a5   : > { %v2694_v8 = vadd.f32 %v2675_v15, %v2615_v55  ;;  %v2695_v47 = vadd.f32 %v2689_v5, %v2616_v59  ;;  %v4603_v59 = vmov 1  }
 0x4a6   : > { %4555 = vset.pattern.permute.xlu1 %v4603_v59 }
 0x4aa   : > { %v2752_v20 = vpop.f32.mrf.mxu2  ;;  %v2766_v60 = vpop.f32.mrf.mxu3 }
 0x4ab   : > { %v2771_v36 = vadd.f32 %v2752_v20, %v2692_v21  ;;  %v2772_v33 = vadd.f32 %v2766_v60, %v2693_v62  ;;  %v2831_v51 = vpop.f32.mrf.mxu0  ;;  %v2845_v26 = vpop.f32.mrf.mxu1 }
 0x4ad   : > { %v5987_v6 = vadd.f32 %v2831_v51, %v2771_v36  ;;  %v5989_v46 = vadd.f32 %v2845_v26, %v2772_v33  ;;  %v2855_v36 = vld [vmem:[%s6175_s7 + $0x8] sm:$0xff] }
 0x4af   : > { %v2856_v14 = vadd.f32 %v5989_v46, %v5987_v6  ;;  %v2862_v4 = vmul.f32 %v5987_v6, %v5987_v6  ;;  %v2863_v50 = vmul.f32 %v5989_v46, %v5989_v46 }
 0x4b1   : > { %2857 = vadd.xlane.f32.xlu0 %v2856_v14  ;;  %v2866_v1 = vadd.f32 %v2863_v50, %v2862_v4 }
 0x4b2   : > { %v2754_v29 = vpop.f32.mrf.mxu2  ;;  %v2768_v3 = vpop.f32.mrf.mxu3 }
 0x4b3   : > { %v2773_v22 = vadd.f32 %v2754_v29, %v2694_v8  ;;  %v2774_v9 = vadd.f32 %v2768_v3, %v2695_v47  ;;  %2867 = vadd.xlane.f32.xlu2 %v2866_v1  ;;  %v2833_v30 = vpop.f32.mrf.mxu0  ;;  %v2847_v17 = vpop.f32.mrf.mxu1 }
 0x4b5   : > { %v5997_v24 = vadd.f32 %v2833_v30, %v2773_v22  ;;  %v5999_v45 = vadd.f32 %v2847_v17, %v2774_v9 }
 0x4b7   : > { %v2859_v52 = vadd.f32 %v5999_v45, %v5997_v24  ;;  %v2864_v25 = vmul.f32 %v5997_v24, %v5997_v24  ;;  %v2865_v27 = vmul.f32 %v5999_v45, %v5999_v45 }
 0x4b9   : > { %2860 = vadd.xlane.f32.xlu1 %v2859_v52  ;;  %v2869_v35 = vadd.f32 %v2865_v27, %v2864_v25 }
 0x4bb   : > { %2870 = vadd.xlane.f32.xlu2 %v2869_v35 }
 0x524   : > { %v2858_v53 = vpop.xlane.xlu0 %2857 }
 0x525   : > { %v2872_v28 = vmul.f32 0.00390625, %v2858_v53 }
 0x526   : > { %v2868_v11 = vpop.xlane.xlu2 %2867 }
 0x527   : > { %v2876_v49 = vmul.f32 %v2872_v28, %v2872_v28  ;;  %v2874_v40 = vmul.f32 0.00390625, %v2868_v11 }
 0x529   : > { %v2878_v32 = vsub.f32 %v2874_v40, %v2876_v49 }
 0x52b   : > { %v2880_v31 = vadd.f32 1e-05, %v2878_v32 }
 0x52c   : > { %v2861_v41 = vpop.xlane.xlu1 %2860 }
 0x52d   : > { %4566 = vrsqrt.f32 %v2880_v31  ;;  %v2873_v48 = vmul.f32 0.00390625, %v2861_v41  ;;  %vm2888_vm11 = vweird.f32 %v2880_v31 }
 0x52e   : > { %v2871_v2 = vpop.xlane.xlu2 %2870 }
 0x52f   : > { %v2877_v13 = vmul.f32 %v2873_v48, %v2873_v48  ;;  %v2875_v19 = vmul.f32 0.00390625, %v2871_v2 }
 0x531   : > { %v2879_v54 = vsub.f32 %v2875_v19, %v2877_v13 }
 0x533   : > { %v4567_v44 = vpop.eup %4566  ;;  %v2881_v16 = vadd.f32 1e-05, %v2879_v54 }
 0x534   : > { %v2883_v15 = vmul.f32 %v4567_v44, %v2880_v31  ;;  %vm2889_vm2 = vweird.f32 %v4567_v44 }
 0x535   : > { %4568 = vrsqrt.f32 %v2881_v16  ;;  %vm2890_vm3 = vmor %vm2888_vm11, %vm2889_vm2  ;;  %vm2898_vm8 = vweird.f32 %v2881_v16 }
 0x536   : > { %v2884_v5 = vmul.f32 %v4567_v44, %v2883_v15 }
 0x538   : > { %v2885_v10 = vmul.f32 0.5, %v2884_v5 }
 0x53a   : > { %v2886_v12 = vsub.f32 1.5, %v2885_v10 }
 0x53b   : > { %v4569_v42 = vpop.eup %4568 }
 0x53c   : > { %v2893_v7 = vmul.f32 %v4569_v42, %v2881_v16  ;;  %v2887_v23 = vmul.f32 %v4567_v44, %v2886_v12  ;;  %vm2899_vm10 = vweird.f32 %v4569_v42 }
 0x53d   : > { %vm2900_vm0 = vmor %vm2898_vm8, %vm2899_vm10 }
 0x53e   : > { %v2894_v21 = vmul.f32 %v4569_v42, %v2893_v7  ;;  %v2891_v62 = vsel %vm2890_vm3, %v4567_v44, %v2887_v23 }
 0x53f   : > { %v2902_v20 = vmul.f32 %v2891_v62, %v2854_v37 }
 0x540   : > { %v2895_v60 = vmul.f32 0.5, %v2894_v21 }
 0x541   : > { %2918 = vperm.xlu2 %4553, %v2902_v20   ;;  %v2904_v58 = vmul.f32 %v2902_v20, %v2872_v28 }
 0x542   : > { %v2896_v39 = vsub.f32 1.5, %v2895_v60 }
 0x543   : > { %2908 = vrot.lane.b32.xlu0 %v2904_v58, %s4597_s17 }
 0x544   : > { %v2897_v33 = vmul.f32 %v4569_v42, %v2896_v39 }
 0x546   : > { %v2901_v51 = vsel %vm2900_vm0, %v4569_v42, %v2897_v33 }
 0x547   : > { %v2903_v26 = vmul.f32 %v2901_v51, %v2855_v36 }
 0x549   : > { %v2905_v55 = vmul.f32 %v2903_v26, %v2873_v48  ;;  %4556 = vset.pattern.permute.xlu2 %v4603_v59 }
 0x54b   : > { %2923 = vperm.xlu0 %4554, %v2903_v26   ;;  %2910 = vrot.lane.b32.xlu1 %v2905_v55, %s4597_s17 }
 0x59b   : > { %v2919_v47 = vpop.permute.xlu2 %2918 }
 0x59c   : > { %v2926_v9 = vmul.f32 %v2919_v47, %v5987_v6  ;;  %v2927_v30 = vmul.f32 %v2919_v47, %v5989_v46  ;;  %v4051_v6 = vld [vmem:[%s6172_s4 + $0x8] sm:$0xff]  ;;  %v3045_v47 = vld [vmem:[%s6174_s6] sm:$0xff] }
 0x5b5   : > { %v2909_v14 = vpop.permute.xlu0 %2908 }
 0x5b6   : > { %v2914_v4 = vsub.f32 %v2854_v37, %v2909_v14 }
 0x5b8   : > { %2932 = vperm.xlu1 %4555, %v2914_v4  }
 0x5bd   : > { %v2911_v50 = vpop.permute.xlu1 %2910  ;;  %v2924_v1 = vpop.permute.xlu0 %2923 }
 0x5be   : > { %v2915_v8 = vsub.f32 %v2855_v36, %v2911_v50  ;;  %v2928_v3 = vmul.f32 %v2924_v1, %v5997_v24  ;;  %v2929_v22 = vmul.f32 %v2924_v1, %v5999_v45  ;;  %v4050_v24 = vld [vmem:[%s6172_s4] sm:$0xff] }
 0x5c0   : > { %2937 = vperm.xlu2 %4556, %v2915_v8   ;;  %4558 = vset.pattern.permute.xlu1 %v4602_v0 }
 0x5c8   : > { %4557 = vset.pattern.permute.xlu2 %v4602_v0 }
 0x61a   : > { %v2938_v29 = vpop.permute.xlu2 %2937 }
 0x61b   : > { %v2942_v17 = vadd.f32 %v2938_v29, %v2928_v3  ;;  %v2943_v52 = vadd.f32 %v2938_v29, %v2929_v22  ;;  %v3046_v29 = vld [vmem:[%s6174_s6 + $0x8] sm:$0xff]  ;;  %v3047_v3 = vld [vmem:[%s6174_s6 + $0x10] sm:$0xff]  ;;  %v3048_v22 = vld [vmem:[%s6174_s6 + $0x18] sm:$0xff] }
 0x61d   : > { %v2946_v53 = vmax.f32 %v2942_v17, 0.0  ;;  %v2947_v28 = vmax.f32 %v2943_v52, 0.0 }
 0x62a   : > { %v2933_v25 = vpop.permute.xlu1 %2932 }
 0x62b   : > { %v2940_v27 = vadd.f32 %v2933_v25, %v2926_v9  ;;  %v2941_v35 = vadd.f32 %v2933_v25, %v2927_v30 }
 0x62d   : > { %v2944_v11 = vmax.f32 %v2940_v27, 0.0  ;;  %v2945_v0 = vmax.f32 %v2941_v35, 0.0 }
 0x62f   : > { %v2952_v49 = vpack.c.bf16 %v2946_v53, %v2944_v11  ;;  %v2953_v40 = vpack.c.bf16 %v2947_v28, %v2945_v0 }
 0x631   : > { %2978 = vmatpush.bf16.msrb.mxu2 %v2952_v49  ;;  %2997 = vmatpush.bf16.msrb.mxu3 %v2953_v40 }
 0x634   : > { %3993 = vmatmul.msk.bf16.vlgmr.msrb.gmra.mxu2 %vm2964_vm14, %v4050_v24  ;;  %3995 = vmatmul.msk.bf16.vlgmr.msrb.gmra.mxu3 %vm2964_vm14, %v4050_v24 }
 0x644   : > { %3994 = vmatmul.msk.bf16.gmra.mxu2 %vm2964_vm14, %v4051_v6  ;;  %3996 = vmatmul.msk.bf16.gmra.mxu3 %vm2964_vm14, %v4051_v6 }
 0x6b7   : > { %v6027_v46 = vpop.f32.mrf.mxu2  ;;  %v6029_v45 = vpop.f32.mrf.mxu3 }
 0x6b8   : > { %v3025_v21 = vmul.f32 %v6027_v46, %v6027_v46  ;;  %v3026_v62 = vmul.f32 %v6029_v45, %v6029_v45  ;;  %v3013_v60 = vadd.f32 %v6029_v45, %v6027_v46 }
 0x6ba   : > { %v3033_v20 = vadd.f32 %v3026_v62, %v3025_v21 }
 0x6bf   : > { %v6031_v32 = vpop.f32.mrf.mxu2  ;;  %v6033_v31 = vpop.f32.mrf.mxu3 }
 0x6c0   : > { %v3016_v41 = vadd.f32 %v6033_v31, %v6031_v32  ;;  %v3027_v16 = vmul.f32 %v6031_v32, %v6031_v32  ;;  %v3028_v15 = vmul.f32 %v6033_v31, %v6033_v31 }
 0x6c2   : > { %3017 = vadd.xlane.f32.xlu0 %v3016_v41  ;;  %v3036_v7 = vadd.f32 %v3028_v15, %v3027_v16 }
 0x6c7   : > { %v6037_v48 = vpop.f32.mrf.mxu2  ;;  %v6039_v2 = vpop.f32.mrf.mxu3 }
 0x6c8   : > { %v3019_v13 = vadd.f32 %v6039_v2, %v6037_v48  ;;  %v3029_v19 = vmul.f32 %v6037_v48, %v6037_v48  ;;  %v3030_v54 = vmul.f32 %v6039_v2, %v6039_v2 }
 0x6ca   : > { %3020 = vadd.xlane.f32.xlu2 %v3019_v13  ;;  %v3039_v44 = vadd.f32 %v3030_v54, %v3029_v19 }
 0x6cc   : > { %3040 = vadd.xlane.f32.xlu1 %v3039_v44 }
 0x6cf   : > { %v6051_v5 = vpop.f32.mrf.mxu2  ;;  %v6053_v10 = vpop.f32.mrf.mxu3 }
 0x6d0   : > { %v3031_v12 = vmul.f32 %v6051_v5, %v6051_v5  ;;  %v3032_v42 = vmul.f32 %v6053_v10, %v6053_v10  ;;  %v3022_v23 = vadd.f32 %v6053_v10, %v6051_v5 }
 0x6d2   : > { %3037 = vadd.xlane.f32.xlu2 %v3036_v7  ;;  %v3042_v37 = vadd.f32 %v3032_v42, %v3031_v12 }
 0x6d4   : > { %3043 = vadd.xlane.f32.xlu0 %v3042_v37  ;;  %3023 = vadd.xlane.f32.xlu1 %v3022_v23 }
 0x6dc   : > { %3034 = vadd.xlane.f32.xlu0 %v3033_v20  ;;  %3014 = vadd.xlane.f32.xlu1 %v3013_v60 }
 0x735   : > { %v3018_v58 = vpop.xlane.xlu0 %3017 }
 0x73d   : > { %v3021_v39 = vpop.xlane.xlu2 %3020 }
 0x73f   : > { %v3041_v36 = vpop.xlane.xlu1 %3040 }
 0x740   : > { %v3052_v14 = vsel %vm3049_vm12, %v3021_v39, %v3041_v36 }
 0x745   : > { %v3038_v55 = vpop.xlane.xlu2 %3037 }
 0x746   : > { %v3051_v4 = vsel %vm3049_vm12, %v3018_v58, %v3038_v55 }
 0x747   : > { %v3044_v33 = vpop.xlane.xlu0 %3043  ;;  %v3024_v51 = vpop.xlane.xlu1 %3023 }
 0x748   : > { %v3053_v26 = vsel %vm3049_vm12, %v3024_v51, %v3044_v33 }
 0x749   : > { %3078 = vmatpush.msra.mxu0 %v3053_v26 }
 0x74b   : > { %3079 = vmatpush.msra.mxu0 %v3052_v14 }
 0x74d   : > { %3080 = vmatpush.msra.mxu0 %v3051_v4 }
 0x74f   : > { %v3035_v50 = vpop.xlane.xlu0 %3034  ;;  %v3015_v8 = vpop.xlane.xlu1 %3014 }
 0x750   : > { %v3050_v1 = vsel %vm3049_vm12, %v3015_v8, %v3035_v50 }
 0x751   : > { %3081 = vmatpush.msra.mxu0 %v3050_v1 }
 0x752   : > { %3997 = vmatmul.msk.f32.vlgmr.msra.gmra.mxu0 %vm6404_vm13, %v3045_v47 }
 0x75a   : > { %3998 = vmatmul.msk.f32.gmra.mxu0 %vm6405_vm15, %v3046_v29 }
 0x762   : > { %3999 = vmatmul.msk.f32.gmra.mxu0 %vm6406_vm7, %v3047_v3 }
 0x76a   : > { %4000 = vmatmul.msk.f32.gmra.mxu0 %vm6407_vm9, %v3048_v22 }
 0x7cf   : > { %v3083_v9 = vpop.f32.mrf.mxu0 }
 0x7d0   : > { %v6083_v30 = vmul.f32 0.001953125, %v3083_v9 }
 0x7d2   : > { %v3099_v17 = vmul.f32 %v6083_v30, %v6083_v30 }
 0x7d4   : > { %3107 = vrot.lane.b32.xlu2 %v3099_v17, %s4597_s17 }
 0x7d7   : > { %v3086_v52 = vpop.f32.mrf.mxu0 }
 0x7d8   : > { %v6088_v25 = vmul.f32 0.001953125, %v3086_v52 }
 0x7da   : > { %v3100_v27 = vmul.f32 %v6088_v25, %v6088_v25 }
 0x7dc   : > { %3109 = vrot.lane.b32.xlu1 %v3100_v27, %s4597_s17 }
 0x7df   : > { %v3089_v35 = vpop.f32.mrf.mxu0 }
 0x7e0   : > { %v6093_v53 = vmul.f32 0.001953125, %v3089_v35 }
 0x7e2   : > { %v3101_v28 = vmul.f32 %v6093_v53, %v6093_v53 }
 0x7e4   : > { %3111 = vrot.lane.b32.xlu0 %v3101_v28, %s4597_s17  ;;  %v3009_v28 = vld [vmem:[%s6176_s8] sm:$0xff] }
 0x7e7   : > { %v3092_v11 = vpop.f32.mrf.mxu0 }
 0x7e8   : > { %v6098_v0 = vmul.f32 0.001953125, %v3092_v11 }
 0x7ea   : > { %v3102_v49 = vmul.f32 %v6098_v0, %v6098_v0 }
 0x7ec   : > { %3113 = vrot.lane.b32.xlu2 %v3102_v49, %s4597_s17 }
 0x82e   : > { %v3108_v40 = vpop.permute.xlu2 %3107 }
 0x82f   : > { %v3119_v24 = vsub.f32 %v6083_v30, %v3108_v40 }
 0x831   : > { %v3123_v6 = vadd.f32 1e-05, %v3119_v24  ;;  %v3011_v24 = vld [vmem:[%s6176_s8 + $0x10] sm:$0xff] }
 0x833   : > { %4570 = vrsqrt.f32 %v3123_v6  ;;  %vm3133_vm1 = vweird.f32 %v3123_v6 }
 0x839   : > { %v4571_v41 = vpop.eup %4570 }
 0x83a   : > { %v3128_v13 = vmul.f32 %v4571_v41, %v3123_v6  ;;  %vm3134_vm5 = vweird.f32 %v4571_v41 }
 0x83b   : > { %vm3135_vm6 = vmor %vm3133_vm1, %vm3134_vm5 }
 0x83c   : > { %v3129_v19 = vmul.f32 %v4571_v41, %v3128_v13 }
 0x83e   : > { %v3130_v54 = vmul.f32 0.5, %v3129_v19  ;;  %v3012_v19 = vld [vmem:[%s6176_s8 + $0x18] sm:$0xff] }
 0x840   : > { %v3131_v44 = vsub.f32 1.5, %v3130_v54 }
 0x842   : > { %v3132_v16 = vmul.f32 %v4571_v41, %v3131_v44 }
 0x844   : > { %v3136_v15 = vsel %vm3135_vm6, %v4571_v41, %v3132_v16  ;;  %v3010_v16 = vld [vmem:[%s6176_s8 + $0x8] sm:$0xff] }
 0x845   : > { %3171 = vrot.lane.b32.xlu0 %v3136_v15, %s4598_s18 }
 0x846   : > { %v3114_v12 = vpop.permute.xlu2 %3113 }
 0x847   : > { %v3122_v42 = vsub.f32 %v6098_v0, %v3114_v12 }
 0x849   : > { %v3126_v7 = vadd.f32 1e-05, %v3122_v42 }
 0x84b   : > { %4572 = vrsqrt.f32 %v3126_v7  ;;  %vm3163_vm2 = vweird.f32 %v3126_v7 }
 0x84e   : > { %v3110_v37 = vpop.permute.xlu1 %3109 }
 0x84f   : > { %v3120_v23 = vsub.f32 %v6088_v25, %v3110_v37 }
 0x851   : > { %v4573_v21 = vpop.eup %4572  ;;  %v3124_v62 = vadd.f32 1e-05, %v3120_v23 }
 0x852   : > { %v3158_v20 = vmul.f32 %v4573_v21, %v3126_v7  ;;  %vm3164_vm4 = vweird.f32 %v4573_v21 }
 0x853   : > { %4574 = vrsqrt.f32 %v3124_v62  ;;  %vm3165_vm11 = vmor %vm3163_vm2, %vm3164_vm4  ;;  %vm3143_vm10 = vweird.f32 %v3124_v62 }
 0x854   : > { %v3159_v60 = vmul.f32 %v4573_v21, %v3158_v20 }
 0x856   : > { %v3160_v58 = vmul.f32 0.5, %v3159_v60  ;;  %v3112_v39 = vpop.permute.xlu0 %3111 }
 0x857   : > { %v3121_v36 = vsub.f32 %v6093_v53, %v3112_v39 }
 0x858   : > { %v3161_v33 = vsub.f32 1.5, %v3160_v58 }
 0x859   : > { %v4575_v51 = vpop.eup %4574  ;;  %v3125_v26 = vadd.f32 1e-05, %v3121_v36 }
 0x85a   : > { %v3138_v55 = vmul.f32 %v4575_v51, %v3124_v62  ;;  %v3162_v14 = vmul.f32 %v4573_v21, %v3161_v33  ;;  %vm3144_vm3 = vweird.f32 %v4575_v51 }
 0x85b   : > { %4576 = vrsqrt.f32 %v3125_v26  ;;  %vm3145_vm8 = vmor %vm3143_vm10, %vm3144_vm3  ;;  %vm3153_vm14 = vweird.f32 %v3125_v26 }
 0x85c   : > { %v3139_v4 = vmul.f32 %v4575_v51, %v3138_v55  ;;  %v3166_v50 = vsel %vm3165_vm11, %v4573_v21, %v3162_v14 }
 0x85d   : > { %3177 = vrot.lane.b32.xlu0 %v3166_v50, %s4598_s18 }
 0x85e   : > { %v3140_v8 = vmul.f32 0.5, %v3139_v4 }
 0x860   : > { %v3141_v47 = vsub.f32 1.5, %v3140_v8 }
 0x861   : > { %v4577_v1 = vpop.eup %4576 }
 0x862   : > { %v3148_v29 = vmul.f32 %v4577_v1, %v3125_v26  ;;  %v3142_v3 = vmul.f32 %v4575_v51, %v3141_v47  ;;  %vm3154_vm0 = vweird.f32 %v4577_v1 }
 0x863   : > { %vm3155_vm12 = vmor %vm3153_vm14, %vm3154_vm0 }
 0x864   : > { %v3149_v22 = vmul.f32 %v4577_v1, %v3148_v29  ;;  %v3146_v9 = vsel %vm3145_vm8, %v4575_v51, %v3142_v3 }
 0x865   : > { %3173 = vrot.lane.b32.xlu1 %v3146_v9, %s4598_s18 }
 0x866   : > { %v3150_v17 = vmul.f32 0.5, %v3149_v22 }
 0x868   : > { %v3151_v52 = vsub.f32 1.5, %v3150_v17 }
 0x86a   : > { %v3152_v27 = vmul.f32 %v4577_v1, %v3151_v52 }
 0x86c   : > { %v3156_v35 = vsel %vm3155_vm12, %v4577_v1, %v3152_v27 }
 0x86d   : > { %3175 = vrot.lane.b32.xlu2 %v3156_v35, %s4598_s18 }
 0x8b7   : > { %v3172_v11 = vpop.permute.xlu0 %3171 }
 0x8b8   : > { %v3183_v49 = vmul.f32 %v3172_v11, %v3009_v28 }
 0x8ba   : > { %v3187_v40 = vmul.f32 %v3183_v49, %v6083_v30 }
 0x8bc   : > { %3195 = vrot.lane.b32.xlu1 %v3187_v40, %s4597_s17 }
 0x8c7   : > { %v3176_v6 = vpop.permute.xlu2 %3175 }
 0x8c8   : > { %v3185_v41 = vmul.f32 %v3176_v6, %v3011_v24 }
 0x8ca   : > { %v3189_v13 = vmul.f32 %v3185_v41, %v6093_v53 }
 0x8cc   : > { %3199 = vrot.lane.b32.xlu0 %v3189_v13, %s4597_s17 }
 0x8cf   : > { %v3178_v54 = vpop.permute.xlu0 %3177 }
 0x8d0   : > { %v3186_v44 = vmul.f32 %v3178_v54, %v3012_v19 }
 0x8d2   : > { %v3190_v30 = vmul.f32 %v3186_v44, %v6098_v0  ;;  %v4604_v0 = vmov 2  }
 0x8d4   : > { %3201 = vrot.lane.b32.xlu1 %v3190_v30, %s4597_s17 }
 0x8d7   : > { %v3174_v15 = vpop.permute.xlu1 %3173 }
 0x8d8   : > { %v3184_v12 = vmul.f32 %v3174_v15, %v3010_v16 }
 0x8da   : > { %v3188_v53 = vmul.f32 %v3184_v12, %v6088_v25  ;;  %3218 = vperm.xlu0 %4554, %v3184_v12  }
 0x8dc   : > { %3197 = vrot.lane.b32.xlu2 %v3188_v53, %s4597_s17  ;;  %3223 = vperm.xlu1 %4558, %v3185_v41  }
 0x8e2   : > { %4560 = vset.pattern.permute.xlu0 %v4603_v59 }
 0x8e4   : > { %3213 = vperm.xlu2 %4557, %v3183_v49   ;;  %4561 = vset.pattern.permute.xlu1 %v4603_v59 }
 0x8ec   : > { %3228 = vperm.xlu2 %4557, %v3186_v44  }
 0x8f4   : > { %4559 = vset.pattern.permute.xlu2 %v4604_v0 }
 0x8f5   : > { %3277 = vperm.xlu2 %4559, %v3009_v28  }
 0x8fd   : > { %4562 = vset.pattern.permute.xlu2 %v4603_v59 }
 0x92e   : > { %v3196_v42 = vpop.permute.xlu1 %3195 }
 0x92f   : > { %v3207_v7 = vsub.f32 %v3009_v28, %v3196_v42 }
 0x931   : > { %3241 = vperm.xlu0 %4560, %v3207_v7  }
 0x936   : > { %v3198_v37 = vpop.permute.xlu2 %3197 }
 0x937   : > { %v3208_v25 = vsub.f32 %v3010_v16, %v3198_v37 }
 0x939   : > { %3246 = vperm.xlu1 %4561, %v3208_v25   ;;  %4563 = vset.pattern.permute.xlu0 %v4604_v0 }
 0x93a   : > { %3282 = vperm.xlu0 %4563, %v3010_v16  }
 0x93e   : > { %v3200_v23 = vpop.permute.xlu0 %3199  ;;  %v3214_v59 = vpop.permute.xlu2 %3213 }
 0x93f   : > { %v3209_v21 = vsub.f32 %v3011_v24, %v3200_v23  ;;  %v3231_v39 = vmul.f32 %v3214_v59, %v6027_v46  ;;  %v3232_v36 = vmul.f32 %v3214_v59, %v6029_v45 }
 0x941   : > { %3251 = vperm.xlu2 %4562, %v3209_v21  }
 0x946   : > { %v3202_v62 = vpop.permute.xlu1 %3201  ;;  %v3229_v58 = vpop.permute.xlu2 %3228 }
 0x947   : > { %v3210_v20 = vsub.f32 %v3012_v19, %v3202_v62 }
 0x949   : > { %3256 = vperm.xlu1 %4561, %v3210_v20   ;;  %4565 = vset.pattern.permute.xlu2 %v4604_v0 }
 0x94a   : > { %3292 = vperm.xlu2 %4565, %v3012_v19  }
 0x94c   : > { %v3219_v60 = vpop.permute.xlu0 %3218 }
 0x94d   : > { %v3233_v46 = vmul.f32 %v3219_v60, %v6031_v32  ;;  %v3234_v45 = vmul.f32 %v3219_v60, %v6033_v31 }
 0x94e   : > { %v3224_v33 = vpop.permute.xlu1 %3223 }
 0x94f   : > { %v3278_v50 = vpop.permute.xlu2 %3277  ;;  %v3235_v6 = vmul.f32 %v3224_v33, %v6037_v48  ;;  %v3236_v41 = vmul.f32 %v3224_v33, %v6039_v2 }
 0x951   : > { %4564 = vset.pattern.permute.xlu1 %v4604_v0 }
 0x952   : > { %3287 = vperm.xlu1 %4564, %v3011_v24  }
 0x99b   : > { %v3252_v31 = vpop.permute.xlu2 %3251 }
 0x99c   : > { %v3264_v54 = vadd.f32 %v3252_v31, %v3236_v41 }
 0x99e   : > { %v3272_v15 = vmax.f32 %v3264_v54, 0.0 }
 0x9a3   : > { %v3242_v51 = vpop.permute.xlu0 %3241 }
 0x9a4   : > { %v3259_v26 = vadd.f32 %v3242_v51, %v3231_v39  ;;  %v3260_v55 = vadd.f32 %v3242_v51, %v3232_v36  ;;  %v3293_v13 = vpop.permute.xlu2 %3292 }
 0x9a6   : > { %v3267_v14 = vmax.f32 %v3259_v26, 0.0  ;;  %v3268_v4 = vmax.f32 %v3260_v55, 0.0 }
 0x9a8   : > { %v3295_v8 = vmul.f32 %v3278_v50, %v3267_v14  ;;  %v3296_v47 = vmul.f32 %v3278_v50, %v3268_v4 }
 0x9aa   : > { %v3303_v1 = vadd.f32 %v3295_v8, %v5633_v57  ;;  %v3304_v29 = vadd.f32 %v3296_v47, %v5638_v18  ;;  %v3237_v57 = vmul.f32 %v3229_v58, %v6051_v5  ;;  %v3238_v18 = vmul.f32 %v3229_v58, %v6053_v10 }
 0x9ab   : > { %v3247_v3 = vpop.permute.xlu1 %3246 }
 0x9ac   : > { %3311 = vst [vmem:[%s6141_s25] sm:$0xff] %v3303_v1  ;;  %v3261_v22 = vadd.f32 %v3247_v3, %v3233_v46  ;;  %v3262_v9 = vadd.f32 %v3247_v3, %v3234_v45  ;;  %v3283_v17 = vpop.permute.xlu0 %3282 }
 0x9ad   : > { %3312 = vst [vmem:[%s6141_s25 + $0x8] sm:$0xff] %v3304_v29 }
 0x9ae   : > { %v3269_v52 = vmax.f32 %v3261_v22, 0.0  ;;  %v3270_v27 = vmax.f32 %v3262_v9, 0.0 }
 0x9b0   : > { %v3297_v35 = vmul.f32 %v3283_v17, %v3269_v52  ;;  %v3298_v28 = vmul.f32 %v3283_v17, %v3270_v27 }
 0x9b2   : > { %v3305_v32 = vadd.f32 %v3297_v35, %v5635_v38  ;;  %v3306_v11 = vadd.f32 %v3298_v28, %v5640_v61  ;;  %v3263_v61 = vadd.f32 %v3252_v31, %v3235_v6 }
 0x9b4   : > { %3313 = vst [vmem:[%s6141_s25 + $0x10] sm:$0xff] %v3305_v32  ;;  %v3271_v16 = vmax.f32 %v3263_v61, 0.0 }
 0x9b5   : > { %3314 = vst [vmem:[%s6141_s25 + $0x18] sm:$0xff] %v3306_v11 }
 0x9bb   : > { %v3257_v49 = vpop.permute.xlu1 %3256 }
 0x9bc   : > { %v3265_v40 = vadd.f32 %v3257_v49, %v3237_v57  ;;  %v3266_v24 = vadd.f32 %v3257_v49, %v3238_v18 }
 0x9be   : > { %v3273_v38 = vmax.f32 %v3265_v40, 0.0  ;;  %v3274_v19 = vmax.f32 %v3266_v24, 0.0 }
 0x9c0   : > { %v3301_v44 = vmul.f32 %v3293_v13, %v3273_v38  ;;  %v3302_v5 = vmul.f32 %v3293_v13, %v3274_v19 }
 0x9c2   : > { %v3309_v10 = vadd.f32 %v3301_v44, %v5676_v43  ;;  %v3310_v30 = vadd.f32 %v3302_v5, %v5680_v63 }
 0x9c4   : > { %3317 = vst [vmem:[%s6141_s25 + $0x30] sm:$0xff] %v3309_v10  ;;  %v3288_v12 = vpop.permute.xlu1 %3287 }
 0x9c5   : > { %3318 = vst [vmem:[%s6141_s25 + $0x38] sm:$0xff] %v3310_v30  ;;  %v3299_v48 = vmul.f32 %v3288_v12, %v3271_v16  ;;  %v3300_v2 = vmul.f32 %v3288_v12, %v3272_v15 }
 0x9c7   : > { %v3307_v53 = vadd.f32 %v3299_v48, %v5674_v34  ;;  %v3308_v0 = vadd.f32 %v3300_v2, %v5678_v56 }
 0x9c9   : > { %3315 = vst [vmem:[%s6141_s25 + $0x20] sm:$0xff] %v3307_v53 }
 0x9ca   : > { %3316 = vst [vmem:[%s6141_s25 + $0x28] sm:$0xff] %v3308_v0 }
 0x9cb PF: > { %s19_s30 = sadd.s32 1, %s4592_s30  }
 0x9cc   : > { %p16_p4 = scmp.ge.s32.totalorder %s19_s30, 4  }
 0x9ce   :  { %18 = sbr.rel (!%p16_p4) target bundleno = 1 (0x1), region = 110 }

</bundles_post_ra>
